<compile_context>
chip_gen: v7x
topology: tpu7x:2x2x1
jax: 0.10.0
libtpu: 0.0.40
codegen_flags: <defaults>
</compile_context>

<pallas_src>
import functools

import jax
import jax.numpy as jnp
from jax import lax
from jax.experimental import pallas as pl
from jax.experimental.pallas import tpu as pltpu  # noqa: F401  (CompilerParams only needed at scale)


# ----------------------------- Pallas kernels -----------------------------

def _emb_kernel(x_ref, w_ref, pe_ref, o_ref):
    # fused token-conv (im2col) + temporal linear + positional embedding
    o_ref[...] = (jnp.dot(x_ref[...], w_ref[...], preferred_element_type=jnp.float32)
                  + pe_ref[...])


def pallas_embedding(x_in, w, pe):
    M = x_in.shape[0]
    d = w.shape[1]
    return pl.pallas_call(
        _emb_kernel,
        out_shape=jax.ShapeDtypeStruct((M, d), jnp.float32),
    )(x_in, w, pe)


def _group_kernel(x_ref, wd_ref, bd_ref, g_ref, beta_ref, wu_ref, bu_ref, o_ref,
                  *, n_br, ch, eps):
    # conv-as-matmul -> tanh -> per-branch LayerNorm(ch)
    #                -> transpose-conv as ONE block-diagonal matmul -> tanh
    y = jnp.tanh(jnp.dot(x_ref[...], wd_ref[...], preferred_element_type=jnp.float32)
                 + bd_ref[...])
    gam = g_ref[...]
    bet = beta_ref[...]
    outs = []
    for gi in range(n_br):
        lo, hi = gi * ch, (gi + 1) * ch
        z = y[:, lo:hi]
        mu = jnp.mean(z, axis=-1, keepdims=True)
        zc = z - mu
        var = jnp.mean(zc * zc, axis=-1, keepdims=True)
        outs.append((zc * lax.rsqrt(var + eps)) * gam[:, lo:hi] + bet[:, lo:hi])
    z_ln = jnp.concatenate(outs, axis=-1)                       # [M, n_br*ch]
    # block-diagonal transpose-conv weight -> lane-dense [M, n_br*ker*d] output in one matmul
    o_ref[...] = jnp.tanh(jnp.dot(z_ln, wu_ref[...], preferred_element_type=jnp.float32)
                          + bu_ref[...])


def pallas_group(x_col, gp, *, n_br, ch, ker, d):
    M = x_col.shape[0]
    return pl.pallas_call(
        functools.partial(_group_kernel, n_br=n_br, ch=ch, eps=1e-5),
        out_shape=jax.ShapeDtypeStruct((M, n_br * ker * d), jnp.float32),
    )(x_col, gp['down_w'], gp['down_b'], gp['ln_g'], gp['ln_b'],
      gp['up_w'], gp['up_b'])


def _make_merge_attn_kernel(n_br, B, L, H, Dh, eps):
    scale = 1.0 / (Dh ** 0.5)

    def kernel(*refs):
        t_refs = refs[:n_br]
        (xemb_ref, ng_ref, nb_ref, wm_ref, bm_ref,
         wqkv_ref, bqkv_ref, wo_ref, bo_ref, o_ref) = refs[n_br:]

        xe = xemb_ref[...]
        gam = ng_ref[...]
        bet = nb_ref[...]

        # per-branch residual add + shared LayerNorm(d_model)
        branches = []
        for tr in t_refs:
            z = tr[...] + xe
            mu = jnp.mean(z, axis=-1, keepdims=True)
            zc = z - mu
            var = jnp.mean(zc * zc, axis=-1, keepdims=True)
            branches.append((zc * lax.rsqrt(var + eps)) * gam + bet)
        xcat = jnp.concatenate(branches, axis=-1)                       # [B*L, n_br*d]

        # merge Conv2d(d, d, (n_br, 1)) as a single matmul
        mg = jnp.dot(xcat, wm_ref[...], preferred_element_type=jnp.float32) + bm_ref[...]
        d = mg.shape[-1]

        # fused QKV projection ([d, 3d] weight -> one matmul)
        qkv = jnp.dot(mg, wqkv_ref[...], preferred_element_type=jnp.float32) + bqkv_ref[...]
        q = qkv[:, 0 * d:1 * d]
        k = qkv[:, 1 * d:2 * d]
        v = qkv[:, 2 * d:3 * d]

        # per-(batch, head) softmax attention; heads reassembled lane-dense in-kernel
        rows = []
        for b in range(B):
            r0 = b * L
            heads = []
            for h in range(H):
                c0 = h * Dh
                qb = q[r0:r0 + L, c0:c0 + Dh]
                kb = k[r0:r0 + L, c0:c0 + Dh]
                vb = v[r0:r0 + L, c0:c0 + Dh]
                s = lax.dot_general(qb, kb, (((1,), (1,)), ((), ())),
                                    preferred_element_type=jnp.float32) * scale
                m = jnp.max(s, axis=-1, keepdims=True)
                e = jnp.exp(s - m)
                p = e * pl.reciprocal(jnp.sum(e, axis=-1, keepdims=True), approx=True)
                heads.append(jnp.dot(p, vb, preferred_element_type=jnp.float32))
            rows.append(jnp.concatenate(heads, axis=-1))                # [L, d]
        att = jnp.concatenate(rows, axis=0)                             # [B*L, d]

        # output projection d_model -> c_out
        o_ref[...] = jnp.dot(att, wo_ref[...], preferred_element_type=jnp.float32) + bo_ref[...]

    return kernel


def pallas_merge_attn(t_list, x_emb, p, *, B, L, H):
    d = x_emb.shape[-1]
    Dh = d // H
    c_out = p['wo'].shape[1]
    kernel = _make_merge_attn_kernel(len(t_list), B, L, H, Dh, 1e-5)
    return pl.pallas_call(
        kernel,
        out_shape=jax.ShapeDtypeStruct((B * L, c_out), jnp.float32),
    )(*t_list, x_emb, p['norm_g'], p['norm_b'], p['merge_w'], p['merge_b'],
      p['wqkv'], p['bqkv'], p['wo'], p['bo'])


# ------------------------------ helpers ------------------------------

def positional_embedding(L, d_model):
    pos = jnp.arange(L, dtype=jnp.float32)[:, None]
    i = jnp.arange(0, d_model, 2, dtype=jnp.float32)
    div = jnp.exp(-jnp.log(10000.0) * i / d_model)
    pe = jnp.zeros((L, d_model), jnp.float32)
    pe = pe.at[:, 0::2].set(jnp.sin(pos * div))
    pe = pe.at[:, 1::2].set(jnp.cos(pos * div))
    return pe


def branch_groups(cfg):
    """Group branch indices sharing (kernel_size, channel) so they batch into one kernel."""
    groups, seen = [], {}
    for i, (ker, ch) in enumerate(zip(cfg['conv_kernel'], cfg['channel'])):
        if (ker, ch) in seen:
            groups[seen[(ker, ch)]]['branches'].append(i)
        else:
            seen[(ker, ch)] = len(groups)
            groups.append(dict(ker=ker, ch=ch, branches=[i]))
    return groups


# ------------------------------ model forward ------------------------------

def model_forward(params, batch_x, batch_x_mark, cfg):
    B = batch_x.shape[0]
    seq_len, pred_len = cfg['seq_len'], cfg['pred_len']
    d, H = cfg['d_model'], cfg['n_heads']
    L = seq_len + pred_len
    F = batch_x.shape[2]

    # pad encoder inputs with zeros for the prediction horizon
    x_enc = jnp.concatenate(
        [batch_x[:, -seq_len:, :].astype(jnp.float32),
         jnp.zeros((B, pred_len, F), jnp.float32)], axis=1)                        # [B, L, F]
    mark_enc = jnp.concatenate(
        [batch_x_mark.astype(jnp.float32),
         jnp.zeros((B, pred_len, batch_x_mark.shape[2]), jnp.float32)], axis=1)    # [B, L, mark]

    # ---- DataEmbedding (fused): circular token conv (k=3) + time linear + PE ----
    xp = jnp.concatenate([x_enc[:, -1:, :], x_enc, x_enc[:, :1, :]], axis=1)       # circular pad
    patches = jnp.concatenate([xp[:, j:j + L, :] for j in range(3)], axis=-1)      # [B, L, 3F]  cols=(tap,chan)
    x_in = jnp.concatenate([patches, mark_enc], axis=-1).reshape(B * L, -1)
    pe = jnp.tile(positional_embedding(L, d), (B, 1))                              # compile-time constant
    x_emb = pallas_embedding(x_in, params['emb_w'], pe)                            # [B*L, d]
    x_emb_bld = x_emb.reshape(B, L, d)

    # ---- branch chains, batched by (kernel_size, channel) group (one fused kernel / group) ----
    t_by_branch = [None] * len(cfg['conv_kernel'])
    for meta, gp in zip(branch_groups(cfg), params['groups']):
        ker, ch, idxs = meta['ker'], meta['ch'], meta['branches']
        n_br = len(idxs)
        pad = ker // 2
        Lout = (L + 2 * pad - ker) // ker + 1
        kerd = ker * d
        # im2col is pad + reshape only (channels-last): columns ordered (tap, channel)
        xpad = jnp.pad(x_emb_bld, ((0, 0), (pad, pad), (0, 0)))[:, :Lout * ker, :]
        x_col = xpad.reshape(B * Lout, ker * d)
        # conv -> tanh -> LayerNorm(ch) -> transpose-conv -> tanh, one fused kernel,
        # lane-dense [B*Lout, n_br*ker*d] output.
        y_up = pallas_group(x_col, gp, n_br=n_br, ch=ch, ker=ker, d=d)
        for j, bi in enumerate(idxs):
            y = y_up[:, j * kerd:(j + 1) * kerd]
            # [B*Lout, ker*d] -> [B, Lout*ker, d] is a pure row-major reshape; slice to L.
            t_by_branch[bi] = y.reshape(B, Lout * ker, d)[:, :L, :].reshape(B * L, d)

    # ---- residual+LN(d) x branches + merge conv + fused QKV + MHA + out-proj: one kernel ----
    out = pallas_merge_attn(t_by_branch, x_emb, params, B=B, L=L, H=H)             # [B*L, c_out]
    return out.reshape(B, L, -1)[:, -pred_len:, :]


# ------------------------------ parameter init ------------------------------

def init_params(cfg, key):
    d, F, mark = cfg['d_model'], cfg['feature_size'], cfg['mark_dim']
    c_out = cfg['c_out']
    nb = len(cfg['conv_kernel'])
    ks = iter(jax.random.split(key, 128))

    def xav(shape, fi, fo):
        lim = (6.0 / (fi + fo)) ** 0.5
        return jax.random.uniform(next(ks), shape, jnp.float32, -lim, lim)

    # Embedding weights (pre-laid-out for the fused im2col matmul)
    w_token = xav((d, F, 3), F * 3, d * 3)                 # Conv1d(F, d, 3) weight, PyTorch layout
    w_time = xav((mark, d), mark, d)
    emb_w = jnp.concatenate([w_token.transpose(2, 1, 0).reshape(3 * F, d), w_time], axis=0)

    # Branch groups: pre-transpose conv / conv-transpose weights to matmul layout at init.
    # Transpose-conv weights are packed block-diagonally so the up step is one matmul.
    groups = []
    for meta in branch_groups(cfg):
        ker, ch, idxs = meta['ker'], meta['ch'], meta['branches']
        n_br = len(idxs)
        kerd = ker * d
        dw, db, lg, lb, ub = [], [], [], [], []
        up_bd = jnp.zeros((n_br * ch, n_br * kerd), jnp.float32)
        for j in range(n_br):
            cw = xav((ch, d, ker), d * ker, ch * ker)      # Conv1d(d, ch, ker) weight [out,in,k]
            dw.append(cw.transpose(2, 1, 0).reshape(ker * d, ch))
            db.append(jnp.zeros((ch,), jnp.float32))
            lg.append(jnp.ones((ch,), jnp.float32))
            lb.append(jnp.zeros((ch,), jnp.float32))
            tw = xav((ch, d, ker), ch * ker, d * ker)      # ConvTranspose1d(ch, d, ker) weight [in,out,k]
            up_bd = up_bd.at[j * ch:(j + 1) * ch, j * kerd:(j + 1) * kerd].set(
                tw.transpose(0, 2, 1).reshape(ch, kerd))
            ub.append(jnp.tile(jnp.zeros((d,), jnp.float32), ker))
        groups.append(dict(
            down_w=jnp.concatenate(dw, axis=1),                            # [ker*d, n_br*ch]
            down_b=jnp.concatenate(db).reshape(1, -1),
            ln_g=jnp.concatenate(lg).reshape(1, -1),
            ln_b=jnp.concatenate(lb).reshape(1, -1),
            up_w=up_bd,                                                    # [n_br*ch, n_br*ker*d]
            up_b=jnp.concatenate(ub).reshape(1, -1),                       # [1, n_br*ker*d]
        ))

    # merge Conv2d(d, d, (nb, 1)) -> matmul weight, column order (branch, channel)
    mw = xav((d, d, nb, 1), d * nb, d)
    merge_w = mw.squeeze(-1).transpose(2, 1, 0).reshape(nb * d, d)

    wq = xav((d, d), d, d)
    wk = xav((d, d), d, d)
    wv = xav((d, d), d, d)
    wo = xav((d, c_out), d, c_out)

    return dict(
        emb_w=emb_w,
        groups=groups,
        norm_g=jnp.ones((1, d), jnp.float32), norm_b=jnp.zeros((1, d), jnp.float32),
        merge_w=merge_w, merge_b=jnp.zeros((1, d), jnp.float32),
        wqkv=jnp.concatenate([wq, wk, wv], axis=1), bqkv=jnp.zeros((1, 3 * d), jnp.float32),
        wo=wo, bo=jnp.zeros((1, c_out), jnp.float32),
    )


# ----------------------------------- main -----------------------------------

if __name__ == "__main__":
    cfg = dict(seq_len=16, pred_len=8, label_len=8,
               feature_size=4, mark_dim=4,
               d_model=32, n_heads=4, c_out=8,
               conv_kernel=[2, 2, 4, 4], channel=[16, 16, 16, 16])

    key = jax.random.PRNGKey(0)
    kp, kx, km = jax.random.split(key, 3)
    params = init_params(cfg, kp)

    batch_x = jax.random.normal(kx, (2, cfg['seq_len'], cfg['feature_size']), jnp.float32)
    batch_x_mark = jax.random.normal(km, (2, cfg['seq_len'], cfg['mark_dim']), jnp.float32)

    fwd = jax.jit(lambda p, x, xm: model_forward(p, x, xm, cfg))
    out = jax.block_until_ready(fwd(params, batch_x, batch_x_mark))

    assert out.shape == (2, cfg['pred_len'], cfg['c_out']), out.shape
    assert bool(jnp.all(jnp.isfinite(out)))
    print("KERNEL_OK")
</pallas_src>

<mosaic_0001>
module attributes {stable_mosaic.version = 11 : i64} {
  func.func @_emb_kernel(%arg0: memref<48x16xf32, #tpu.memory_space<vmem>>, %arg1: memref<16x32xf32, #tpu.memory_space<vmem>>, %arg2: memref<48x32xf32, #tpu.memory_space<vmem>>, %arg3: memref<48x32xf32, #tpu.memory_space<vmem>>) attributes {dimension_semantics = [], scalar_prefetch = 0 : i64, scratch_operands = 0 : i64, tpu.core_type = #tpu.core_type<tc>} {
    %c0 = arith.constant 0 : index
    %c0_0 = arith.constant 0 : index
    %0 = vector.load %arg0[%c0, %c0_0] : memref<48x16xf32, #tpu.memory_space<vmem>>, vector<48x16xf32>
    %c0_1 = arith.constant 0 : index
    %c0_2 = arith.constant 0 : index
    %1 = vector.load %arg1[%c0_1, %c0_2] : memref<16x32xf32, #tpu.memory_space<vmem>>, vector<16x32xf32>
    %cst = arith.constant dense<0.000000e+00> : vector<48x32xf32>
    %2 = tpu.matmul %0, %1, %cst {dimension_numbers = #tpu.dot_dimension_numbers<[1], [0], [0], [1], [0, 0, 1, 1], [], []>} : vector<48x16xf32>, vector<16x32xf32>, vector<48x32xf32> -> vector<48x32xf32>
    %c0_3 = arith.constant 0 : index
    %c0_4 = arith.constant 0 : index
    %3 = vector.load %arg2[%c0_3, %c0_4] : memref<48x32xf32, #tpu.memory_space<vmem>>, vector<48x32xf32>
    %4 = arith.addf %2, %3 : vector<48x32xf32>
    %c0_5 = arith.constant 0 : index
    %c0_6 = arith.constant 0 : index
    %5 = vector.load %arg3[%c0_5, %c0_6] : memref<48x32xf32, #tpu.memory_space<vmem>>, vector<48x32xf32>
    tpu.vector_store %arg3[%c0_5, %c0_6], %4 {strides = array<i32>} : memref<48x32xf32, #tpu.memory_space<vmem>>, vector<48x32xf32>,
    return
  }
}

module attributes {stable_mosaic.version = 11 : i64} {
  func.func @_group_kernel(%arg0: memref<26x64xf32, #tpu.memory_space<vmem>>, %arg1: memref<64x32xf32, #tpu.memory_space<vmem>>, %arg2: memref<1x32xf32, #tpu.memory_space<vmem>>, %arg3: memref<1x32xf32, #tpu.memory_space<vmem>>, %arg4: memref<1x32xf32, #tpu.memory_space<vmem>>, %arg5: memref<32x128xf32, #tpu.memory_space<vmem>>, %arg6: memref<1x128xf32, #tpu.memory_space<vmem>>, %arg7: memref<26x128xf32, #tpu.memory_space<vmem>>) attributes {dimension_semantics = [], scalar_prefetch = 0 : i64, scratch_operands = 0 : i64, tpu.core_type = #tpu.core_type<tc>} {
    %c0 = arith.constant 0 : index
    %c0_0 = arith.constant 0 : index
    %0 = vector.load %arg0[%c0, %c0_0] : memref<26x64xf32, #tpu.memory_space<vmem>>, vector<26x64xf32>
    %c0_1 = arith.constant 0 : index
    %c0_2 = arith.constant 0 : index
    %1 = vector.load %arg1[%c0_1, %c0_2] : memref<64x32xf32, #tpu.memory_space<vmem>>, vector<64x32xf32>
    %cst = arith.constant dense<0.000000e+00> : vector<26x32xf32>
    %2 = tpu.matmul %0, %1, %cst {dimension_numbers = #tpu.dot_dimension_numbers<[1], [0], [0], [1], [0, 0, 1, 1], [], []>} : vector<26x64xf32>, vector<64x32xf32>, vector<26x32xf32> -> vector<26x32xf32>
    %c0_3 = arith.constant 0 : index
    %c0_4 = arith.constant 0 : index
    %3 = vector.load %arg2[%c0_3, %c0_4] : memref<1x32xf32, #tpu.memory_space<vmem>>, vector<1x32xf32>
    %4 = vector.broadcast %3 : vector<1x32xf32> to vector<26x32xf32>
    %5 = arith.addf %2, %4 : vector<26x32xf32>
    %6 = math.tanh %5 : vector<26x32xf32>
    %c0_5 = arith.constant 0 : index
    %c0_6 = arith.constant 0 : index
    %7 = vector.load %arg3[%c0_5, %c0_6] : memref<1x32xf32, #tpu.memory_space<vmem>>, vector<1x32xf32>
    %c0_7 = arith.constant 0 : index
    %c0_8 = arith.constant 0 : index
    %8 = vector.load %arg4[%c0_7, %c0_8] : memref<1x32xf32, #tpu.memory_space<vmem>>, vector<1x32xf32>
    %9 = vector.extract_strided_slice %6 {offsets = [0, 0], sizes = [26, 16], strides = [1, 1]} : vector<26x32xf32> to vector<26x16xf32>
    %cst_9 = arith.constant dense<0.000000e+00> : vector<26xf32>
    %10 = vector.multi_reduction <add>, %9, %cst_9 [1] : vector<26x16xf32> to vector<26xf32>
    %11 = vector.shape_cast %10 : vector<26xf32> to vector<26x1xf32>
    %cst_10 = arith.constant 1.600000e+01 : f32
    %12 = vector.broadcast %cst_10 : f32 to vector<26x1xf32>
    %13 = arith.divf %11, %12 : vector<26x1xf32>
    %14 = vector.broadcast %13 : vector<26x1xf32> to vector<26x16xf32>
    %15 = arith.subf %9, %14 : vector<26x16xf32>
    %16 = arith.mulf %15, %15 : vector<26x16xf32>
    %cst_11 = arith.constant dense<0.000000e+00> : vector<26xf32>
    %17 = vector.multi_reduction <add>, %16, %cst_11 [1] : vector<26x16xf32> to vector<26xf32>
    %18 = vector.shape_cast %17 : vector<26xf32> to vector<26x1xf32>
    %cst_12 = arith.constant 1.600000e+01 : f32
    %19 = vector.broadcast %cst_12 : f32 to vector<26x1xf32>
    %20 = arith.divf %18, %19 : vector<26x1xf32>
    %cst_13 = arith.constant 9.99999974E-6 : f32
    %21 = vector.broadcast %cst_13 : f32 to vector<26x1xf32>
    %22 = arith.addf %20, %21 : vector<26x1xf32>
    %23 = math.rsqrt %22 : vector<26x1xf32>
    %24 = vector.broadcast %23 : vector<26x1xf32> to vector<26x16xf32>
    %25 = arith.mulf %15, %24 : vector<26x16xf32>
    %26 = vector.extract_strided_slice %7 {offsets = [0, 0], sizes = [1, 16], strides = [1, 1]} : vector<1x32xf32> to vector<1x16xf32>
    %27 = vector.broadcast %26 : vector<1x16xf32> to vector<26x16xf32>
    %28 = arith.mulf %25, %27 : vector<26x16xf32>
    %29 = vector.extract_strided_slice %8 {offsets = [0, 0], sizes = [1, 16], strides = [1, 1]} : vector<1x32xf32> to vector<1x16xf32>
    %30 = vector.broadcast %29 : vector<1x16xf32> to vector<26x16xf32>
    %31 = arith.addf %28, %30 : vector<26x16xf32>
    %32 = vector.extract_strided_slice %6 {offsets = [0, 16], sizes = [26, 16], strides = [1, 1]} : vector<26x32xf32> to vector<26x16xf32>
    %cst_14 = arith.constant dense<0.000000e+00> : vector<26xf32>
    %33 = vector.multi_reduction <add>, %32, %cst_14 [1] : vector<26x16xf32> to vector<26xf32>
    %34 = vector.shape_cast %33 : vector<26xf32> to vector<26x1xf32>
    %cst_15 = arith.constant 1.600000e+01 : f32
    %35 = vector.broadcast %cst_15 : f32 to vector<26x1xf32>
    %36 = arith.divf %34, %35 : vector<26x1xf32>
    %37 = vector.broadcast %36 : vector<26x1xf32> to vector<26x16xf32>
    %38 = arith.subf %32, %37 : vector<26x16xf32>
    %39 = arith.mulf %38, %38 : vector<26x16xf32>
    %cst_16 = arith.constant dense<0.000000e+00> : vector<26xf32>
    %40 = vector.multi_reduction <add>, %39, %cst_16 [1] : vector<26x16xf32> to vector<26xf32>
    %41 = vector.shape_cast %40 : vector<26xf32> to vector<26x1xf32>
    %cst_17 = arith.constant 1.600000e+01 : f32
    %42 = vector.broadcast %cst_17 : f32 to vector<26x1xf32>
    %43 = arith.divf %41, %42 : vector<26x1xf32>
    %cst_18 = arith.constant 9.99999974E-6 : f32
    %44 = vector.broadcast %cst_18 : f32 to vector<26x1xf32>
    %45 = arith.addf %43, %44 : vector<26x1xf32>
    %46 = math.rsqrt %45 : vector<26x1xf32>
    %47 = vector.broadcast %46 : vector<26x1xf32> to vector<26x16xf32>
    %48 = arith.mulf %38, %47 : vector<26x16xf32>
    %49 = vector.extract_strided_slice %7 {offsets = [0, 16], sizes = [1, 16], strides = [1, 1]} : vector<1x32xf32> to vector<1x16xf32>
    %50 = vector.broadcast %49 : vector<1x16xf32> to vector<26x16xf32>
    %51 = arith.mulf %48, %50 : vector<26x16xf32>
    %52 = vector.extract_strided_slice %8 {offsets = [0, 16], sizes = [1, 16], strides = [1, 1]} : vector<1x32xf32> to vector<1x16xf32>
    %53 = vector.broadcast %52 : vector<1x16xf32> to vector<26x16xf32>
    %54 = arith.addf %51, %53 : vector<26x16xf32>
    %55 = tpu.concatenate %31, %54 in 1 : vector<26x16xf32>, vector<26x16xf32> -> vector<26x32xf32>
    %c0_19 = arith.constant 0 : index
    %c0_20 = arith.constant 0 : index
    %56 = vector.load %arg5[%c0_19, %c0_20] : memref<32x128xf32, #tpu.memory_space<vmem>>, vector<32x128xf32>
    %cst_21 = arith.constant dense<0.000000e+00> : vector<26x128xf32>
    %57 = tpu.matmul %55, %56, %cst_21 {dimension_numbers = #tpu.dot_dimension_numbers<[1], [0], [0], [1], [0, 0, 1, 1], [], []>} : vector<26x32xf32>, vector<32x128xf32>, vector<26x128xf32> -> vector<26x128xf32>
    %c0_22 = arith.constant 0 : index
    %c0_23 = arith.constant 0 : index
    %58 = vector.load %arg6[%c0_22, %c0_23] : memref<1x128xf32, #tpu.memory_space<vmem>>, vector<1x128xf32>
    %59 = vector.broadcast %58 : vector<1x128xf32> to vector<26x128xf32>
    %60 = arith.addf %57, %59 : vector<26x128xf32>
    %61 = math.tanh %60 : vector<26x128xf32>
    %c0_24 = arith.constant 0 : index
    %c0_25 = arith.constant 0 : index
    %62 = vector.load %arg7[%c0_24, %c0_25] : memref<26x128xf32, #tpu.memory_space<vmem>>, vector<26x128xf32>
    tpu.vector_store %arg7[%c0_24, %c0_25], %61 {strides = array<i32>} : memref<26x128xf32, #tpu.memory_space<vmem>>, vector<26x128xf32>,
    return
  }
}

module attributes {stable_mosaic.version = 11 : i64} {
  func.func @_group_kernel(%arg0: memref<14x128xf32, #tpu.memory_space<vmem>>, %arg1: memref<128x32xf32, #tpu.memory_space<vmem>>, %arg2: memref<1x32xf32, #tpu.memory_space<vmem>>, %arg3: memref<1x32xf32, #tpu.memory_space<vmem>>, %arg4: memref<1x32xf32, #tpu.memory_space<vmem>>, %arg5: memref<32x256xf32, #tpu.memory_space<vmem>>, %arg6: memref<1x256xf32, #tpu.memory_space<vmem>>, %arg7: memref<14x256xf32, #tpu.memory_space<vmem>>) attributes {dimension_semantics = [], scalar_prefetch = 0 : i64, scratch_operands = 0 : i64, tpu.core_type = #tpu.core_type<tc>} {
    %c0 = arith.constant 0 : index
    %c0_0 = arith.constant 0 : index
    %0 = vector.load %arg0[%c0, %c0_0] : memref<14x128xf32, #tpu.memory_space<vmem>>, vector<14x128xf32>
    %c0_1 = arith.constant 0 : index
    %c0_2 = arith.constant 0 : index
    %1 = vector.load %arg1[%c0_1, %c0_2] : memref<128x32xf32, #tpu.memory_space<vmem>>, vector<128x32xf32>
    %cst = arith.constant dense<0.000000e+00> : vector<14x32xf32>
    %2 = tpu.matmul %0, %1, %cst {dimension_numbers = #tpu.dot_dimension_numbers<[1], [0], [0], [1], [0, 0, 1, 1], [], []>} : vector<14x128xf32>, vector<128x32xf32>, vector<14x32xf32> -> vector<14x32xf32>
    %c0_3 = arith.constant 0 : index
    %c0_4 = arith.constant 0 : index
    %3 = vector.load %arg2[%c0_3, %c0_4] : memref<1x32xf32, #tpu.memory_space<vmem>>, vector<1x32xf32>
    %4 = vector.broadcast %3 : vector<1x32xf32> to vector<14x32xf32>
    %5 = arith.addf %2, %4 : vector<14x32xf32>
    %6 = math.tanh %5 : vector<14x32xf32>
    %c0_5 = arith.constant 0 : index
    %c0_6 = arith.constant 0 : index
    %7 = vector.load %arg3[%c0_5, %c0_6] : memref<1x32xf32, #tpu.memory_space<vmem>>, vector<1x32xf32>
    %c0_7 = arith.constant 0 : index
    %c0_8 = arith.constant 0 : index
    %8 = vector.load %arg4[%c0_7, %c0_8] : memref<1x32xf32, #tpu.memory_space<vmem>>, vector<1x32xf32>
    %9 = vector.extract_strided_slice %6 {offsets = [0, 0], sizes = [14, 16], strides = [1, 1]} : vector<14x32xf32> to vector<14x16xf32>
    %cst_9 = arith.constant dense<0.000000e+00> : vector<14xf32>
    %10 = vector.multi_reduction <add>, %9, %cst_9 [1] : vector<14x16xf32> to vector<14xf32>
    %11 = vector.shape_cast %10 : vector<14xf32> to vector<14x1xf32>
    %cst_10 = arith.constant 1.600000e+01 : f32
    %12 = vector.broadcast %cst_10 : f32 to vector<14x1xf32>
    %13 = arith.divf %11, %12 : vector<14x1xf32>
    %14 = vector.broadcast %13 : vector<14x1xf32> to vector<14x16xf32>
    %15 = arith.subf %9, %14 : vector<14x16xf32>
    %16 = arith.mulf %15, %15 : vector<14x16xf32>
    %cst_11 = arith.constant dense<0.000000e+00> : vector<14xf32>
    %17 = vector.multi_reduction <add>, %16, %cst_11 [1] : vector<14x16xf32> to vector<14xf32>
    %18 = vector.shape_cast %17 : vector<14xf32> to vector<14x1xf32>
    %cst_12 = arith.constant 1.600000e+01 : f32
    %19 = vector.broadcast %cst_12 : f32 to vector<14x1xf32>
    %20 = arith.divf %18, %19 : vector<14x1xf32>
    %cst_13 = arith.constant 9.99999974E-6 : f32
    %21 = vector.broadcast %cst_13 : f32 to vector<14x1xf32>
    %22 = arith.addf %20, %21 : vector<14x1xf32>
    %23 = math.rsqrt %22 : vector<14x1xf32>
    %24 = vector.broadcast %23 : vector<14x1xf32> to vector<14x16xf32>
    %25 = arith.mulf %15, %24 : vector<14x16xf32>
    %26 = vector.extract_strided_slice %7 {offsets = [0, 0], sizes = [1, 16], strides = [1, 1]} : vector<1x32xf32> to vector<1x16xf32>
    %27 = vector.broadcast %26 : vector<1x16xf32> to vector<14x16xf32>
    %28 = arith.mulf %25, %27 : vector<14x16xf32>
    %29 = vector.extract_strided_slice %8 {offsets = [0, 0], sizes = [1, 16], strides = [1, 1]} : vector<1x32xf32> to vector<1x16xf32>
    %30 = vector.broadcast %29 : vector<1x16xf32> to vector<14x16xf32>
    %31 = arith.addf %28, %30 : vector<14x16xf32>
    %32 = vector.extract_strided_slice %6 {offsets = [0, 16], sizes = [14, 16], strides = [1, 1]} : vector<14x32xf32> to vector<14x16xf32>
    %cst_14 = arith.constant dense<0.000000e+00> : vector<14xf32>
    %33 = vector.multi_reduction <add>, %32, %cst_14 [1] : vector<14x16xf32> to vector<14xf32>
    %34 = vector.shape_cast %33 : vector<14xf32> to vector<14x1xf32>
    %cst_15 = arith.constant 1.600000e+01 : f32
    %35 = vector.broadcast %cst_15 : f32 to vector<14x1xf32>
    %36 = arith.divf %34, %35 : vector<14x1xf32>
    %37 = vector.broadcast %36 : vector<14x1xf32> to vector<14x16xf32>
    %38 = arith.subf %32, %37 : vector<14x16xf32>
    %39 = arith.mulf %38, %38 : vector<14x16xf32>
    %cst_16 = arith.constant dense<0.000000e+00> : vector<14xf32>
    %40 = vector.multi_reduction <add>, %39, %cst_16 [1] : vector<14x16xf32> to vector<14xf32>
    %41 = vector.shape_cast %40 : vector<14xf32> to vector<14x1xf32>
    %cst_17 = arith.constant 1.600000e+01 : f32
    %42 = vector.broadcast %cst_17 : f32 to vector<14x1xf32>
    %43 = arith.divf %41, %42 : vector<14x1xf32>
    %cst_18 = arith.constant 9.99999974E-6 : f32
    %44 = vector.broadcast %cst_18 : f32 to vector<14x1xf32>
    %45 = arith.addf %43, %44 : vector<14x1xf32>
    %46 = math.rsqrt %45 : vector<14x1xf32>
    %47 = vector.broadcast %46 : vector<14x1xf32> to vector<14x16xf32>
    %48 = arith.mulf %38, %47 : vector<14x16xf32>
    %49 = vector.extract_strided_slice %7 {offsets = [0, 16], sizes = [1, 16], strides = [1, 1]} : vector<1x32xf32> to vector<1x16xf32>
    %50 = vector.broadcast %49 : vector<1x16xf32> to vector<14x16xf32>
    %51 = arith.mulf %48, %50 : vector<14x16xf32>
    %52 = vector.extract_strided_slice %8 {offsets = [0, 16], sizes = [1, 16], strides = [1, 1]} : vector<1x32xf32> to vector<1x16xf32>
    %53 = vector.broadcast %52 : vector<1x16xf32> to vector<14x16xf32>
    %54 = arith.addf %51, %53 : vector<14x16xf32>
    %55 = tpu.concatenate %31, %54 in 1 : vector<14x16xf32>, vector<14x16xf32> -> vector<14x32xf32>
    %c0_19 = arith.constant 0 : index
    %c0_20 = arith.constant 0 : index
    %56 = vector.load %arg5[%c0_19, %c0_20] : memref<32x256xf32, #tpu.memory_space<vmem>>, vector<32x256xf32>
    %cst_21 = arith.constant dense<0.000000e+00> : vector<14x256xf32>
    %57 = tpu.matmul %55, %56, %cst_21 {dimension_numbers = #tpu.dot_dimension_numbers<[1], [0], [0], [1], [0, 0, 1, 1], [], []>} : vector<14x32xf32>, vector<32x256xf32>, vector<14x256xf32> -> vector<14x256xf32>
    %c0_22 = arith.constant 0 : index
    %c0_23 = arith.constant 0 : index
    %58 = vector.load %arg6[%c0_22, %c0_23] : memref<1x256xf32, #tpu.memory_space<vmem>>, vector<1x256xf32>
    %59 = vector.broadcast %58 : vector<1x256xf32> to vector<14x256xf32>
    %60 = arith.addf %57, %59 : vector<14x256xf32>
    %61 = math.tanh %60 : vector<14x256xf32>
    %c0_24 = arith.constant 0 : index
    %c0_25 = arith.constant 0 : index
    %62 = vector.load %arg7[%c0_24, %c0_25] : memref<14x256xf32, #tpu.memory_space<vmem>>, vector<14x256xf32>
    tpu.vector_store %arg7[%c0_24, %c0_25], %61 {strides = array<i32>} : memref<14x256xf32, #tpu.memory_space<vmem>>, vector<14x256xf32>,
    return
  }
}

module attributes {stable_mosaic.version = 11 : i64} {
  func.func @kernel(%arg0: memref<48x32xf32, #tpu.memory_space<vmem>>, %arg1: memref<48x32xf32, #tpu.memory_space<vmem>>, %arg2: memref<48x32xf32, #tpu.memory_space<vmem>>, %arg3: memref<48x32xf32, #tpu.memory_space<vmem>>, %arg4: memref<48x32xf32, #tpu.memory_space<vmem>>, %arg5: memref<1x32xf32, #tpu.memory_space<vmem>>, %arg6: memref<1x32xf32, #tpu.memory_space<vmem>>, %arg7: memref<128x32xf32, #tpu.memory_space<vmem>>, %arg8: memref<1x32xf32, #tpu.memory_space<vmem>>, %arg9: memref<32x96xf32, #tpu.memory_space<vmem>>, %arg10: memref<1x96xf32, #tpu.memory_space<vmem>>, %arg11: memref<32x8xf32, #tpu.memory_space<vmem>>, %arg12: memref<1x8xf32, #tpu.memory_space<vmem>>, %arg13: memref<48x8xf32, #tpu.memory_space<vmem>>) attributes {dimension_semantics = [], scalar_prefetch = 0 : i64, scratch_operands = 0 : i64, tpu.core_type = #tpu.core_type<tc>} {
    %c0 = arith.constant 0 : index
    %c0_0 = arith.constant 0 : index
    %0 = vector.load %arg4[%c0, %c0_0] : memref<48x32xf32, #tpu.memory_space<vmem>>, vector<48x32xf32>
    %c0_1 = arith.constant 0 : index
    %c0_2 = arith.constant 0 : index
    %1 = vector.load %arg5[%c0_1, %c0_2] : memref<1x32xf32, #tpu.memory_space<vmem>>, vector<1x32xf32>
    %c0_3 = arith.constant 0 : index
    %c0_4 = arith.constant 0 : index
    %2 = vector.load %arg6[%c0_3, %c0_4] : memref<1x32xf32, #tpu.memory_space<vmem>>, vector<1x32xf32>
    %c0_5 = arith.constant 0 : index
    %c0_6 = arith.constant 0 : index
    %3 = vector.load %arg0[%c0_5, %c0_6] : memref<48x32xf32, #tpu.memory_space<vmem>>, vector<48x32xf32>
    %4 = arith.addf %3, %0 : vector<48x32xf32>
    %cst = arith.constant dense<0.000000e+00> : vector<48xf32>
    %5 = vector.multi_reduction <add>, %4, %cst [1] : vector<48x32xf32> to vector<48xf32>
    %6 = vector.shape_cast %5 : vector<48xf32> to vector<48x1xf32>
    %cst_7 = arith.constant 3.200000e+01 : f32
    %7 = vector.broadcast %cst_7 : f32 to vector<48x1xf32>
    %8 = arith.divf %6, %7 : vector<48x1xf32>
    %9 = vector.broadcast %8 : vector<48x1xf32> to vector<48x32xf32>
    %10 = arith.subf %4, %9 : vector<48x32xf32>
    %11 = arith.mulf %10, %10 : vector<48x32xf32>
    %cst_8 = arith.constant dense<0.000000e+00> : vector<48xf32>
    %12 = vector.multi_reduction <add>, %11, %cst_8 [1] : vector<48x32xf32> to vector<48xf32>
    %13 = vector.shape_cast %12 : vector<48xf32> to vector<48x1xf32>
    %cst_9 = arith.constant 3.200000e+01 : f32
    %14 = vector.broadcast %cst_9 : f32 to vector<48x1xf32>
    %15 = arith.divf %13, %14 : vector<48x1xf32>
    %cst_10 = arith.constant 9.99999974E-6 : f32
    %16 = vector.broadcast %cst_10 : f32 to vector<48x1xf32>
    %17 = arith.addf %15, %16 : vector<48x1xf32>
    %18 = math.rsqrt %17 : vector<48x1xf32>
    %19 = vector.broadcast %18 : vector<48x1xf32> to vector<48x32xf32>
    %20 = arith.mulf %10, %19 : vector<48x32xf32>
    %21 = vector.broadcast %1 : vector<1x32xf32> to vector<48x32xf32>
    %22 = arith.mulf %20, %21 : vector<48x32xf32>
    %23 = vector.broadcast %2 : vector<1x32xf32> to vector<48x32xf32>
    %24 = arith.addf %22, %23 : vector<48x32xf32>
    %c0_11 = arith.constant 0 : index
    %c0_12 = arith.constant 0 : index
    %25 = vector.load %arg1[%c0_11, %c0_12] : memref<48x32xf32, #tpu.memory_space<vmem>>, vector<48x32xf32>
    %26 = arith.addf %25, %0 : vector<48x32xf32>
    %cst_13 = arith.constant dense<0.000000e+00> : vector<48xf32>
    %27 = vector.multi_reduction <add>, %26, %cst_13 [1] : vector<48x32xf32> to vector<48xf32>
    %28 = vector.shape_cast %27 : vector<48xf32> to vector<48x1xf32>
    %cst_14 = arith.constant 3.200000e+01 : f32
    %29 = vector.broadcast %cst_14 : f32 to vector<48x1xf32>
    %30 = arith.divf %28, %29 : vector<48x1xf32>
    %31 = vector.broadcast %30 : vector<48x1xf32> to vector<48x32xf32>
    %32 = arith.subf %26, %31 : vector<48x32xf32>
    %33 = arith.mulf %32, %32 : vector<48x32xf32>
    %cst_15 = arith.constant dense<0.000000e+00> : vector<48xf32>
    %34 = vector.multi_reduction <add>, %33, %cst_15 [1] : vector<48x32xf32> to vector<48xf32>
    %35 = vector.shape_cast %34 : vector<48xf32> to vector<48x1xf32>
    %cst_16 = arith.constant 3.200000e+01 : f32
    %36 = vector.broadcast %cst_16 : f32 to vector<48x1xf32>
    %37 = arith.divf %35, %36 : vector<48x1xf32>
    %cst_17 = arith.constant 9.99999974E-6 : f32
    %38 = vector.broadcast %cst_17 : f32 to vector<48x1xf32>
    %39 = arith.addf %37, %38 : vector<48x1xf32>
    %40 = math.rsqrt %39 : vector<48x1xf32>
    %41 = vector.broadcast %40 : vector<48x1xf32> to vector<48x32xf32>
    %42 = arith.mulf %32, %41 : vector<48x32xf32>
    %43 = vector.broadcast %1 : vector<1x32xf32> to vector<48x32xf32>
    %44 = arith.mulf %42, %43 : vector<48x32xf32>
    %45 = vector.broadcast %2 : vector<1x32xf32> to vector<48x32xf32>
    %46 = arith.addf %44, %45 : vector<48x32xf32>
    %c0_18 = arith.constant 0 : index
    %c0_19 = arith.constant 0 : index
    %47 = vector.load %arg2[%c0_18, %c0_19] : memref<48x32xf32, #tpu.memory_space<vmem>>, vector<48x32xf32>
    %48 = arith.addf %47, %0 : vector<48x32xf32>
    %cst_20 = arith.constant dense<0.000000e+00> : vector<48xf32>
    %49 = vector.multi_reduction <add>, %48, %cst_20 [1] : vector<48x32xf32> to vector<48xf32>
    %50 = vector.shape_cast %49 : vector<48xf32> to vector<48x1xf32>
    %cst_21 = arith.constant 3.200000e+01 : f32
    %51 = vector.broadcast %cst_21 : f32 to vector<48x1xf32>
    %52 = arith.divf %50, %51 : vector<48x1xf32>
    %53 = vector.broadcast %52 : vector<48x1xf32> to vector<48x32xf32>
    %54 = arith.subf %48, %53 : vector<48x32xf32>
    %55 = arith.mulf %54, %54 : vector<48x32xf32>
    %cst_22 = arith.constant dense<0.000000e+00> : vector<48xf32>
    %56 = vector.multi_reduction <add>, %55, %cst_22 [1] : vector<48x32xf32> to vector<48xf32>
    %57 = vector.shape_cast %56 : vector<48xf32> to vector<48x1xf32>
    %cst_23 = arith.constant 3.200000e+01 : f32
    %58 = vector.broadcast %cst_23 : f32 to vector<48x1xf32>
    %59 = arith.divf %57, %58 : vector<48x1xf32>
    %cst_24 = arith.constant 9.99999974E-6 : f32
    %60 = vector.broadcast %cst_24 : f32 to vector<48x1xf32>
    %61 = arith.addf %59, %60 : vector<48x1xf32>
    %62 = math.rsqrt %61 : vector<48x1xf32>
    %63 = vector.broadcast %62 : vector<48x1xf32> to vector<48x32xf32>
    %64 = arith.mulf %54, %63 : vector<48x32xf32>
    %65 = vector.broadcast %1 : vector<1x32xf32> to vector<48x32xf32>
    %66 = arith.mulf %64, %65 : vector<48x32xf32>
    %67 = vector.broadcast %2 : vector<1x32xf32> to vector<48x32xf32>
    %68 = arith.addf %66, %67 : vector<48x32xf32>
    %c0_25 = arith.constant 0 : index
    %c0_26 = arith.constant 0 : index
    %69 = vector.load %arg3[%c0_25, %c0_26] : memref<48x32xf32, #tpu.memory_space<vmem>>, vector<48x32xf32>
    %70 = arith.addf %69, %0 : vector<48x32xf32>
    %cst_27 = arith.constant dense<0.000000e+00> : vector<48xf32>
    %71 = vector.multi_reduction <add>, %70, %cst_27 [1] : vector<48x32xf32> to vector<48xf32>
    %72 = vector.shape_cast %71 : vector<48xf32> to vector<48x1xf32>
    %cst_28 = arith.constant 3.200000e+01 : f32
    %73 = vector.broadcast %cst_28 : f32 to vector<48x1xf32>
    %74 = arith.divf %72, %73 : vector<48x1xf32>
    %75 = vector.broadcast %74 : vector<48x1xf32> to vector<48x32xf32>
    %76 = arith.subf %70, %75 : vector<48x32xf32>
    %77 = arith.mulf %76, %76 : vector<48x32xf32>
    %cst_29 = arith.constant dense<0.000000e+00> : vector<48xf32>
    %78 = vector.multi_reduction <add>, %77, %cst_29 [1] : vector<48x32xf32> to vector<48xf32>
    %79 = vector.shape_cast %78 : vector<48xf32> to vector<48x1xf32>
    %cst_30 = arith.constant 3.200000e+01 : f32
    %80 = vector.broadcast %cst_30 : f32 to vector<48x1xf32>
    %81 = arith.divf %79, %80 : vector<48x1xf32>
    %cst_31 = arith.constant 9.99999974E-6 : f32
    %82 = vector.broadcast %cst_31 : f32 to vector<48x1xf32>
    %83 = arith.addf %81, %82 : vector<48x1xf32>
    %84 = math.rsqrt %83 : vector<48x1xf32>
    %85 = vector.broadcast %84 : vector<48x1xf32> to vector<48x32xf32>
    %86 = arith.mulf %76, %85 : vector<48x32xf32>
    %87 = vector.broadcast %1 : vector<1x32xf32> to vector<48x32xf32>
    %88 = arith.mulf %86, %87 : vector<48x32xf32>
    %89 = vector.broadcast %2 : vector<1x32xf32> to vector<48x32xf32>
    %90 = arith.addf %88, %89 : vector<48x32xf32>
    %91 = tpu.concatenate %24, %46, %68, %90 in 1 : vector<48x32xf32>, vector<48x32xf32>, vector<48x32xf32>, vector<48x32xf32> -> vector<48x128xf32>
    %c0_32 = arith.constant 0 : index
    %c0_33 = arith.constant 0 : index
    %92 = vector.load %arg7[%c0_32, %c0_33] : memref<128x32xf32, #tpu.memory_space<vmem>>, vector<128x32xf32>
    %cst_34 = arith.constant dense<0.000000e+00> : vector<48x32xf32>
    %93 = tpu.matmul %91, %92, %cst_34 {dimension_numbers = #tpu.dot_dimension_numbers<[1], [0], [0], [1], [0, 0, 1, 1], [], []>} : vector<48x128xf32>, vector<128x32xf32>, vector<48x32xf32> -> vector<48x32xf32>
    %c0_35 = arith.constant 0 : index
    %c0_36 = arith.constant 0 : index
    %94 = vector.load %arg8[%c0_35, %c0_36] : memref<1x32xf32, #tpu.memory_space<vmem>>, vector<1x32xf32>
    %95 = vector.broadcast %94 : vector<1x32xf32> to vector<48x32xf32>
    %96 = arith.addf %93, %95 : vector<48x32xf32>
    %c0_37 = arith.constant 0 : index
    %c0_38 = arith.constant 0 : index
    %97 = vector.load %arg9[%c0_37, %c0_38] : memref<32x96xf32, #tpu.memory_space<vmem>>, vector<32x96xf32>
    %cst_39 = arith.constant dense<0.000000e+00> : vector<48x96xf32>
    %98 = tpu.matmul %96, %97, %cst_39 {dimension_numbers = #tpu.dot_dimension_numbers<[1], [0], [0], [1], [0, 0, 1, 1], [], []>} : vector<48x32xf32>, vector<32x96xf32>, vector<48x96xf32> -> vector<48x96xf32>
    %c0_40 = arith.constant 0 : index
    %c0_41 = arith.constant 0 : index
    %99 = vector.load %arg10[%c0_40, %c0_41] : memref<1x96xf32, #tpu.memory_space<vmem>>, vector<1x96xf32>
    %100 = vector.broadcast %99 : vector<1x96xf32> to vector<48x96xf32>
    %101 = arith.addf %98, %100 : vector<48x96xf32>
    %102 = vector.extract_strided_slice %101 {offsets = [0, 0], sizes = [48, 32], strides = [1, 1]} : vector<48x96xf32> to vector<48x32xf32>
    %103 = vector.extract_strided_slice %101 {offsets = [0, 32], sizes = [48, 32], strides = [1, 1]} : vector<48x96xf32> to vector<48x32xf32>
    %104 = vector.extract_strided_slice %101 {offsets = [0, 64], sizes = [48, 32], strides = [1, 1]} : vector<48x96xf32> to vector<48x32xf32>
    %105 = vector.extract_strided_slice %102 {offsets = [0, 0], sizes = [24, 8], strides = [1, 1]} : vector<48x32xf32> to vector<24x8xf32>
    %106 = vector.extract_strided_slice %103 {offsets = [0, 0], sizes = [24, 8], strides = [1, 1]} : vector<48x32xf32> to vector<24x8xf32>
    %107 = vector.extract_strided_slice %104 {offsets = [0, 0], sizes = [24, 8], strides = [1, 1]} : vector<48x32xf32> to vector<24x8xf32>
    %cst_42 = arith.constant dense<0.000000e+00> : vector<24x24xf32>
    %108 = tpu.matmul %105, %106, %cst_42 {dimension_numbers = #tpu.dot_dimension_numbers<[1], [1], [0], [0], [0, 0, 1, 0], [], []>} : vector<24x8xf32>, vector<24x8xf32>, vector<24x24xf32> -> vector<24x24xf32>
    %cst_43 = arith.constant 0.353553385 : f32
    %109 = vector.broadcast %cst_43 : f32 to vector<24x24xf32>
    %110 = arith.mulf %108, %109 : vector<24x24xf32>
    %cst_44 = arith.constant dense<0xFF800000> : vector<24xf32>
    %111 = vector.multi_reduction <maximumf>, %110, %cst_44 [1] : vector<24x24xf32> to vector<24xf32>
    %112 = vector.shape_cast %111 : vector<24xf32> to vector<24x1xf32>
    %113 = vector.broadcast %112 : vector<24x1xf32> to vector<24x24xf32>
    %114 = arith.subf %110, %113 : vector<24x24xf32>
    %115 = math.exp %114 : vector<24x24xf32>
    %cst_45 = arith.constant dense<0.000000e+00> : vector<24xf32>
    %116 = vector.multi_reduction <add>, %115, %cst_45 [1] : vector<24x24xf32> to vector<24xf32>
    %117 = vector.shape_cast %116 : vector<24xf32> to vector<24x1xf32>
    %118 = tpu.reciprocal %117 {approx = true} : vector<24x1xf32> -> vector<24x1xf32>
    %119 = vector.broadcast %118 : vector<24x1xf32> to vector<24x24xf32>
    %120 = arith.mulf %115, %119 : vector<24x24xf32>
    %cst_46 = arith.constant dense<0.000000e+00> : vector<24x8xf32>
    %121 = tpu.matmul %120, %107, %cst_46 {dimension_numbers = #tpu.dot_dimension_numbers<[1], [0], [0], [1], [0, 0, 1, 1], [], []>} : vector<24x24xf32>, vector<24x8xf32>, vector<24x8xf32> -> vector<24x8xf32>
    %122 = vector.extract_strided_slice %102 {offsets = [0, 8], sizes = [24, 8], strides = [1, 1]} : vector<48x32xf32> to vector<24x8xf32>
    %123 = vector.extract_strided_slice %103 {offsets = [0, 8], sizes = [24, 8], strides = [1, 1]} : vector<48x32xf32> to vector<24x8xf32>
    %124 = vector.extract_strided_slice %104 {offsets = [0, 8], sizes = [24, 8], strides = [1, 1]} : vector<48x32xf32> to vector<24x8xf32>
    %cst_47 = arith.constant dense<0.000000e+00> : vector<24x24xf32>
    %125 = tpu.matmul %122, %123, %cst_47 {dimension_numbers = #tpu.dot_dimension_numbers<[1], [1], [0], [0], [0, 0, 1, 0], [], []>} : vector<24x8xf32>, vector<24x8xf32>, vector<24x24xf32> -> vector<24x24xf32>
    %cst_48 = arith.constant 0.353553385 : f32
    %126 = vector.broadcast %cst_48 : f32 to vector<24x24xf32>
    %127 = arith.mulf %125, %126 : vector<24x24xf32>
    %cst_49 = arith.constant dense<0xFF800000> : vector<24xf32>
    %128 = vector.multi_reduction <maximumf>, %127, %cst_49 [1] : vector<24x24xf32> to vector<24xf32>
    %129 = vector.shape_cast %128 : vector<24xf32> to vector<24x1xf32>
    %130 = vector.broadcast %129 : vector<24x1xf32> to vector<24x24xf32>
    %131 = arith.subf %127, %130 : vector<24x24xf32>
    %132 = math.exp %131 : vector<24x24xf32>
    %cst_50 = arith.constant dense<0.000000e+00> : vector<24xf32>
    %133 = vector.multi_reduction <add>, %132, %cst_50 [1] : vector<24x24xf32> to vector<24xf32>
    %134 = vector.shape_cast %133 : vector<24xf32> to vector<24x1xf32>
    %135 = tpu.reciprocal %134 {approx = true} : vector<24x1xf32> -> vector<24x1xf32>
    %136 = vector.broadcast %135 : vector<24x1xf32> to vector<24x24xf32>
    %137 = arith.mulf %132, %136 : vector<24x24xf32>
    %cst_51 = arith.constant dense<0.000000e+00> : vector<24x8xf32>
    %138 = tpu.matmul %137, %124, %cst_51 {dimension_numbers = #tpu.dot_dimension_numbers<[1], [0], [0], [1], [0, 0, 1, 1], [], []>} : vector<24x24xf32>, vector<24x8xf32>, vector<24x8xf32> -> vector<24x8xf32>
    %139 = vector.extract_strided_slice %102 {offsets = [0, 16], sizes = [24, 8], strides = [1, 1]} : vector<48x32xf32> to vector<24x8xf32>
    %140 = vector.extract_strided_slice %103 {offsets = [0, 16], sizes = [24, 8], strides = [1, 1]} : vector<48x32xf32> to vector<24x8xf32>
    %141 = vector.extract_strided_slice %104 {offsets = [0, 16], sizes = [24, 8], strides = [1, 1]} : vector<48x32xf32> to vector<24x8xf32>
    %cst_52 = arith.constant dense<0.000000e+00> : vector<24x24xf32>
    %142 = tpu.matmul %139, %140, %cst_52 {dimension_numbers = #tpu.dot_dimension_numbers<[1], [1], [0], [0], [0, 0, 1, 0], [], []>} : vector<24x8xf32>, vector<24x8xf32>, vector<24x24xf32> -> vector<24x24xf32>
    %cst_53 = arith.constant 0.353553385 : f32
    %143 = vector.broadcast %cst_53 : f32 to vector<24x24xf32>
    %144 = arith.mulf %142, %143 : vector<24x24xf32>
    %cst_54 = arith.constant dense<0xFF800000> : vector<24xf32>
    %145 = vector.multi_reduction <maximumf>, %144, %cst_54 [1] : vector<24x24xf32> to vector<24xf32>
    %146 = vector.shape_cast %145 : vector<24xf32> to vector<24x1xf32>
    %147 = vector.broadcast %146 : vector<24x1xf32> to vector<24x24xf32>
    %148 = arith.subf %144, %147 : vector<24x24xf32>
    %149 = math.exp %148 : vector<24x24xf32>
    %cst_55 = arith.constant dense<0.000000e+00> : vector<24xf32>
    %150 = vector.multi_reduction <add>, %149, %cst_55 [1] : vector<24x24xf32> to vector<24xf32>
    %151 = vector.shape_cast %150 : vector<24xf32> to vector<24x1xf32>
    %152 = tpu.reciprocal %151 {approx = true} : vector<24x1xf32> -> vector<24x1xf32>
    %153 = vector.broadcast %152 : vector<24x1xf32> to vector<24x24xf32>
    %154 = arith.mulf %149, %153 : vector<24x24xf32>
    %cst_56 = arith.constant dense<0.000000e+00> : vector<24x8xf32>
    %155 = tpu.matmul %154, %141, %cst_56 {dimension_numbers = #tpu.dot_dimension_numbers<[1], [0], [0], [1], [0, 0, 1, 1], [], []>} : vector<24x24xf32>, vector<24x8xf32>, vector<24x8xf32> -> vector<24x8xf32>
    %156 = vector.extract_strided_slice %102 {offsets = [0, 24], sizes = [24, 8], strides = [1, 1]} : vector<48x32xf32> to vector<24x8xf32>
    %157 = vector.extract_strided_slice %103 {offsets = [0, 24], sizes = [24, 8], strides = [1, 1]} : vector<48x32xf32> to vector<24x8xf32>
    %158 = vector.extract_strided_slice %104 {offsets = [0, 24], sizes = [24, 8], strides = [1, 1]} : vector<48x32xf32> to vector<24x8xf32>
    %cst_57 = arith.constant dense<0.000000e+00> : vector<24x24xf32>
    %159 = tpu.matmul %156, %157, %cst_57 {dimension_numbers = #tpu.dot_dimension_numbers<[1], [1], [0], [0], [0, 0, 1, 0], [], []>} : vector<24x8xf32>, vector<24x8xf32>, vector<24x24xf32> -> vector<24x24xf32>
    %cst_58 = arith.constant 0.353553385 : f32
    %160 = vector.broadcast %cst_58 : f32 to vector<24x24xf32>
    %161 = arith.mulf %159, %160 : vector<24x24xf32>
    %cst_59 = arith.constant dense<0xFF800000> : vector<24xf32>
    %162 = vector.multi_reduction <maximumf>, %161, %cst_59 [1] : vector<24x24xf32> to vector<24xf32>
    %163 = vector.shape_cast %162 : vector<24xf32> to vector<24x1xf32>
    %164 = vector.broadcast %163 : vector<24x1xf32> to vector<24x24xf32>
    %165 = arith.subf %161, %164 : vector<24x24xf32>
    %166 = math.exp %165 : vector<24x24xf32>
    %cst_60 = arith.constant dense<0.000000e+00> : vector<24xf32>
    %167 = vector.multi_reduction <add>, %166, %cst_60 [1] : vector<24x24xf32> to vector<24xf32>
    %168 = vector.shape_cast %167 : vector<24xf32> to vector<24x1xf32>
    %169 = tpu.reciprocal %168 {approx = true} : vector<24x1xf32> -> vector<24x1xf32>
    %170 = vector.broadcast %169 : vector<24x1xf32> to vector<24x24xf32>
    %171 = arith.mulf %166, %170 : vector<24x24xf32>
    %cst_61 = arith.constant dense<0.000000e+00> : vector<24x8xf32>
    %172 = tpu.matmul %171, %158, %cst_61 {dimension_numbers = #tpu.dot_dimension_numbers<[1], [0], [0], [1], [0, 0, 1, 1], [], []>} : vector<24x24xf32>, vector<24x8xf32>, vector<24x8xf32> -> vector<24x8xf32>
    %173 = tpu.concatenate %121, %138, %155, %172 in 1 : vector<24x8xf32>, vector<24x8xf32>, vector<24x8xf32>, vector<24x8xf32> -> vector<24x32xf32>
    %174 = vector.extract_strided_slice %102 {offsets = [24, 0], sizes = [24, 8], strides = [1, 1]} : vector<48x32xf32> to vector<24x8xf32>
    %175 = vector.extract_strided_slice %103 {offsets = [24, 0], sizes = [24, 8], strides = [1, 1]} : vector<48x32xf32> to vector<24x8xf32>
    %176 = vector.extract_strided_slice %104 {offsets = [24, 0], sizes = [24, 8], strides = [1, 1]} : vector<48x32xf32> to vector<24x8xf32>
    %cst_62 = arith.constant dense<0.000000e+00> : vector<24x24xf32>
    %177 = tpu.matmul %174, %175, %cst_62 {dimension_numbers = #tpu.dot_dimension_numbers<[1], [1], [0], [0], [0, 0, 1, 0], [], []>} : vector<24x8xf32>, vector<24x8xf32>, vector<24x24xf32> -> vector<24x24xf32>
    %cst_63 = arith.constant 0.353553385 : f32
    %178 = vector.broadcast %cst_63 : f32 to vector<24x24xf32>
    %179 = arith.mulf %177, %178 : vector<24x24xf32>
    %cst_64 = arith.constant dense<0xFF800000> : vector<24xf32>
    %180 = vector.multi_reduction <maximumf>, %179, %cst_64 [1] : vector<24x24xf32> to vector<24xf32>
    %181 = vector.shape_cast %180 : vector<24xf32> to vector<24x1xf32>
    %182 = vector.broadcast %181 : vector<24x1xf32> to vector<24x24xf32>
    %183 = arith.subf %179, %182 : vector<24x24xf32>
    %184 = math.exp %183 : vector<24x24xf32>
    %cst_65 = arith.constant dense<0.000000e+00> : vector<24xf32>
    %185 = vector.multi_reduction <add>, %184, %cst_65 [1] : vector<24x24xf32> to vector<24xf32>
    %186 = vector.shape_cast %185 : vector<24xf32> to vector<24x1xf32>
    %187 = tpu.reciprocal %186 {approx = true} : vector<24x1xf32> -> vector<24x1xf32>
    %188 = vector.broadcast %187 : vector<24x1xf32> to vector<24x24xf32>
    %189 = arith.mulf %184, %188 : vector<24x24xf32>
    %cst_66 = arith.constant dense<0.000000e+00> : vector<24x8xf32>
    %190 = tpu.matmul %189, %176, %cst_66 {dimension_numbers = #tpu.dot_dimension_numbers<[1], [0], [0], [1], [0, 0, 1, 1], [], []>} : vector<24x24xf32>, vector<24x8xf32>, vector<24x8xf32> -> vector<24x8xf32>
    %191 = vector.extract_strided_slice %102 {offsets = [24, 8], sizes = [24, 8], strides = [1, 1]} : vector<48x32xf32> to vector<24x8xf32>
    %192 = vector.extract_strided_slice %103 {offsets = [24, 8], sizes = [24, 8], strides = [1, 1]} : vector<48x32xf32> to vector<24x8xf32>
    %193 = vector.extract_strided_slice %104 {offsets = [24, 8], sizes = [24, 8], strides = [1, 1]} : vector<48x32xf32> to vector<24x8xf32>
    %cst_67 = arith.constant dense<0.000000e+00> : vector<24x24xf32>
    %194 = tpu.matmul %191, %192, %cst_67 {dimension_numbers = #tpu.dot_dimension_numbers<[1], [1], [0], [0], [0, 0, 1, 0], [], []>} : vector<24x8xf32>, vector<24x8xf32>, vector<24x24xf32> -> vector<24x24xf32>
    %cst_68 = arith.constant 0.353553385 : f32
    %195 = vector.broadcast %cst_68 : f32 to vector<24x24xf32>
    %196 = arith.mulf %194, %195 : vector<24x24xf32>
    %cst_69 = arith.constant dense<0xFF800000> : vector<24xf32>
    %197 = vector.multi_reduction <maximumf>, %196, %cst_69 [1] : vector<24x24xf32> to vector<24xf32>
    %198 = vector.shape_cast %197 : vector<24xf32> to vector<24x1xf32>
    %199 = vector.broadcast %198 : vector<24x1xf32> to vector<24x24xf32>
    %200 = arith.subf %196, %199 : vector<24x24xf32>
    %201 = math.exp %200 : vector<24x24xf32>
    %cst_70 = arith.constant dense<0.000000e+00> : vector<24xf32>
    %202 = vector.multi_reduction <add>, %201, %cst_70 [1] : vector<24x24xf32> to vector<24xf32>
    %203 = vector.shape_cast %202 : vector<24xf32> to vector<24x1xf32>
    %204 = tpu.reciprocal %203 {approx = true} : vector<24x1xf32> -> vector<24x1xf32>
    %205 = vector.broadcast %204 : vector<24x1xf32> to vector<24x24xf32>
    %206 = arith.mulf %201, %205 : vector<24x24xf32>
    %cst_71 = arith.constant dense<0.000000e+00> : vector<24x8xf32>
    %207 = tpu.matmul %206, %193, %cst_71 {dimension_numbers = #tpu.dot_dimension_numbers<[1], [0], [0], [1], [0, 0, 1, 1], [], []>} : vector<24x24xf32>, vector<24x8xf32>, vector<24x8xf32> -> vector<24x8xf32>
    %208 = vector.extract_strided_slice %102 {offsets = [24, 16], sizes = [24, 8], strides = [1, 1]} : vector<48x32xf32> to vector<24x8xf32>
    %209 = vector.extract_strided_slice %103 {offsets = [24, 16], sizes = [24, 8], strides = [1, 1]} : vector<48x32xf32> to vector<24x8xf32>
    %210 = vector.extract_strided_slice %104 {offsets = [24, 16], sizes = [24, 8], strides = [1, 1]} : vector<48x32xf32> to vector<24x8xf32>
    %cst_72 = arith.constant dense<0.000000e+00> : vector<24x24xf32>
    %211 = tpu.matmul %208, %209, %cst_72 {dimension_numbers = #tpu.dot_dimension_numbers<[1], [1], [0], [0], [0, 0, 1, 0], [], []>} : vector<24x8xf32>, vector<24x8xf32>, vector<24x24xf32> -> vector<24x24xf32>
    %cst_73 = arith.constant 0.353553385 : f32
    %212 = vector.broadcast %cst_73 : f32 to vector<24x24xf32>
    %213 = arith.mulf %211, %212 : vector<24x24xf32>
    %cst_74 = arith.constant dense<0xFF800000> : vector<24xf32>
    %214 = vector.multi_reduction <maximumf>, %213, %cst_74 [1] : vector<24x24xf32> to vector<24xf32>
    %215 = vector.shape_cast %214 : vector<24xf32> to vector<24x1xf32>
    %216 = vector.broadcast %215 : vector<24x1xf32> to vector<24x24xf32>
    %217 = arith.subf %213, %216 : vector<24x24xf32>
    %218 = math.exp %217 : vector<24x24xf32>
    %cst_75 = arith.constant dense<0.000000e+00> : vector<24xf32>
    %219 = vector.multi_reduction <add>, %218, %cst_75 [1] : vector<24x24xf32> to vector<24xf32>
    %220 = vector.shape_cast %219 : vector<24xf32> to vector<24x1xf32>
    %221 = tpu.reciprocal %220 {approx = true} : vector<24x1xf32> -> vector<24x1xf32>
    %222 = vector.broadcast %221 : vector<24x1xf32> to vector<24x24xf32>
    %223 = arith.mulf %218, %222 : vector<24x24xf32>
    %cst_76 = arith.constant dense<0.000000e+00> : vector<24x8xf32>
    %224 = tpu.matmul %223, %210, %cst_76 {dimension_numbers = #tpu.dot_dimension_numbers<[1], [0], [0], [1], [0, 0, 1, 1], [], []>} : vector<24x24xf32>, vector<24x8xf32>, vector<24x8xf32> -> vector<24x8xf32>
    %225 = vector.extract_strided_slice %102 {offsets = [24, 24], sizes = [24, 8], strides = [1, 1]} : vector<48x32xf32> to vector<24x8xf32>
    %226 = vector.extract_strided_slice %103 {offsets = [24, 24], sizes = [24, 8], strides = [1, 1]} : vector<48x32xf32> to vector<24x8xf32>
    %227 = vector.extract_strided_slice %104 {offsets = [24, 24], sizes = [24, 8], strides = [1, 1]} : vector<48x32xf32> to vector<24x8xf32>
    %cst_77 = arith.constant dense<0.000000e+00> : vector<24x24xf32>
    %228 = tpu.matmul %225, %226, %cst_77 {dimension_numbers = #tpu.dot_dimension_numbers<[1], [1], [0], [0], [0, 0, 1, 0], [], []>} : vector<24x8xf32>, vector<24x8xf32>, vector<24x24xf32> -> vector<24x24xf32>
    %cst_78 = arith.constant 0.353553385 : f32
    %229 = vector.broadcast %cst_78 : f32 to vector<24x24xf32>
    %230 = arith.mulf %228, %229 : vector<24x24xf32>
    %cst_79 = arith.constant dense<0xFF800000> : vector<24xf32>
    %231 = vector.multi_reduction <maximumf>, %230, %cst_79 [1] : vector<24x24xf32> to vector<24xf32>
    %232 = vector.shape_cast %231 : vector<24xf32> to vector<24x1xf32>
    %233 = vector.broadcast %232 : vector<24x1xf32> to vector<24x24xf32>
    %234 = arith.subf %230, %233 : vector<24x24xf32>
    %235 = math.exp %234 : vector<24x24xf32>
    %cst_80 = arith.constant dense<0.000000e+00> : vector<24xf32>
    %236 = vector.multi_reduction <add>, %235, %cst_80 [1] : vector<24x24xf32> to vector<24xf32>
    %237 = vector.shape_cast %236 : vector<24xf32> to vector<24x1xf32>
    %238 = tpu.reciprocal %237 {approx = true} : vector<24x1xf32> -> vector<24x1xf32>
    %239 = vector.broadcast %238 : vector<24x1xf32> to vector<24x24xf32>
    %240 = arith.mulf %235, %239 : vector<24x24xf32>
    %cst_81 = arith.constant dense<0.000000e+00> : vector<24x8xf32>
    %241 = tpu.matmul %240, %227, %cst_81 {dimension_numbers = #tpu.dot_dimension_numbers<[1], [0], [0], [1], [0, 0, 1, 1], [], []>} : vector<24x24xf32>, vector<24x8xf32>, vector<24x8xf32> -> vector<24x8xf32>
    %242 = tpu.concatenate %190, %207, %224, %241 in 1 : vector<24x8xf32>, vector<24x8xf32>, vector<24x8xf32>, vector<24x8xf32> -> vector<24x32xf32>
    %243 = tpu.concatenate %173, %242 in 0 : vector<24x32xf32>, vector<24x32xf32> -> vector<48x32xf32>
    %c0_82 = arith.constant 0 : index
    %c0_83 = arith.constant 0 : index
    %244 = vector.load %arg11[%c0_82, %c0_83] : memref<32x8xf32, #tpu.memory_space<vmem>>, vector<32x8xf32>
    %cst_84 = arith.constant dense<0.000000e+00> : vector<48x8xf32>
    %245 = tpu.matmul %243, %244, %cst_84 {dimension_numbers = #tpu.dot_dimension_numbers<[1], [0], [0], [1], [0, 0, 1, 1], [], []>} : vector<48x32xf32>, vector<32x8xf32>, vector<48x8xf32> -> vector<48x8xf32>
    %c0_85 = arith.constant 0 : index
    %c0_86 = arith.constant 0 : index
    %246 = vector.load %arg12[%c0_85, %c0_86] : memref<1x8xf32, #tpu.memory_space<vmem>>, vector<1x8xf32>
    %247 = vector.broadcast %246 : vector<1x8xf32> to vector<48x8xf32>
    %248 = arith.addf %245, %247 : vector<48x8xf32>
    %c0_87 = arith.constant 0 : index
    %c0_88 = arith.constant 0 : index
    %249 = vector.load %arg13[%c0_87, %c0_88] : memref<48x8xf32, #tpu.memory_space<vmem>>, vector<48x8xf32>
    tpu.vector_store %arg13[%c0_87, %c0_88], %248 {strides = array<i32>} : memref<48x8xf32, #tpu.memory_space<vmem>>, vector<48x8xf32>,
    return
  }
}

</mosaic_0001>

<bundles_post_ra>
// kernel: _lambda_.4
= control target key start
LH: loop header
LB: loop body
LE: loop exit
PB: predicated region body
PF: predicated region fallthrough
CT: control target
= control target key end

     0   :  { %vm28_vm0 = vcmask 130048   ;;  %vm142_vm1 = vcmask 261120   ;;  %s278_s1 = inlined_call_operand.vmem [shape: f32[16,32], index: 1, kind: input, shape index: {}]   ;;  %s279_s0 = inlined_call_operand.vmem [shape: f32[48,16], index: 0, kind: input, shape index: {}]   ;;  %s280_s2 = inlined_call_operand.vmem [shape: f32[48,32], index: 2, kind: input, shape index: {}]   ;;  %s281_s3 = inlined_call_operand.vmem [shape: f32[48,32], index: 3, kind: output, shape index: {}]  }
   0x1   :  { %v20_v0 = vld [vmem:[%s278_s1] sm:$0xff]  ;;  %v21_v1 = vld [vmem:[%s278_s1 + $0x8] sm:$0xff]  ;;  %v16_v2 = vld [vmem:[%s279_s0 + $0x10] sm:$0xff] }
   0x2   :  { %v180_v3 = vpack.c.bf16 %v21_v1, %v20_v0  ;;  %174 = vmatprep.mubr.msk.f32.mxu1 %vm28_vm0, %v16_v2  ;;  %v14_v4 = vld [vmem:[%s279_s0] sm:$0xff]  ;;  %v17_v5 = vld [vmem:[%s279_s0 + $0x18] sm:$0xff]  ;;  %v15_v6 = vld [vmem:[%s279_s0 + $0x8] sm:$0xff] }
   0x3   :  { %171 = vmatprep.mubr.msk.f32.mxu0 %vm28_vm0, %v14_v4  ;;  %v18_v7 = vld [vmem:[%s279_s0 + $0x20] sm:$0xff]  ;;  %v19_v8 = vld [vmem:[%s279_s0 + $0x28] sm:$0xff]  ;;  %v25_v9 = vld [vmem:[%s280_s2 + $0x18] sm:$0xff] }
   0x4   :  { %184 = vmatprep.subr.bf16.mxu1 %v180_v3  ;;  %181 = vmatprep.subr.bf16.mxu0 %v180_v3  ;;  %v23_v10 = vld [vmem:[%s280_s2 + $0x8] sm:$0xff]  ;;  %v24_v11 = vld [vmem:[%s280_s2 + $0x10] sm:$0xff]  ;;  %v22_v12 = vld [vmem:[%s280_s2] sm:$0xff] }
   0x5   :  { %185 = vmatpush3.bf16.msra.mxu1 %v180_v3  ;;  %183 = vmatpush3.bf16.msra.mxu0 %v180_v3  ;;  %v27_v21 = vld [vmem:[%s280_s2 + $0x28] sm:$0xff]  ;;  %v26_v22 = vld [vmem:[%s280_s2 + $0x20] sm:$0xff] }
   0x8   :  { %175 = vmatmul.mubr.msk.f32.vlgmr.msra.gmra.mrb[0].mxu1 %vm28_vm0, %v17_v5  ;;  %172 = vmatmul.mubr.msk.f32.vlgmr.msra.gmra.mrb[0].mxu0 %vm28_vm0, %v15_v6 }
   0x9   :  { %177 = vmatprep.mubr.msk.f32.mxu1 %vm28_vm0, %v18_v7 }
   0xc   :  { %178 = vmatmul.mubr.msk.f32.gmra.mrb[2].mxu1 %vm28_vm0, %v19_v8 }
  0xdb   :  { %v176_v13 = vpop.f32.mrb[0].mxu1  ;;  %v173_v14 = vpop.f32.mrb[0].mxu0 }
  0xdc   :  { %v129_v15 = vadd.f32 %v176_v13, %v25_v9  ;;  %v123_v16 = vpop.f32.mrb[1].mxu1  ;;  %v119_v17 = vadd.f32 %v173_v14, %v23_v10  ;;  %v113_v18 = vpop.f32.mrb[1].mxu0 }
  0xdd   :  { %v124_v19 = vadd.f32 %v123_v16, %v24_v11  ;;  %v114_v20 = vadd.f32 %v113_v18, %v22_v12 }
  0xde   :  { %146 = vst.msk [vmem:[%s281_s3 + $0x18] sm:$0xff] %vm142_vm1, %v129_v15  ;;  %144 = vst.msk [vmem:[%s281_s3 + $0x8] sm:$0xff] %vm142_vm1, %v119_v17 }
  0xdf   :  { %145 = vst.msk [vmem:[%s281_s3 + $0x10] sm:$0xff] %vm142_vm1, %v124_v19  ;;  %143 = vst.msk [vmem:[%s281_s3] sm:$0xff] %vm142_vm1, %v114_v20  ;;  %v179_v23 = vpop.f32.mrb[2].mxu1 }
  0xe0   :  { %v139_v24 = vadd.f32 %v179_v23, %v27_v21  ;;  %v133_v25 = vpop.f32.mrb[3].mxu1 }
  0xe1   :  { %v134_v26 = vadd.f32 %v133_v25, %v26_v22 }
  0xe2   :  { %148 = vst.msk [vmem:[%s281_s3 + $0x28] sm:$0xff] %vm142_vm1, %v139_v24 }
  0xe3   :  { %147 = vst.msk [vmem:[%s281_s3 + $0x20] sm:$0xff] %vm142_vm1, %v134_v26 }

// kernel: _lambda_.5
= control target key start
LH: loop header
LB: loop body
LE: loop exit
PB: predicated region body
PF: predicated region fallthrough
CT: control target
= control target key end

     0   :  { %vm45_vm0 = vcmask 523264   ;;  %vm149_vm1 = vcmask 130048   ;;  %vm159_vm2 = vcmask 123904   ;;  %vm331_vm3 = vcmask 261120   ;;  %s755_s1 = inlined_call_operand.vmem [shape: f32[64,32], index: 1, kind: input, shape index: {}]   ;;  %s756_s0 = inlined_call_operand.vmem [shape: f32[26,64], index: 0, kind: input, shape index: {}]   ;;  %s757_s2 = inlined_call_operand.vmem [shape: f32[1,32], index: 2, kind: input, shape index: {}]   ;;  %s758_s5 = inlined_call_operand.vmem [shape: f32[32,128], index: 5, kind: input, shape index: {}]   ;;  %s759_s3 = inlined_call_operand.vmem [shape: f32[1,32], index: 3, kind: input, shape index: {}]   ;;  %s760_s4 = inlined_call_operand.vmem [shape: f32[1,32], index: 4, kind: input, shape index: {}]   ;;  %s761_s6 = inlined_call_operand.vmem [shape: f32[1,128], index: 6, kind: input, shape index: {}]   ;;  %s762_s7 = inlined_call_operand.vmem [shape: f32[26,128], index: 7, kind: output, shape index: {}]  }
   0x1   :  { %v30_v0 = vld [vmem:[%s755_s1] sm:$0xff]  ;;  %v31_v1 = vld [vmem:[%s755_s1 + $0x8] sm:$0xff]  ;;  %v32_v2 = vld [vmem:[%s755_s1 + $0x10] sm:$0xff] }
   0x2   :  { %v509_v3 = vpack.c.bf16 %v31_v1, %v30_v0  ;;  %v33_v4 = vld [vmem:[%s755_s1 + $0x18] sm:$0xff]  ;;  %v34_v6 = vld [vmem:[%s755_s1 + $0x20] sm:$0xff]  ;;  %v35_v7 = vld [vmem:[%s755_s1 + $0x28] sm:$0xff] }
   0x3   :  { %v513_v5 = vpack.c.bf16 %v33_v4, %v32_v2  ;;  %v26_v8 = vld [vmem:[%s756_s0] sm:$0xff]  ;;  %v517_v9 = vpack.c.bf16 %v35_v7, %v34_v6  ;;  %v36_v10 = vld [vmem:[%s755_s1 + $0x30] sm:$0xff]  ;;  %v37_v11 = vld [vmem:[%s755_s1 + $0x38] sm:$0xff] }
   0x4   :  { %510 = vmatprep.subr.bf16.mxu0 %v509_v3  ;;  %489 = vmatprep.mubr.msk.f32.mxu0 %vm45_vm0, %v26_v8  ;;  %v521_v12 = vpack.c.bf16 %v37_v11, %v36_v10  ;;  %v27_v13 = vld [vmem:[%s756_s0 + $0x8] sm:$0xff]  ;;  %v28_v14 = vld [vmem:[%s756_s0 + $0x10] sm:$0xff]  ;;  %v29_v15 = vld [vmem:[%s756_s0 + $0x18] sm:$0x3]  ;;  %s566_s0 = smov 112  }
   0x5   :  { %512 = vmatpush3.bf16.msra.mxu0 %v509_v3  ;;  %v441_v16 = vld [vmem:[%s757_s2] ss:$0 sm:$0xff] }
   0x6   :  { %514 = vmatprep.subr.bf16.mxu0 %v513_v5 }
   0x9   :  { %516 = vmatpush3.bf16.msra.mxu0 %v513_v5 }
   0xa   :  { %518 = vmatprep.subr.bf16.mxu0 %v517_v9 }
   0xd   :  { %520 = vmatpush3.bf16.msra.mxu0 %v517_v9 }
   0xe   :  { %522 = vmatprep.subr.bf16.mxu0 %v521_v12 }
  0x11   :  { %524 = vmatpush3.bf16.msra.mxu0 %v521_v12 }
  0x14   :  { %490 = vmatmul.mubr.msk.f32.vlgmr.msra.gmra.mrb[0].mxu0 %vm45_vm0, %v27_v13 }
  0x15   :  { %492 = vmatprep.mubr.msk.f32.mxu0 %vm45_vm0, %v28_v14 }
  0x18   :  { %493 = vmatmul.mubr.msk.f32.gmra.mrb[2].mxu0 %vm45_vm0, %v29_v15 }
  0xe7   :  { %v491_v17 = vpop.f32.mrb[0].mxu0 }
  0xe8   :  { %v124_v18 = vpop.f32.mrb[1].mxu0  ;;  %v130_v20 = vadd.f32 %v491_v17, %v441_v16 }
  0xe9   :  { %v125_v19 = vadd.f32 %v441_v16, %v124_v18 }
  0xeb   :  { %534 = vtanh.f32 %v125_v19  ;;  %v494_v21 = vpop.f32.mrb[2].mxu0 }
  0xec   :  { %v134_v22 = vpop.f32.mrb[3].mxu0  ;;  %v140_v23 = vadd.f32 %v494_v21, %v441_v16  ;;  %536 = vtanh.f32 %v130_v20  ;;  %v320_v21 = vld [vmem:[%s758_s5] sm:$0xff] }
  0xed   :  { %v135_v24 = vadd.f32 %v441_v16, %v134_v22  ;;  %v321_v22 = vld [vmem:[%s758_s5 + $0x8] sm:$0xff] }
  0xef   :  { %538 = vtanh.f32 %v135_v24  ;;  %v322_v24 = vld [vmem:[%s758_s5 + $0x10] sm:$0xff] }
  0xf0   :  { %540 = vtanh.f32 %v140_v23  ;;  %v525_v23 = vpack.c.bf16 %v321_v22, %v320_v21 }
  0xf2   :  { %526 = vmatprep.subr.bf16.mxu1 %v525_v23 }
  0xf3   :  { %528 = vmatpush3.bf16.msra.mxu1 %v525_v23 }
  0xf5   :  { %v535_v25 = vpop.eup %534 }
  0xf6   :  { %228 = vrot.lane.b32.xlu0 %v535_v25, %s566_s0  ;;  %v537_v26 = vpop.eup %536  ;;  %v150_v37 = vsel %vm149_vm1, %v535_v25, 0.0 }
  0xf7   :  { %v153_v38 = vsel %vm149_vm1, %v537_v26, 0.0 }
  0xf9   :  { %v539_v27 = vpop.eup %538 }
  0xfa   :  { %232 = vrot.lane.b32.xlu1 %v539_v27, %s566_s0  ;;  %230 = vrot.lane.b32.xlu0 %v537_v26, %s566_s0  ;;  %v541_v28 = vpop.eup %540  ;;  %v156_v39 = vsel %vm149_vm1, %v539_v27, 0.0 }
  0xfb   :  { %v160_v40 = vsel %vm159_vm2, %v541_v28, 0.0 }
  0xfe   :  { %234 = vrot.lane.b32.xlu1 %v541_v28, %s566_s0 }
 0x168   :  { %v229_v29 = vpop.permute.xlu0 %228 }
 0x169   :  { %v240_v30 = vsel %vm149_vm1, %v229_v29, 0.0 }
 0x16a   :  { %241 = vadd.xlane.f32.xlu0 %v240_v30 }
 0x16c   :  { %v233_v31 = vpop.permute.xlu1 %232  ;;  %v231_v32 = vpop.permute.xlu0 %230 }
 0x16d   :  { %v246_v33 = vsel %vm149_vm1, %v233_v31, 0.0  ;;  %v243_v34 = vsel %vm149_vm1, %v231_v32, 0.0 }
 0x16e   :  { %247 = vadd.xlane.f32.xlu0 %v246_v33  ;;  %244 = vadd.xlane.f32.xlu1 %v243_v34 }
 0x170   :  { %v235_v35 = vpop.permute.xlu1 %234 }
 0x171   :  { %v249_v36 = vsel %vm159_vm2, %v235_v35, 0.0 }
 0x172   :  { %250 = vadd.xlane.f32.xlu0 %v249_v36  ;;  %151 = vadd.xlane.f32.xlu1 %v150_v37 }
 0x176   :  { %154 = vadd.xlane.f32.xlu0 %v153_v38  ;;  %157 = vadd.xlane.f32.xlu1 %v156_v39 }
 0x17a   :  { %161 = vadd.xlane.f32.xlu0 %v160_v40 }
 0x1f7   :  { %v242_v41 = vpop.xlane.xlu0 %241 }
 0x1f8   :  { %v252_v42 = vmul.f32 0.0625, %v242_v41 }
 0x1fa   :  { %v662_v43 = vsub.f32 %v535_v25, %v252_v42 }
 0x1fb   :  { %v245_v44 = vpop.xlane.xlu1 %244  ;;  %v248_v45 = vpop.xlane.xlu0 %247 }
 0x1fc   :  { %v253_v46 = vmul.f32 0.0625, %v245_v44  ;;  %v254_v47 = vmul.f32 0.0625, %v248_v45  ;;  %v260_v48 = vmul.f32 %v662_v43, %v662_v43 }
 0x1fe   :  { %v666_v49 = vsub.f32 %v537_v26, %v253_v46  ;;  %v668_v50 = vsub.f32 %v539_v27, %v254_v47  ;;  %268 = vrot.lane.b32.xlu1 %v260_v48, %s566_s0 }
 0x1ff   :  { %v251_v51 = vpop.xlane.xlu0 %250  ;;  %v152_v57 = vpop.xlane.xlu1 %151 }
 0x200   :  { %v255_v52 = vmul.f32 0.0625, %v251_v51  ;;  %v261_v53 = vmul.f32 %v666_v49, %v666_v49  ;;  %v262_v54 = vmul.f32 %v668_v50, %v668_v50  ;;  %v164_v58 = vmul.f32 0.0625, %v152_v57  ;;  %v446_v57 = vld [vmem:[%s759_s3] ss:$0 sm:$0xff] }
 0x202   :  { %v675_v55 = vsub.f32 %v541_v28, %v255_v52  ;;  %270 = vrot.lane.b32.xlu0 %v261_v53, %s566_s0  ;;  %272 = vrot.lane.b32.xlu1 %v262_v54, %s566_s0  ;;  %v682_v60 = vsub.f32 %v535_v25, %v164_v58  ;;  %v323_v25 = vld [vmem:[%s758_s5 + $0x18] sm:$0xff] }
 0x203   :  { %v155_v59 = vpop.xlane.xlu0 %154  ;;  %v158_v3 = vpop.xlane.xlu1 %157 }
 0x204   :  { %v263_v56 = vmul.f32 %v675_v55, %v675_v55  ;;  %v165_v61 = vmul.f32 0.0625, %v155_v59  ;;  %v172_v63 = vmul.f32 %v682_v60, %v682_v60  ;;  %v166_v4 = vmul.f32 0.0625, %v158_v3 }
 0x206   :  { %274 = vrot.lane.b32.xlu1 %v263_v56, %s566_s0  ;;  %v684_v62 = vsub.f32 %v537_v26, %v165_v61  ;;  %v176_v0 = vsel %vm149_vm1, %v172_v63, 0.0  ;;  %v692_v6 = vsub.f32 %v539_v27, %v166_v4  ;;  %v529_v26 = vpack.c.bf16 %v323_v25, %v322_v24 }
 0x207   :  { %v162_v5 = vpop.xlane.xlu0 %161 }
 0x208   :  { %v173_v1 = vmul.f32 %v684_v62, %v684_v62  ;;  %v167_v7 = vmul.f32 0.0625, %v162_v5  ;;  %v174_v11 = vmul.f32 %v692_v6, %v692_v6  ;;  %530 = vmatprep.subr.bf16.mxu1 %v529_v26 }
 0x209   :  { %532 = vmatpush3.bf16.msra.mxu1 %v529_v26  ;;  %v448_v26 = vld [vmem:[%s761_s6] ss:$0 sm:$0xff] }
 0x20a   :  { %v179_v2 = vsel %vm149_vm1, %v173_v1, 0.0  ;;  %v694_v9 = vsub.f32 %v541_v28, %v167_v7  ;;  %v182_v15 = vsel %vm149_vm1, %v174_v11, 0.0 }
 0x20c   :  { %v175_v16 = vmul.f32 %v694_v9, %v694_v9 }
 0x20e   :  { %v185_v17 = vsel %vm159_vm2, %v175_v16, 0.0 }
 0x221   :  { %177 = vadd.xlane.f32.xlu0 %v176_v0 }
 0x225   :  { %180 = vadd.xlane.f32.xlu0 %v179_v2 }
 0x270   :  { %v269_v8 = vpop.permute.xlu1 %268 }
 0x271   :  { %v280_v10 = vsel %vm149_vm1, %v269_v8, 0.0 }
 0x272   :  { %281 = vadd.xlane.f32.xlu1 %v280_v10 }
 0x274   :  { %v271_v12 = vpop.permute.xlu0 %270  ;;  %v273_v13 = vpop.permute.xlu1 %272 }
 0x275   :  { %v283_v14 = vsel %vm149_vm1, %v271_v12, 0.0  ;;  %v286_v18 = vsel %vm149_vm1, %v273_v13, 0.0 }
 0x276   :  { %284 = vadd.xlane.f32.xlu0 %v283_v14  ;;  %183 = vadd.xlane.f32.xlu1 %v182_v15 }
 0x278   :  { %v275_v19 = vpop.permute.xlu1 %274 }
 0x279   :  { %v289_v20 = vsel %vm159_vm2, %v275_v19, 0.0 }
 0x27a   :  { %186 = vadd.xlane.f32.xlu1 %v185_v17  ;;  %287 = vadd.xlane.f32.xlu0 %v286_v18 }
 0x27e   :  { %290 = vadd.xlane.f32.xlu0 %v289_v20 }
 0x2ae   :  { %v178_v27 = vpop.xlane.xlu0 %177 }
 0x2af   :  { %v188_v28 = vmul.f32 0.0625, %v178_v27 }
 0x2b1   :  { %v192_v30 = vadd.f32 1e-05, %v188_v28 }
 0x2b2   :  { %v181_v29 = vpop.xlane.xlu0 %180 }
 0x2b3   :  { %v189_v31 = vmul.f32 0.0625, %v181_v29  ;;  %542 = vrsqrt.f32 %v192_v30 }
 0x2b5   :  { %v193_v32 = vadd.f32 1e-05, %v189_v31 }
 0x2b7   :  { %544 = vrsqrt.f32 %v193_v32 }
 0x2bd   :  { %v543_v45 = vpop.eup %542 }
 0x2be   :  { %v200_v53 = vmul.f32 %v543_v45, %v682_v60  ;;  %v447_v60 = vld [vmem:[%s760_s4] ss:$0 sm:$0xff] }
 0x2c0   :  { %v210_v61 = vmul.f32 %v446_v57, %v200_v53 }
 0x2c1   :  { %v545_v54 = vpop.eup %544 }
 0x2c2   :  { %v201_v0 = vmul.f32 %v545_v54, %v684_v62  ;;  %v220_v4 = vadd.f32 %v447_v60, %v210_v61 }
 0x2c4   :  { %v211_v7 = vmul.f32 %v446_v57, %v201_v0 }
 0x2c6   :  { %v221_v13 = vadd.f32 %v447_v60, %v211_v7 }
 0x2ff   :  { %v282_v33 = vpop.xlane.xlu1 %281 }
 0x300   :  { %v292_v34 = vmul.f32 0.0625, %v282_v33 }
 0x302   :  { %v296_v35 = vadd.f32 1e-05, %v292_v34 }
 0x303   :  { %v285_v36 = vpop.xlane.xlu0 %284  ;;  %v184_v37 = vpop.xlane.xlu1 %183 }
 0x304   :  { %546 = vrsqrt.f32 %v296_v35  ;;  %v293_v38 = vmul.f32 0.0625, %v285_v36  ;;  %v190_v39 = vmul.f32 0.0625, %v184_v37 }
 0x306   :  { %v297_v40 = vadd.f32 1e-05, %v293_v38  ;;  %v194_v41 = vadd.f32 1e-05, %v190_v39 }
 0x307   :  { %v288_v42 = vpop.xlane.xlu0 %287  ;;  %v187_v44 = vpop.xlane.xlu1 %186 }
 0x308   :  { %548 = vrsqrt.f32 %v297_v40  ;;  %v294_v46 = vmul.f32 0.0625, %v288_v42  ;;  %v191_v47 = vmul.f32 0.0625, %v187_v44 }
 0x309   :  { %550 = vrsqrt.f32 %v194_v41 }
 0x30a   :  { %v298_v48 = vadd.f32 1e-05, %v294_v46  ;;  %v195_v51 = vadd.f32 1e-05, %v191_v47 }
 0x30b   :  { %v291_v52 = vpop.xlane.xlu0 %290 }
 0x30c   :  { %552 = vrsqrt.f32 %v298_v48  ;;  %v295_v56 = vmul.f32 0.0625, %v291_v52 }
 0x30d   :  { %554 = vrsqrt.f32 %v195_v51 }
 0x30e   :  { %v547_v58 = vpop.eup %546  ;;  %v299_v59 = vadd.f32 1e-05, %v295_v56 }
 0x30f   :  { %v304_v63 = vmul.f32 %v547_v58, %v662_v43 }
 0x310   :  { %556 = vrsqrt.f32 %v299_v59 }
 0x311   :  { %v308_v1 = vmul.f32 %v446_v57, %v304_v63 }
 0x312   :  { %v549_v2 = vpop.eup %548 }
 0x313   :  { %v551_v3 = vpop.eup %550  ;;  %v312_v5 = vadd.f32 %v447_v60, %v308_v1  ;;  %v305_v8 = vmul.f32 %v549_v2, %v666_v49 }
 0x314   :  { %v202_v10 = vmul.f32 %v551_v3, %v692_v6 }
 0x315   :  { %v316_v43 = vsel %vm149_vm1, %v220_v4, %v312_v5  ;;  %v309_v11 = vmul.f32 %v446_v57, %v305_v8 }
 0x316   :  { %v553_v62 = vpop.eup %552  ;;  %503 = vmatprep.mubr.msk.f32.mxu1 %vm331_vm3, %v316_v43  ;;  %v212_v15 = vmul.f32 %v446_v57, %v202_v10 }
 0x317   :  { %v555_v12 = vpop.eup %554  ;;  %v313_v14 = vadd.f32 %v447_v60, %v309_v11  ;;  %v306_v16 = vmul.f32 %v553_v62, %v668_v50 }
 0x318   :  { %v203_v17 = vmul.f32 %v555_v12, %v694_v9  ;;  %v222_v20 = vadd.f32 %v447_v60, %v212_v15 }
 0x319   :  { %v317_v18 = vsel %vm149_vm1, %v221_v13, %v313_v14  ;;  %v310_v19 = vmul.f32 %v446_v57, %v306_v16 }
 0x31a   :  { %v557_v49 = vpop.eup %556  ;;  %504 = vmatmul.mubr.msk.f32.vlgmr.msra.gmra.mrb[0].mxu1 %vm331_vm3, %v317_v18  ;;  %v213_v22 = vmul.f32 %v446_v57, %v203_v17 }
 0x31b   :  { %v307_v6 = vmul.f32 %v557_v49, %v675_v55  ;;  %v314_v21 = vadd.f32 %v447_v60, %v310_v19 }
 0x31c   :  { %v223_v25 = vadd.f32 %v447_v60, %v213_v22 }
 0x31d   :  { %v318_v23 = vsel %vm149_vm1, %v222_v20, %v314_v21  ;;  %v311_v24 = vmul.f32 %v446_v57, %v307_v6 }
 0x31e   :  { %506 = vmatprep.mubr.msk.f32.mxu1 %vm331_vm3, %v318_v23 }
 0x31f   :  { %v315_v50 = vadd.f32 %v447_v60, %v311_v24 }
 0x321   :  { %v319_v9 = vsel %vm149_vm1, %v223_v25, %v315_v50 }
 0x322   :  { %507 = vmatmul.mubr.msk.f32.gmra.mrb[2].mxu1 %vm331_vm3, %v319_v9 }
 0x3ed   :  { %v505_v27 = vpop.f32.mrb[0].mxu1 }
 0x3ee   :  { %v416_v55 = vadd.f32 %v505_v27, %v448_v26  ;;  %v410_v28 = vpop.f32.mrb[1].mxu1 }
 0x3ef   :  { %v411_v29 = vadd.f32 %v448_v26, %v410_v28 }
 0x3f0   :  { %558 = vtanh.f32 %v416_v55 }
 0x3f1   :  { %560 = vtanh.f32 %v411_v29 }
 0x3f5   :  { %v508_v30 = vpop.f32.mrb[2].mxu1 }
 0x3f6   :  { %v426_v31 = vadd.f32 %v508_v30, %v448_v26  ;;  %v420_v32 = vpop.f32.mrb[3].mxu1 }
 0x3f7   :  { %v421_v33 = vadd.f32 %v448_v26, %v420_v32 }
 0x3f8   :  { %562 = vtanh.f32 %v426_v31 }
 0x3f9   :  { %564 = vtanh.f32 %v421_v33 }
 0x3fa   :  { %v559_v34 = vpop.eup %558 }
 0x3fb   :  { %v561_v35 = vpop.eup %560  ;;  %434 = vst [vmem:[%s762_s7 + $0x8] sm:$0xff] %v559_v34 }
 0x3fc   :  { %433 = vst [vmem:[%s762_s7] sm:$0xff] %v561_v35 }
 0x402   :  { %v563_v36 = vpop.eup %562 }
 0x403   :  { %v565_v37 = vpop.eup %564  ;;  %436 = vst [vmem:[%s762_s7 + $0x18] sm:$0x3] %v563_v36 }
 0x404   :  { %435 = vst [vmem:[%s762_s7 + $0x10] sm:$0xff] %v565_v37 }

// kernel: _lambda_.6
= control target key start
LH: loop header
LB: loop body
LE: loop exit
PB: predicated region body
PF: predicated region fallthrough
CT: control target
= control target key end

     0   :  { %vm130_vm0 = vcmask 130048   ;;  %vm134_vm1 = vcmask 128000   ;;  %vm243_vm2 = vcmask 261120   ;;  %s623_s1 = inlined_call_operand.vmem [shape: f32[128,32], index: 1, kind: input, shape index: {}]   ;;  %s624_s0 = inlined_call_operand.vmem [shape: f32[14,128], index: 0, kind: input, shape index: {}]   ;;  %s625_s2 = inlined_call_operand.vmem [shape: f32[1,32], index: 2, kind: input, shape index: {}]   ;;  %s626_s5 = inlined_call_operand.vmem [shape: f32[32,256], index: 5, kind: input, shape index: {}]   ;;  %s627_s3 = inlined_call_operand.vmem [shape: f32[1,32], index: 3, kind: input, shape index: {}]   ;;  %s628_s4 = inlined_call_operand.vmem [shape: f32[1,32], index: 4, kind: input, shape index: {}]   ;;  %s629_s6 = inlined_call_operand.vmem [shape: f32[1,256], index: 6, kind: input, shape index: {}]   ;;  %s630_s7 = inlined_call_operand.vmem [shape: f32[14,256], index: 7, kind: output, shape index: {}]  }
   0x1   :  { %v28_v0 = vld [vmem:[%s623_s1] sm:$0xff]  ;;  %v29_v1 = vld [vmem:[%s623_s1 + $0x8] sm:$0xff]  ;;  %v30_v2 = vld [vmem:[%s623_s1 + $0x10] sm:$0xff] }
   0x2   :  { %v397_v3 = vpack.c.bf16 %v29_v1, %v28_v0  ;;  %v31_v4 = vld [vmem:[%s623_s1 + $0x18] sm:$0xff]  ;;  %v32_v6 = vld [vmem:[%s623_s1 + $0x20] sm:$0xff]  ;;  %v33_v7 = vld [vmem:[%s623_s1 + $0x28] sm:$0xff] }
   0x3   :  { %v401_v5 = vpack.c.bf16 %v31_v4, %v30_v2  ;;  %v405_v8 = vpack.c.bf16 %v33_v7, %v32_v6  ;;  %v26_v9 = vld [vmem:[%s624_s0] sm:$0xff]  ;;  %v34_v10 = vld [vmem:[%s623_s1 + $0x30] sm:$0xff]  ;;  %v35_v11 = vld [vmem:[%s623_s1 + $0x38] sm:$0xff] }
   0x4   :  { %398 = vmatprep.subr.bf16.mxu0 %v397_v3  ;;  %394 = vmatprep.mubr.f32.mxu0 %v26_v9  ;;  %v409_v12 = vpack.c.bf16 %v35_v11, %v34_v10  ;;  %v36_v13 = vld [vmem:[%s623_s1 + $0x40] sm:$0xff]  ;;  %v37_v14 = vld [vmem:[%s623_s1 + $0x48] sm:$0xff]  ;;  %v38_v16 = vld [vmem:[%s623_s1 + $0x50] sm:$0xff]  ;;  %v460_v9 = vmov 0.0  }
   0x5   :  { %400 = vmatpush3.bf16.msra.mxu0 %v397_v3  ;;  %v413_v15 = vpack.c.bf16 %v37_v14, %v36_v13  ;;  %v39_v17 = vld [vmem:[%s623_s1 + $0x58] sm:$0xff]  ;;  %v40_v19 = vld [vmem:[%s623_s1 + $0x60] sm:$0xff]  ;;  %v41_v20 = vld [vmem:[%s623_s1 + $0x68] sm:$0xff]  ;;  %314 = vmatprep.mubr.f32.mxu1 %v460_v9 }
   0x6   :  { %402 = vmatprep.subr.bf16.mxu0 %v401_v5  ;;  %v417_v18 = vpack.c.bf16 %v39_v17, %v38_v16  ;;  %v421_v21 = vpack.c.bf16 %v41_v20, %v40_v19  ;;  %v42_v22 = vld [vmem:[%s623_s1 + $0x70] sm:$0xff]  ;;  %v43_v23 = vld [vmem:[%s623_s1 + $0x78] sm:$0xff]  ;;  %v27_v25 = vld [vmem:[%s624_s0 + $0x8] sm:$0x3f]  ;;  %s459_s1 = smov 112  }
   0x7   :  { %v425_v24 = vpack.c.bf16 %v43_v23, %v42_v22  ;;  %v339_v26 = vld [vmem:[%s625_s2] ss:$0 sm:$0xff]  ;;  %v224_v61 = vld [vmem:[%s626_s5 + $0x8] sm:$0xff]  ;;  %v226_v62 = vld [vmem:[%s626_s5 + $0x18] sm:$0xff] }
   0x8   :  { %v429_v63 = vpack.c.bf16 %v226_v62, %v224_v61  ;;  %v223_v0 = vld [vmem:[%s626_s5] sm:$0xff]  ;;  %v225_v1 = vld [vmem:[%s626_s5 + $0x10] sm:$0xff]  ;;  %v228_v3 = vld [vmem:[%s626_s5 + $0x28] sm:$0xff] }
   0x9   :  { %404 = vmatpush3.bf16.msra.mxu0 %v401_v5  ;;  %v431_v2 = vpack.c.bf16 %v225_v1, %v223_v0  ;;  %v230_v4 = vld [vmem:[%s626_s5 + $0x38] sm:$0xff]  ;;  %v227_v6 = vld [vmem:[%s626_s5 + $0x20] sm:$0xff]  ;;  %v229_v7 = vld [vmem:[%s626_s5 + $0x30] sm:$0xff] }
   0xa   :  { %406 = vmatprep.subr.bf16.mxu0 %v405_v8  ;;  %430 = vmatprep.subr.bf16.mxu1 %v429_v63  ;;  %v433_v5 = vpack.c.bf16 %v230_v4, %v228_v3 }
   0xb   :  { %432 = vmatpush1.bf16.msra.mxu1 %v431_v2 }
   0xc   :  { %434 = vmatprep.subr.bf16.mxu1 %v433_v5 }
   0xd   :  { %408 = vmatpush3.bf16.msra.mxu0 %v405_v8  ;;  %v435_v8 = vpack.c.bf16 %v229_v7, %v227_v6 }
   0xe   :  { %410 = vmatprep.subr.bf16.mxu0 %v409_v12 }
   0xf   :  { %436 = vmatpush1.bf16.msra.mxu1 %v435_v8 }
  0x11   :  { %412 = vmatpush3.bf16.msra.mxu0 %v409_v12 }
  0x12   :  { %414 = vmatprep.subr.bf16.mxu0 %v413_v15 }
  0x15   :  { %416 = vmatpush3.bf16.msra.mxu0 %v413_v15 }
  0x16   :  { %418 = vmatprep.subr.bf16.mxu0 %v417_v18 }
  0x19   :  { %420 = vmatpush3.bf16.msra.mxu0 %v417_v18 }
  0x1a   :  { %422 = vmatprep.subr.bf16.mxu0 %v421_v21 }
  0x1d   :  { %424 = vmatpush3.bf16.msra.mxu0 %v421_v21 }
  0x1e   :  { %426 = vmatprep.subr.bf16.mxu0 %v425_v24 }
  0x21   :  { %428 = vmatpush3.bf16.msra.mxu0 %v425_v24 }
  0x24   :  { %395 = vmatmul.mubr.f32.vlgmr.msra.gmra.mrb[0].mxu0 %v27_v25 }
  0xf7   :  { %v396_v27 = vpop.f32.mrb[0].mxu0 }
  0xf8   :  { %v117_v28 = vpop.f32.mrb[1].mxu0  ;;  %v123_v30 = vadd.f32 %v396_v27, %v339_v26 }
  0xf9   :  { %v118_v29 = vadd.f32 %v339_v26, %v117_v28  ;;  %v340_v26 = vld [vmem:[%s627_s3] ss:$0 sm:$0xff] }
  0xfb   :  { %439 = vtanh.f32 %v118_v29 }
  0xfc   :  { %441 = vtanh.f32 %v123_v30 }
 0x105   :  { %v440_v31 = vpop.eup %439 }
 0x106   :  { %177 = vrot.lane.b32.xlu0 %v440_v31, %s459_s1  ;;  %v442_v32 = vpop.eup %441  ;;  %v131_v33 = vsel %vm130_vm0, %v440_v31, 0.0 }
 0x107   :  { %v135_v38 = vsel %vm134_vm1, %v442_v32, 0.0 }
 0x10a   :  { %179 = vrot.lane.b32.xlu0 %v442_v32, %s459_s1 }
 0x129   :  { %132 = vadd.xlane.f32.xlu0 %v131_v33 }
 0x178   :  { %v178_v34 = vpop.permute.xlu0 %177 }
 0x179   :  { %v183_v35 = vsel %vm130_vm0, %v178_v34, 0.0 }
 0x17a   :  { %184 = vadd.xlane.f32.xlu1 %v183_v35 }
 0x17c   :  { %v180_v36 = vpop.permute.xlu0 %179 }
 0x17d   :  { %v186_v37 = vsel %vm134_vm1, %v180_v36, 0.0 }
 0x17e   :  { %187 = vadd.xlane.f32.xlu1 %v186_v37 }
 0x182   :  { %136 = vadd.xlane.f32.xlu1 %v135_v38 }
 0x1b6   :  { %v133_v52 = vpop.xlane.xlu0 %132 }
 0x1b7   :  { %v139_v53 = vmul.f32 0.0625, %v133_v52 }
 0x1b9   :  { %v141_v54 = vsub.f32 %v440_v31, %v139_v53 }
 0x1bb   :  { %v143_v55 = vmul.f32 %v141_v54, %v141_v54 }
 0x1bd   :  { %v145_v56 = vsel %vm130_vm0, %v143_v55, 0.0 }
 0x207   :  { %v185_v39 = vpop.xlane.xlu1 %184 }
 0x208   :  { %v189_v40 = vmul.f32 0.0625, %v185_v39 }
 0x20a   :  { %v562_v41 = vsub.f32 %v440_v31, %v189_v40 }
 0x20b   :  { %v188_v42 = vpop.xlane.xlu1 %187 }
 0x20c   :  { %v190_v43 = vmul.f32 0.0625, %v188_v42  ;;  %v193_v44 = vmul.f32 %v562_v41, %v562_v41  ;;  %v233_v42 = vlaneseq }
 0x20e   :  { %v566_v45 = vsub.f32 %v442_v32, %v190_v43  ;;  %197 = vrot.lane.b32.xlu1 %v193_v44, %s459_s1  ;;  %v234_v43 = vshrl.u32 %v233_v42, 7 }
 0x20f   :  { %v137_v46 = vpop.xlane.xlu1 %136 }
 0x210   :  { %v140_v47 = vmul.f32 0.0625, %v137_v46  ;;  %v194_v48 = vmul.f32 %v566_v45, %v566_v45  ;;  %v235_v44 = vsub.s32 0, %v234_v43  ;;  %v239_v46 = vsub.s32 1, %v234_v43 }
 0x212   :  { %v142_v49 = vsub.f32 %v442_v32, %v140_v47  ;;  %199 = vrot.lane.b32.xlu1 %v194_v48, %s459_s1  ;;  %v341_v32 = vld [vmem:[%s628_s4] ss:$0 sm:$0xff] }
 0x214   :  { %v144_v50 = vmul.f32 %v142_v49, %v142_v49 }
 0x216   :  { %v148_v51 = vsel %vm134_vm1, %v144_v50, 0.0 }
 0x217   :  { %149 = vadd.xlane.f32.xlu0 %v148_v51 }
 0x236   :  { %146 = vadd.xlane.f32.xlu1 %v145_v56 }
 0x280   :  { %v198_v57 = vpop.permute.xlu1 %197 }
 0x281   :  { %v203_v58 = vsel %vm130_vm0, %v198_v57, 0.0 }
 0x282   :  { %204 = vadd.xlane.f32.xlu0 %v203_v58 }
 0x284   :  { %v200_v59 = vpop.permute.xlu1 %199 }
 0x285   :  { %v206_v60 = vsel %vm134_vm1, %v200_v59, 0.0 }
 0x286   :  { %207 = vadd.xlane.f32.xlu0 %v206_v60 }
 0x2a4   :  { %v150_v12 = vpop.xlane.xlu0 %149 }
 0x2a5   :  { %v152_v13 = vmul.f32 0.0625, %v150_v12 }
 0x2a7   :  { %v154_v15 = vadd.f32 1e-05, %v152_v13 }
 0x2c3   :  { %v147_v10 = vpop.xlane.xlu1 %146 }
 0x2c4   :  { %v151_v11 = vmul.f32 0.0625, %v147_v10 }
 0x2c6   :  { %v153_v14 = vadd.f32 1e-05, %v151_v11 }
 0x2c8   :  { %443 = vrsqrt.f32 %v153_v14 }
 0x2c9   :  { %445 = vrsqrt.f32 %v154_v15 }
 0x2d2   :  { %v444_v22 = vpop.eup %443 }
 0x2d3   :  { %v157_v23 = vmul.f32 %v444_v22, %v141_v54  ;;  %v446_v24 = vpop.eup %445 }
 0x2d4   :  { %v158_v29 = vmul.f32 %v446_v24, %v142_v49 }
 0x2d5   :  { %v165_v27 = vmul.f32 %v340_v26, %v157_v23 }
 0x2d6   :  { %v166_v36 = vmul.f32 %v340_v26, %v158_v29 }
 0x2d7   :  { %v173_v34 = vadd.f32 %v341_v32, %v165_v27 }
 0x2d8   :  { %v174_v39 = vadd.f32 %v341_v32, %v166_v36 }
 0x30f   :  { %v205_v16 = vpop.xlane.xlu0 %204 }
 0x310   :  { %v209_v17 = vmul.f32 0.0625, %v205_v16 }
 0x312   :  { %v211_v18 = vadd.f32 1e-05, %v209_v17 }
 0x313   :  { %v208_v19 = vpop.xlane.xlu0 %207 }
 0x314   :  { %447 = vrsqrt.f32 %v211_v18  ;;  %v210_v20 = vmul.f32 0.0625, %v208_v19 }
 0x316   :  { %v212_v21 = vadd.f32 1e-05, %v210_v20 }
 0x318   :  { %449 = vrsqrt.f32 %v212_v21 }
 0x31e   :  { %v448_v25 = vpop.eup %447 }
 0x31f   :  { %v215_v28 = vmul.f32 %v448_v25, %v562_v41 }
 0x321   :  { %v217_v30 = vmul.f32 %v340_v26, %v215_v28 }
 0x322   :  { %v450_v31 = vpop.eup %449 }
 0x323   :  { %v216_v33 = vmul.f32 %v450_v31, %v566_v45  ;;  %v219_v35 = vadd.f32 %v341_v32, %v217_v30  ;;  %v231_v45 = vld [vmem:[%s629_s6] sm:$0x3] }
 0x324   :  { %v236_v47 = vrot.slane %v231_v45, %v235_v44  ;;  %v240_v48 = vrot.slane %v231_v45, %v239_v46 }
 0x325   :  { %v221_v37 = vsel %vm130_vm0, %v173_v34, %v219_v35  ;;  %v218_v38 = vmul.f32 %v340_v26, %v216_v33 }
 0x326   :  { %342 = vmatmul.mubr.msk.f32.vlgmr.msra.gmra.mrb[0].mxu1 %vm243_vm2, %v221_v37 }
 0x327   :  { %320 = vmatprep.mubr.f32.mxu1 %v460_v9  ;;  %v220_v40 = vadd.f32 %v341_v32, %v218_v38 }
 0x329   :  { %v222_v41 = vsel %vm130_vm0, %v174_v39, %v220_v40 }
 0x32a   :  { %343 = vmatmul.mubr.msk.f32.gmra.mrb[2].mxu1 %vm243_vm2, %v222_v41 }
 0x3f9   :  { %v316_v49 = vpop.f32.mrb[0].mxu1 }
 0x3fa   :  { %v317_v50 = vadd.f32 %v316_v49, %v236_v47  ;;  %v318_v51 = vpop.f32.mrb[1].mxu1 }
 0x3fb   :  { %v319_v52 = vadd.f32 %v318_v51, %v240_v48 }
 0x3fc   :  { %451 = vtanh.f32 %v317_v50 }
 0x3fd   :  { %453 = vtanh.f32 %v319_v52  ;;  %v322_v53 = vpop.f32.mrb[2].mxu1 }
 0x3fe   :  { %v323_v54 = vadd.f32 %v322_v53, %v236_v47  ;;  %v324_v55 = vpop.f32.mrb[3].mxu1 }
 0x3ff   :  { %v325_v56 = vadd.f32 %v324_v55, %v240_v48 }
 0x400   :  { %455 = vtanh.f32 %v323_v54 }
 0x401   :  { %457 = vtanh.f32 %v325_v56 }
 0x406   :  { %v452_v57 = vpop.eup %451 }
 0x407   :  { %v454_v58 = vpop.eup %453  ;;  %331 = vst [vmem:[%s630_s7] sm:$0xff] %v452_v57 }
 0x408   :  { %332 = vst [vmem:[%s630_s7 + $0x8] sm:$0xff] %v454_v58 }
 0x40a   :  { %v456_v59 = vpop.eup %455 }
 0x40b   :  { %v458_v60 = vpop.eup %457  ;;  %333 = vst [vmem:[%s630_s7 + $0x10] sm:$0x3f] %v456_v59 }
 0x40c   :  { %334 = vst [vmem:[%s630_s7 + $0x18] sm:$0x3f] %v458_v60 }

// kernel: _lambda_.7
= control target key start
LH: loop header
LB: loop body
LE: loop exit
PB: predicated region body
PF: predicated region fallthrough
CT: control target
= control target key end

     0   :  { %vm64_vm0 = vcmask 261120   ;;  %s3872_s22 = smov 96   ;;  %vm552_vm1 = vcmask 523264   ;;  %vm559_vm2 = vcmask 785408   ;;  %vm3874_vm3 = vmmov 0   ;;  %s3877_s14 = smov 80   ;;  %s5234_s1 = inlined_call_operand.vmem [shape: f32[48,32], index: 1, kind: input, shape index: {}]   ;;  %s5235_s4 = inlined_call_operand.vmem [shape: f32[48,32], index: 4, kind: input, shape index: {}]   ;;  %s5236_s2 = inlined_call_operand.vmem [shape: f32[48,32], index: 2, kind: input, shape index: {}]   ;;  %s5237_s3 = inlined_call_operand.vmem [shape: f32[48,32], index: 3, kind: input, shape index: {}]   ;;  %s5238_s0 = inlined_call_operand.vmem [shape: f32[48,32], index: 0, kind: input, shape index: {}]   ;;  %s5239_s7 = inlined_call_operand.vmem [shape: f32[128,32], index: 7, kind: input, shape index: {}]   ;;  %s5240_s5 = inlined_call_operand.vmem [shape: f32[1,32], index: 5, kind: input, shape index: {}]   ;;  %s5241_s6 = inlined_call_operand.vmem [shape: f32[1,32], index: 6, kind: input, shape index: {}]   ;;  %s5242_s9 = inlined_call_operand.vmem [shape: f32[32,96], index: 9, kind: input, shape index: {}]   ;;  %s5243_s8 = inlined_call_operand.vmem [shape: f32[1,32], index: 8, kind: input, shape index: {}]   ;;  %s5244_s10 = inlined_call_operand.vmem [shape: f32[1,96], index: 10, kind: input, shape index: {}]   ;;  %s5245_s11 = inlined_call_operand.vmem [shape: f32[32,8], index: 11, kind: input, shape index: {}]   ;;  %s5246_s12 = inlined_call_operand.vmem [shape: f32[1,8], index: 12, kind: input, shape index: {}]   ;;  %s5247_s13 = inlined_call_operand.vmem [shape: f32[48,8], index: 13, kind: output, shape index: {}]  }
   0x1   :  { %v3961_v0 = vld [vmem:[%s5235_s4] sm:$0xff]  ;;  %v3978_v5 = vld [vmem:[%s5235_s4 + $0x8] sm:$0xff]  ;;  %v4015_v18 = vld [vmem:[%s5235_s4 + $0x10] sm:$0xff]  ;;  %s3878_s15 = smov 120   ;;  %s3880_s16 = smov 72   ;;  %vm817_vm4 = vcmask 64512  }
   0x2   :  { %v168_v1 = vld [vmem:[%s5234_s1] sm:$0xff]  ;;  %v169_v6 = vld [vmem:[%s5234_s1 + $0x8] sm:$0xff]  ;;  %v170_v19 = vld [vmem:[%s5234_s1 + $0x10] sm:$0xff]  ;;  %s3882_s17 = smov 56   ;;  %s3884_s18 = smov 40   ;;  %vm913_vm6 = vcmask 195584  }
   0x3   :  { %v270_v2 = vld [vmem:[%s5236_s2] sm:$0xff]  ;;  %v3970_v3 = vadd.f32 %v168_v1, %v3961_v0  ;;  %v271_v7 = vld [vmem:[%s5236_s2 + $0x8] sm:$0xff]  ;;  %v3987_v8 = vadd.f32 %v169_v6, %v3978_v5  ;;  %v4023_v20 = vld [vmem:[%s5235_s4 + $0x18] sm:$0xff]  ;;  %v4033_v24 = vadd.f32 %v170_v19, %v4015_v18  ;;  %s3885_s19 = smov 8   ;;  %s3887_s20 = smov 24   ;;  %vm1798_vm7 = vcmask 130048  }
   0x4   :  { %v3973_v4 = vadd.f32 %v270_v2, %v3961_v0  ;;  %v3990_v9 = vadd.f32 %v271_v7, %v3978_v5  ;;  %v372_v10 = vld [vmem:[%s5237_s3] sm:$0xff]  ;;  %v373_v11 = vld [vmem:[%s5237_s3 + $0x8] sm:$0xff]  ;;  %v171_v21 = vld [vmem:[%s5234_s1 + $0x18] sm:$0xff] }
   0x5   :  { %v180_v12 = vsel %vm64_vm0, %v3970_v3, 0.0  ;;  %v183_v14 = vsel %vm64_vm0, %v3987_v8, 0.0  ;;  %v4007_v16 = vadd.f32 %v372_v10, %v3961_v0  ;;  %v4010_v17 = vadd.f32 %v373_v11, %v3978_v5  ;;  %v272_v26 = vld [vmem:[%s5236_s2 + $0x10] sm:$0xff]  ;;  %v273_v27 = vld [vmem:[%s5236_s2 + $0x18] sm:$0xff]  ;;  %v48_v38 = vld [vmem:[%s5235_s4 + $0x20] sm:$0xff] }
   0x6   :  { %v282_v13 = vsel %vm64_vm0, %v3973_v4, 0.0  ;;  %181 = vadd.xlane.f32.xlu0 %v180_v12  ;;  %v285_v15 = vsel %vm64_vm0, %v3990_v9, 0.0  ;;  %v4036_v25 = vadd.f32 %v171_v21, %v4023_v20  ;;  %v186_v28 = vsel %vm64_vm0, %v4033_v24, 0.0  ;;  %v374_v32 = vld [vmem:[%s5237_s3 + $0x10] sm:$0xff]  ;;  %v375_v33 = vld [vmem:[%s5237_s3 + $0x18] sm:$0xff]  ;;  %v172_v39 = vld [vmem:[%s5234_s1 + $0x20] sm:$0xff] }
   0x7   :  { %283 = vadd.xlane.f32.xlu1 %v282_v13  ;;  %v384_v22 = vsel %vm64_vm0, %v4007_v16, 0.0  ;;  %v387_v23 = vsel %vm64_vm0, %v4010_v17, 0.0  ;;  %v4049_v30 = vadd.f32 %v272_v26, %v4015_v18  ;;  %v4052_v31 = vadd.f32 %v273_v27, %v4023_v20  ;;  %v49_v40 = vld [vmem:[%s5235_s4 + $0x28] sm:$0xff]  ;;  %v274_v46 = vld [vmem:[%s5236_s2 + $0x20] sm:$0xff]  ;;  %v54_v1 = vld [vmem:[%s5238_s0 + $0x10] sm:$0xff]  ;;  %s3879_s4 = smov 112  }
   0x8   :  { %v189_v29 = vsel %vm64_vm0, %v4036_v25, 0.0  ;;  %v4065_v36 = vadd.f32 %v374_v32, %v4015_v18  ;;  %v4068_v37 = vadd.f32 %v375_v33, %v4023_v20  ;;  %v173_v41 = vld [vmem:[%s5234_s1 + $0x28] sm:$0xff]  ;;  %v4086_v44 = vadd.f32 %v172_v39, %v48_v38  ;;  %v376_v52 = vld [vmem:[%s5237_s3 + $0x20] sm:$0xff]  ;;  %v55_v2 = vld [vmem:[%s5238_s0 + $0x18] sm:$0xff]  ;;  %s3881_s1 = smov 104  }
   0x9   :  { %v288_v34 = vsel %vm64_vm0, %v4049_v30, 0.0  ;;  %v291_v35 = vsel %vm64_vm0, %v4052_v31, 0.0  ;;  %v4088_v45 = vadd.f32 %v173_v41, %v49_v40  ;;  %v275_v47 = vld [vmem:[%s5236_s2 + $0x28] sm:$0xff]  ;;  %v4100_v50 = vadd.f32 %v274_v46, %v48_v38  ;;  %v52_v58 = vld [vmem:[%s5238_s0] sm:$0xff]  ;;  %vm4577_vm5 = vmpackc.low %vm817_vm4, %vm817_vm4  ;;  %s3886_s2 = smov 16  }
   0xa   :  { %184 = vadd.xlane.f32.xlu0 %v183_v14  ;;  %v390_v42 = vsel %vm64_vm0, %v4065_v36, 0.0  ;;  %v393_v43 = vsel %vm64_vm0, %v4068_v37, 0.0  ;;  %v192_v48 = vsel %vm64_vm0, %v4086_v44, 0.0  ;;  %v4102_v51 = vadd.f32 %v275_v47, %v49_v40  ;;  %v377_v53 = vld [vmem:[%s5237_s3 + $0x28] sm:$0xff]  ;;  %v56_v12 = vld [vmem:[%s5238_s0 + $0x20] sm:$0xff] }
   0xb   :  { %286 = vadd.xlane.f32.xlu1 %v285_v15  ;;  %v195_v49 = vsel %vm64_vm0, %v4088_v45, 0.0  ;;  %v294_v54 = vsel %vm64_vm0, %v4100_v50, 0.0  ;;  %v4114_v56 = vadd.f32 %v376_v52, %v48_v38  ;;  %v4116_v57 = vadd.f32 %v377_v53, %v49_v40  ;;  %v53_v59 = vld [vmem:[%s5238_s0 + $0x8] sm:$0xff] }
   0xc   :  { %v297_v55 = vsel %vm64_vm0, %v4102_v51, 0.0  ;;  %v4129_v62 = vadd.f32 %v52_v58, %v3961_v0  ;;  %v4132_v63 = vadd.f32 %v53_v59, %v3978_v5  ;;  %v4145_v7 = vadd.f32 %v54_v1, %v4015_v18  ;;  %v57_v14 = vld [vmem:[%s5238_s0 + $0x28] sm:$0xff] }
   0xd   :  { %v396_v60 = vsel %vm64_vm0, %v4114_v56, 0.0  ;;  %v399_v61 = vsel %vm64_vm0, %v4116_v57, 0.0  ;;  %v4148_v5 = vadd.f32 %v55_v2, %v4023_v20  ;;  %v4157_v13 = vadd.f32 %v56_v12, %v48_v38 }
   0xe   :  { %385 = vadd.xlane.f32.xlu0 %v384_v22  ;;  %v65_v6 = vsel %vm64_vm0, %v4129_v62, 0.0  ;;  %v68_v0 = vsel %vm64_vm0, %v4132_v63, 0.0  ;;  %v71_v10 = vsel %vm64_vm0, %v4145_v7, 0.0  ;;  %v4162_v15 = vadd.f32 %v57_v14, %v49_v40 }
   0xf   :  { %388 = vadd.xlane.f32.xlu1 %v387_v23  ;;  %v74_v11 = vsel %vm64_vm0, %v4148_v5, 0.0 }
  0x12   :  { %187 = vadd.xlane.f32.xlu0 %v186_v28 }
  0x13   :  { %190 = vadd.xlane.f32.xlu1 %v189_v29 }
  0x16   :  { %289 = vadd.xlane.f32.xlu0 %v288_v34 }
  0x17   :  { %292 = vadd.xlane.f32.xlu1 %v291_v35 }
  0x1a   :  { %391 = vadd.xlane.f32.xlu0 %v390_v42 }
  0x1b   :  { %394 = vadd.xlane.f32.xlu1 %v393_v43 }
  0x1e   :  { %193 = vadd.xlane.f32.xlu0 %v192_v48 }
  0x1f   :  { %196 = vadd.xlane.f32.xlu1 %v195_v49 }
  0x22   :  { %295 = vadd.xlane.f32.xlu0 %v294_v54 }
  0x23   :  { %298 = vadd.xlane.f32.xlu1 %v297_v55 }
  0x26   :  { %397 = vadd.xlane.f32.xlu0 %v396_v60 }
  0x27   :  { %400 = vadd.xlane.f32.xlu1 %v399_v61 }
  0x2a   :  { %66 = vadd.xlane.f32.xlu0 %v65_v6 }
  0x2b   :  { %69 = vadd.xlane.f32.xlu1 %v68_v0 }
  0x2e   :  { %72 = vadd.xlane.f32.xlu0 %v71_v10 }
  0x2f   :  { %75 = vadd.xlane.f32.xlu1 %v74_v11 }
  0x93   :  { %v182_v18 = vpop.xlane.xlu0 %181 }
  0x94   :  { %v284_v19 = vpop.xlane.xlu1 %283  ;;  %v198_v20 = vmul.f32 0.03125, %v182_v18 }
  0x95   :  { %v300_v21 = vmul.f32 0.03125, %v284_v19 }
  0x96   :  { %v4165_v22 = vsub.f32 %v3970_v3, %v198_v20 }
  0x97   :  { %v4168_v23 = vsub.f32 %v3973_v4, %v300_v21  ;;  %v185_v26 = vpop.xlane.xlu0 %184 }
  0x98   :  { %v287_v27 = vpop.xlane.xlu1 %286  ;;  %v199_v28 = vmul.f32 0.03125, %v185_v26  ;;  %v210_v32 = vmul.f32 %v4165_v22, %v4165_v22 }
  0x99   :  { %v301_v29 = vmul.f32 0.03125, %v287_v27  ;;  %v312_v33 = vmul.f32 %v4168_v23, %v4168_v23 }
  0x9a   :  { %v4175_v34 = vsub.f32 %v3987_v8, %v199_v28  ;;  %v216_v3 = vsel %vm64_vm0, %v210_v32, 0.0 }
  0x9b   :  { %v4178_v35 = vsub.f32 %v3990_v9, %v301_v29  ;;  %v386_v4 = vpop.xlane.xlu0 %385  ;;  %217 = vadd.xlane.f32.xlu0 %v216_v3  ;;  %v318_v39 = vsel %vm64_vm0, %v312_v33, 0.0 }
  0x9c   :  { %v389_v38 = vpop.xlane.xlu1 %388  ;;  %v402_v40 = vmul.f32 0.03125, %v386_v4  ;;  %v211_v42 = vmul.f32 %v4175_v34, %v4175_v34 }
  0x9d   :  { %v403_v41 = vmul.f32 0.03125, %v389_v38  ;;  %v313_v43 = vmul.f32 %v4178_v35, %v4178_v35 }
  0x9e   :  { %v4187_v8 = vsub.f32 %v4007_v16, %v402_v40  ;;  %v219_v46 = vsel %vm64_vm0, %v211_v42, 0.0  ;;  %v77_v40 = vsel %vm64_vm0, %v4157_v13, 0.0 }
  0x9f   :  { %v4190_v9 = vsub.f32 %v4010_v17, %v403_v41  ;;  %v188_v47 = vpop.xlane.xlu0 %187  ;;  %220 = vadd.xlane.f32.xlu1 %v219_v46  ;;  %319 = vadd.xlane.f32.xlu0 %v318_v39  ;;  %v321_v49 = vsel %vm64_vm0, %v313_v43, 0.0 }
  0xa0   :  { %v191_v48 = vpop.xlane.xlu1 %190  ;;  %v200_v52 = vmul.f32 0.03125, %v188_v47  ;;  %v414_v54 = vmul.f32 %v4187_v8, %v4187_v8 }
  0xa1   :  { %v201_v53 = vmul.f32 0.03125, %v191_v48  ;;  %v415_v16 = vmul.f32 %v4190_v9, %v4190_v9 }
  0xa2   :  { %v4199_v55 = vsub.f32 %v4033_v24, %v200_v52  ;;  %v420_v58 = vsel %vm64_vm0, %v414_v54, 0.0 }
  0xa3   :  { %v4202_v17 = vsub.f32 %v4036_v25, %v201_v53  ;;  %v290_v59 = vpop.xlane.xlu0 %289  ;;  %322 = vadd.xlane.f32.xlu1 %v321_v49  ;;  %421 = vadd.xlane.f32.xlu0 %v420_v58  ;;  %v423_v61 = vsel %vm64_vm0, %v415_v16, 0.0  ;;  %v80_v49 = vsel %vm64_vm0, %v4162_v15, 0.0 }
  0xa4   :  { %v293_v60 = vpop.xlane.xlu1 %292  ;;  %v302_v1 = vmul.f32 0.03125, %v290_v59  ;;  %v212_v6 = vmul.f32 %v4199_v55, %v4199_v55 }
  0xa5   :  { %v303_v2 = vmul.f32 0.03125, %v293_v60  ;;  %v213_v24 = vmul.f32 %v4202_v17, %v4202_v17 }
  0xa6   :  { %v4211_v0 = vsub.f32 %v4049_v30, %v302_v1  ;;  %v222_v10 = vsel %vm64_vm0, %v212_v6, 0.0 }
  0xa7   :  { %v4214_v25 = vsub.f32 %v4052_v31, %v303_v2  ;;  %v392_v11 = vpop.xlane.xlu0 %391  ;;  %424 = vadd.xlane.f32.xlu1 %v423_v61  ;;  %223 = vadd.xlane.f32.xlu0 %v222_v10  ;;  %v225_v14 = vsel %vm64_vm0, %v213_v24, 0.0 }
  0xa8   :  { %v395_v12 = vpop.xlane.xlu1 %394  ;;  %v404_v18 = vmul.f32 0.03125, %v392_v11  ;;  %v314_v20 = vmul.f32 %v4211_v0, %v4211_v0 }
  0xa9   :  { %v405_v19 = vmul.f32 0.03125, %v395_v12  ;;  %v315_v30 = vmul.f32 %v4214_v25, %v4214_v25 }
  0xaa   :  { %v4223_v21 = vsub.f32 %v4065_v36, %v404_v18  ;;  %v324_v26 = vsel %vm64_vm0, %v314_v20, 0.0 }
  0xab   :  { %v4226_v31 = vsub.f32 %v4068_v37, %v405_v19  ;;  %226 = vadd.xlane.f32.xlu1 %v225_v14  ;;  %325 = vadd.xlane.f32.xlu0 %v324_v26  ;;  %v194_v27 = vpop.xlane.xlu0 %193  ;;  %v327_v28 = vsel %vm64_vm0, %v315_v30, 0.0 }
  0xac   :  { %v197_v29 = vpop.xlane.xlu1 %196  ;;  %v202_v32 = vmul.f32 0.03125, %v194_v27  ;;  %v416_v33 = vmul.f32 %v4223_v21, %v4223_v21 }
  0xad   :  { %v203_v3 = vmul.f32 0.03125, %v197_v29  ;;  %v417_v36 = vmul.f32 %v4226_v31, %v4226_v31 }
  0xae   :  { %v4235_v4 = vsub.f32 %v4086_v44, %v202_v32  ;;  %v426_v37 = vsel %vm64_vm0, %v416_v33, 0.0 }
  0xaf   :  { %328 = vadd.xlane.f32.xlu1 %v327_v28  ;;  %427 = vadd.xlane.f32.xlu0 %v426_v37  ;;  %v4239_v38 = vsub.f32 %v4088_v45, %v203_v3  ;;  %v296_v39 = vpop.xlane.xlu0 %295  ;;  %v429_v43 = vsel %vm64_vm0, %v417_v36, 0.0  ;;  %v566_v37 = vld [vmem:[%s5239_s7] sm:$0xff] }
  0xb0   :  { %v299_v41 = vpop.xlane.xlu1 %298  ;;  %v304_v42 = vmul.f32 0.03125, %v296_v39  ;;  %v214_v44 = vmul.f32 %v4235_v4, %v4235_v4  ;;  %v567_v39 = vld [vmem:[%s5239_s7 + $0x8] sm:$0xff] }
  0xb1   :  { %v305_v46 = vmul.f32 0.03125, %v299_v41  ;;  %v215_v53 = vmul.f32 %v4239_v38, %v4239_v38  ;;  %v3475_v41 = vpack.c.bf16 %v567_v39, %v566_v37 }
  0xb2   :  { %v4247_v47 = vsub.f32 %v4100_v50, %v304_v42  ;;  %v228_v16 = vsel %vm64_vm0, %v214_v44, 0.0  ;;  %v569_v42 = vld [vmem:[%s5239_s7 + $0x18] sm:$0xff]  ;;  %v571_v44 = vld [vmem:[%s5239_s7 + $0x28] sm:$0xff] }
  0xb3   :  { %430 = vadd.xlane.f32.xlu1 %v429_v43  ;;  %78 = vadd.xlane.f32.xlu0 %v77_v40  ;;  %v4250_v45 = vsub.f32 %v4102_v51, %v305_v46  ;;  %v398_v48 = vpop.xlane.xlu0 %397  ;;  %v231_v60 = vsel %vm64_vm0, %v215_v53, 0.0  ;;  %v568_v40 = vld [vmem:[%s5239_s7 + $0x10] sm:$0xff]  ;;  %v570_v46 = vld [vmem:[%s5239_s7 + $0x20] sm:$0xff] }
  0xb4   :  { %v401_v52 = vpop.xlane.xlu1 %400  ;;  %v406_v54 = vmul.f32 0.03125, %v398_v48  ;;  %v316_v50 = vmul.f32 %v4247_v47, %v4247_v47  ;;  %v3479_v43 = vpack.c.bf16 %v569_v42, %v568_v40  ;;  %3476 = vmatprep.subr.bf16.mxu0 %v3475_v41  ;;  %v3483_v48 = vpack.c.bf16 %v571_v44, %v570_v46  ;;  %v578_v46 = vld [vmem:[%s5239_s7 + $0x60] sm:$0xff]  ;;  %v579_v44 = vld [vmem:[%s5239_s7 + $0x68] sm:$0xff] }
  0xb5   :  { %v407_v58 = vmul.f32 0.03125, %v401_v52  ;;  %v317_v1 = vmul.f32 %v4250_v45, %v4250_v45  ;;  %3478 = vmatpush3.bf16.msra.mxu0 %v3475_v41  ;;  %v573_v52 = vld [vmem:[%s5239_s7 + $0x38] sm:$0xff] }
  0xb6   :  { %v4260_v59 = vsub.f32 %v4114_v56, %v406_v54  ;;  %v330_v6 = vsel %vm64_vm0, %v316_v50, 0.0  ;;  %3480 = vmatprep.subr.bf16.mxu0 %v3479_v43  ;;  %v574_v54 = vld [vmem:[%s5239_s7 + $0x40] sm:$0xff] }
  0xb7   :  { %81 = vadd.xlane.f32.xlu1 %v80_v49  ;;  %229 = vadd.xlane.f32.xlu0 %v228_v16  ;;  %v4263_v51 = vsub.f32 %v4116_v57, %v407_v58  ;;  %v67_v61 = vpop.xlane.xlu0 %66  ;;  %v333_v57 = vsel %vm64_vm0, %v317_v1, 0.0  ;;  %v572_v49 = vld [vmem:[%s5239_s7 + $0x30] sm:$0xff]  ;;  %v575_v16 = vld [vmem:[%s5239_s7 + $0x48] sm:$0xff] }
  0xb8   :  { %v70_v2 = vpop.xlane.xlu1 %69  ;;  %v84_v24 = vmul.f32 0.03125, %v67_v61  ;;  %v418_v56 = vmul.f32 %v4260_v59, %v4260_v59  ;;  %v3487_v53 = vpack.c.bf16 %v573_v52, %v572_v49  ;;  %v3491_v58 = vpack.c.bf16 %v575_v16, %v574_v54 }
  0xb9   :  { %v85_v10 = vmul.f32 0.03125, %v70_v2  ;;  %v419_v18 = vmul.f32 %v4263_v51, %v4263_v51  ;;  %3482 = vmatpush3.bf16.msra.mxu0 %v3479_v43  ;;  %v4340_v43 = vld [vmem:[%s5240_s5] ss:$0 sm:$0xff]  ;;  %v3499_v52 = vpack.c.bf16 %v579_v44, %v578_v46  ;;  %s3883_s5 = smov 48  }
  0xba   :  { %v4272_v11 = vsub.f32 %v4129_v62, %v84_v24  ;;  %v432_v20 = vsel %vm64_vm0, %v418_v56, 0.0  ;;  %3484 = vmatprep.subr.bf16.mxu0 %v3483_v48 }
  0xbb   :  { %232 = vadd.xlane.f32.xlu1 %v231_v60  ;;  %331 = vadd.xlane.f32.xlu0 %v330_v6  ;;  %v4276_v12 = vsub.f32 %v4132_v63, %v85_v10  ;;  %v73_v14 = vpop.xlane.xlu0 %72  ;;  %v435_v63 = vsel %vm64_vm0, %v419_v18, 0.0 }
  0xbc   :  { %v76_v19 = vpop.xlane.xlu1 %75  ;;  %v86_v30 = vmul.f32 0.03125, %v73_v14  ;;  %v96_v62 = vmul.f32 %v4272_v11, %v4272_v11 }
  0xbd   :  { %v87_v26 = vmul.f32 0.03125, %v76_v19  ;;  %v97_v32 = vmul.f32 %v4276_v12, %v4276_v12  ;;  %3486 = vmatpush3.bf16.msra.mxu0 %v3483_v48 }
  0xbe   :  { %v4284_v27 = vsub.f32 %v4145_v7, %v86_v30  ;;  %v102_v29 = vsel %vm64_vm0, %v96_v62, 0.0  ;;  %3488 = vmatprep.subr.bf16.mxu0 %v3487_v53 }
  0xbf   :  { %334 = vadd.xlane.f32.xlu1 %v333_v57  ;;  %433 = vadd.xlane.f32.xlu0 %v432_v20  ;;  %v4288_v28 = vsub.f32 %v4148_v5, %v87_v26  ;;  %v105_v7 = vsel %vm64_vm0, %v97_v32, 0.0  ;;  %v576_v32 = vld [vmem:[%s5239_s7 + $0x50] sm:$0xff] }
  0xc0   :  { %v98_v33 = vmul.f32 %v4284_v27, %v4284_v27 }
  0xc1   :  { %v99_v36 = vmul.f32 %v4288_v28, %v4288_v28  ;;  %3490 = vmatpush3.bf16.msra.mxu0 %v3487_v53 }
  0xc2   :  { %v108_v3 = vsel %vm64_vm0, %v98_v33, 0.0  ;;  %3492 = vmatprep.subr.bf16.mxu0 %v3491_v58  ;;  %v577_v33 = vld [vmem:[%s5239_s7 + $0x58] sm:$0xff] }
  0xc3   :  { %436 = vadd.xlane.f32.xlu1 %v435_v63  ;;  %103 = vadd.xlane.f32.xlu0 %v102_v29  ;;  %v111_v5 = vsel %vm64_vm0, %v99_v36, 0.0 }
  0xc5   :  { %3494 = vmatpush3.bf16.msra.mxu0 %v3491_v58 }
  0xc7   :  { %106 = vadd.xlane.f32.xlu1 %v105_v7  ;;  %109 = vadd.xlane.f32.xlu0 %v108_v3 }
  0xcb   :  { %112 = vadd.xlane.f32.xlu1 %v111_v5  ;;  %v3495_v5 = vpack.c.bf16 %v577_v33, %v576_v32 }
  0xcd   :  { %3496 = vmatprep.subr.bf16.mxu0 %v3495_v5 }
  0xce   :  { %3498 = vmatpush3.bf16.msra.mxu0 %v3495_v5 }
  0xcf   :  { %3500 = vmatprep.subr.bf16.mxu0 %v3499_v52 }
  0xd2   :  { %3502 = vmatpush3.bf16.msra.mxu0 %v3499_v52 }
 0x128   :  { %v218_v50 = vpop.xlane.xlu0 %217 }
 0x129   :  { %v234_v60 = vmul.f32 0.03125, %v218_v50 }
 0x12b   :  { %v240_v61 = vadd.f32 1e-05, %v234_v60 }
 0x12c   :  { %v221_v1 = vpop.xlane.xlu1 %220  ;;  %v320_v2 = vpop.xlane.xlu0 %319 }
 0x12d   :  { %3726 = vrsqrt.f32 %v240_v61  ;;  %v235_v6 = vmul.f32 0.03125, %v221_v1  ;;  %v336_v24 = vmul.f32 0.03125, %v320_v2  ;;  %v4353_v1 = vld [vmem:[%s5241_s6] ss:$0 sm:$0xff]  ;;  %s3870_s6 = smov 32  }
 0x12f   :  { %v241_v10 = vadd.f32 1e-05, %v235_v6  ;;  %v342_v56 = vadd.f32 1e-05, %v336_v24  ;;  %v581_v24 = vld [vmem:[%s5239_s7 + $0x78] sm:$0xff] }
 0x130   :  { %v323_v57 = vpop.xlane.xlu1 %322  ;;  %v422_v14 = vpop.xlane.xlu0 %421 }
 0x131   :  { %3728 = vrsqrt.f32 %v241_v10  ;;  %v337_v18 = vmul.f32 0.03125, %v323_v57  ;;  %v438_v19 = vmul.f32 0.03125, %v422_v14 }
 0x132   :  { %3730 = vrsqrt.f32 %v342_v56 }
 0x133   :  { %v343_v20 = vadd.f32 1e-05, %v337_v18  ;;  %v444_v30 = vadd.f32 1e-05, %v438_v19 }
 0x134   :  { %v425_v26 = vpop.xlane.xlu1 %424  ;;  %v224_v62 = vpop.xlane.xlu0 %223 }
 0x135   :  { %3732 = vrsqrt.f32 %v343_v20  ;;  %v439_v63 = vmul.f32 0.03125, %v425_v26  ;;  %v236_v29 = vmul.f32 0.03125, %v224_v62 }
 0x136   :  { %3734 = vrsqrt.f32 %v444_v30 }
 0x137   :  { %v3727_v7 = vpop.eup %3726  ;;  %v445_v3 = vadd.f32 1e-05, %v439_v63  ;;  %v242_v36 = vadd.f32 1e-05, %v236_v29 }
 0x138   :  { %v227_v37 = vpop.xlane.xlu1 %226  ;;  %v326_v39 = vpop.xlane.xlu0 %325  ;;  %v252_v40 = vmul.f32 %v3727_v7, %v4165_v22 }
 0x139   :  { %3736 = vrsqrt.f32 %v445_v3  ;;  %v237_v41 = vmul.f32 0.03125, %v227_v37  ;;  %v338_v42 = vmul.f32 0.03125, %v326_v39 }
 0x13a   :  { %3738 = vrsqrt.f32 %v242_v36  ;;  %v258_v50 = vmul.f32 %v4340_v43, %v252_v40 }
 0x13b   :  { %v3729_v22 = vpop.eup %3728  ;;  %v243_v48 = vadd.f32 1e-05, %v237_v41  ;;  %v344_v49 = vadd.f32 1e-05, %v338_v42 }
 0x13c   :  { %v3731_v53 = vpop.eup %3730  ;;  %v329_v54 = vpop.xlane.xlu1 %328  ;;  %v253_v58 = vmul.f32 %v3729_v22, %v4175_v34  ;;  %v580_v34 = vld [vmem:[%s5239_s7 + $0x70] sm:$0xff]  ;;  %s3871_s7 = smov 64  }
 0x13d   :  { %v428_v16 = vpop.xlane.xlu0 %427  ;;  %3740 = vrsqrt.f32 %v243_v48  ;;  %v339_v60 = vmul.f32 0.03125, %v329_v54  ;;  %v354_v2 = vmul.f32 %v3731_v53, %v4168_v23  ;;  %v3503_v14 = vpack.c.bf16 %v581_v24, %v580_v34 }
 0x13e   :  { %v440_v61 = vmul.f32 0.03125, %v428_v16  ;;  %3742 = vrsqrt.f32 %v344_v49  ;;  %v259_v6 = vmul.f32 %v4340_v43, %v253_v58  ;;  %v264_v23 = vadd.f32 %v4353_v1, %v258_v50 }
 0x13f   :  { %v3733_v10 = vpop.eup %3732  ;;  %v345_v56 = vadd.f32 1e-05, %v339_v60  ;;  %v360_v26 = vmul.f32 %v4340_v43, %v354_v2  ;;  %3504 = vmatprep.subr.bf16.mxu0 %v3503_v14 }
 0x140   :  { %v446_v57 = vadd.f32 1e-05, %v440_v61  ;;  %v3735_v18 = vpop.eup %3734  ;;  %v431_v19 = vpop.xlane.xlu1 %430  ;;  %v265_v20 = vadd.f32 %v4353_v1, %v259_v6  ;;  %v355_v30 = vmul.f32 %v3733_v10, %v4178_v35  ;;  %3506 = vmatpush3.bf16.msra.mxu0 %v3503_v14 }
 0x141   :  { %3744 = vrsqrt.f32 %v345_v56  ;;  %v441_v62 = vmul.f32 0.03125, %v431_v19  ;;  %v456_v32 = vmul.f32 %v3735_v18, %v4187_v8  ;;  %v366_v35 = vadd.f32 %v4353_v1, %v360_v26  ;;  %v79_v18 = vpop.xlane.xlu0 %78 }
 0x142   :  { %3746 = vrsqrt.f32 %v446_v57  ;;  %v3601_v63 = vpack.i.bf16 %v265_v20, %v264_v23  ;;  %v361_v29 = vmul.f32 %v4340_v43, %v355_v30  ;;  %v88_v30 = vmul.f32 0.03125, %v79_v18 }
 0x143   :  { %v3737_v33 = vpop.eup %3736  ;;  %v447_v7 = vadd.f32 1e-05, %v441_v62  ;;  %v462_v37 = vmul.f32 %v4340_v43, %v456_v32 }
 0x144   :  { %v3739_v3 = vpop.eup %3738  ;;  %3602 = vrot.lane.b32.xlu0 %v3601_v63, %s3870_s6  ;;  %v367_v36 = vadd.f32 %v4353_v1, %v361_v29  ;;  %v457_v5 = vmul.f32 %v3737_v33, %v4190_v9  ;;  %v82_v57 = vpop.xlane.xlu1 %81  ;;  %v4401_v63 = vsub.f32 %v4157_v13, %v88_v30 }
 0x145   :  { %3748 = vrsqrt.f32 %v447_v7  ;;  %v254_v39 = vmul.f32 %v3739_v3, %v4199_v55  ;;  %v468_v46 = vadd.f32 %v4353_v1, %v462_v37  ;;  %v230_v23 = vpop.xlane.xlu0 %229 }
 0x146   :  { %v3606_v40 = vpack.i.bf16 %v367_v36, %v366_v35  ;;  %v463_v8 = vmul.f32 %v4340_v43, %v457_v5  ;;  %v238_v29 = vmul.f32 0.03125, %v230_v23  ;;  %v100_v37 = vmul.f32 %v4401_v63, %v4401_v63  ;;  %v685_v23 = vld [vmem:[%s5242_s9 + $0x8] sm:$0xff] }
 0x147   :  { %v3741_v41 = vpop.eup %3740  ;;  %v260_v9 = vmul.f32 %v4340_v43, %v254_v39  ;;  %v89_v39 = vmul.f32 0.03125, %v82_v57 }
 0x148   :  { %v3743_v42 = vpop.eup %3742  ;;  %3607 = vrot.lane.b32.xlu1 %v3606_v40, %s3871_s7  ;;  %v469_v44 = vadd.f32 %v4353_v1, %v463_v8  ;;  %v255_v22 = vmul.f32 %v3741_v41, %v4202_v17  ;;  %v233_v19 = vpop.xlane.xlu1 %232  ;;  %v244_v36 = vadd.f32 1e-05, %v238_v29  ;;  %v114_v13 = vsel %vm64_vm0, %v100_v37, 0.0 }
 0x149   :  { %v356_v55 = vmul.f32 %v3743_v42, %v4211_v0  ;;  %v266_v54 = vadd.f32 %v4353_v1, %v260_v9  ;;  %v239_v26 = vmul.f32 0.03125, %v233_v19  ;;  %v684_v19 = vld [vmem:[%s5242_s9] sm:$0xff] }
 0x14a   :  { %v3611_v48 = vpack.i.bf16 %v469_v44, %v468_v46  ;;  %v261_v49 = vmul.f32 %v4340_v43, %v255_v22  ;;  %v4407_v46 = vsub.f32 %v4162_v15, %v89_v39 }
 0x14b   :  { %v3745_v52 = vpop.eup %3744  ;;  %v362_v17 = vmul.f32 %v4340_v43, %v356_v55  ;;  %v245_v7 = vadd.f32 1e-05, %v239_v26 }
 0x14c   :  { %v3747_v53 = vpop.eup %3746  ;;  %3612 = vrot.lane.b32.xlu1 %v3611_v48, %s3872_s22  ;;  %v267_v16 = vadd.f32 %v4353_v1, %v261_v49  ;;  %v357_v58 = vmul.f32 %v3745_v52, %v4214_v25  ;;  %v335_v20 = vpop.xlane.xlu1 %334  ;;  %v101_v44 = vmul.f32 %v4407_v46, %v4407_v46 }
 0x14d   :  { %v458_v50 = vmul.f32 %v3747_v53, %v4223_v21  ;;  %v368_v0 = vadd.f32 %v4353_v1, %v362_v17  ;;  %v341_v32 = vmul.f32 0.03125, %v335_v20  ;;  %3750 = vrsqrt.f32 %v245_v7 }
 0x14e   :  { %v3616_v60 = vpack.i.bf16 %v267_v16, %v266_v54  ;;  %v363_v61 = vmul.f32 %v4340_v43, %v357_v58  ;;  %3752 = vrsqrt.f32 %v244_v36  ;;  %v117_v9 = vsel %vm64_vm0, %v101_v44, 0.0 }
 0x14f   :  { %v3749_v2 = vpop.eup %3748  ;;  %v464_v24 = vmul.f32 %v4340_v43, %v458_v50  ;;  %v347_v40 = vadd.f32 1e-05, %v341_v32 }
 0x150   :  { %3617 = vrot.lane.b32.xlu1 %v3616_v60, %s3870_s6  ;;  %v369_v6 = vadd.f32 %v4353_v1, %v363_v61  ;;  %v459_v34 = vmul.f32 %v3749_v2, %v4226_v31  ;;  %v332_v31 = vpop.xlane.xlu0 %331  ;;  %v437_v62 = vpop.xlane.xlu1 %436 }
 0x151   :  { %v470_v21 = vadd.f32 %v4353_v1, %v464_v24  ;;  %v443_v3 = vmul.f32 0.03125, %v437_v62  ;;  %v340_v35 = vmul.f32 0.03125, %v332_v31  ;;  %3754 = vrsqrt.f32 %v347_v40 }
 0x152   :  { %v3621_v10 = vpack.i.bf16 %v369_v6, %v368_v0  ;;  %v465_v25 = vmul.f32 %v4340_v43, %v459_v34  ;;  %v3507_v31 = vpack.c.bf16 %v685_v23, %v684_v19 }
 0x153   :  { %v449_v8 = vadd.f32 1e-05, %v443_v3  ;;  %v346_v41 = vadd.f32 1e-05, %v340_v35 }
 0x154   :  { %3622 = vrot.lane.b32.xlu0 %v3621_v10, %s3871_s7  ;;  %v471_v56 = vadd.f32 %v4353_v1, %v465_v25  ;;  %v434_v33 = vpop.xlane.xlu0 %433  ;;  %3508 = vmatprep.subr.bf16.mxu1 %v3507_v31 }
 0x155   :  { %v442_v5 = vmul.f32 0.03125, %v434_v33  ;;  %3756 = vrsqrt.f32 %v449_v8  ;;  %3510 = vmatpush3.bf16.msra.mxu1 %v3507_v31 }
 0x156   :  { %v3626_v14 = vpack.i.bf16 %v471_v56, %v470_v21  ;;  %3758 = vrsqrt.f32 %v346_v41  ;;  %v107_v56 = vpop.xlane.xlu1 %106 }
 0x157   :  { %v448_v42 = vadd.f32 1e-05, %v442_v5  ;;  %v3751_v22 = vpop.eup %3750 }
 0x158   :  { %3627 = vrot.lane.b32.xlu1 %v3626_v14, %s3872_s22  ;;  %v3753_v48 = vpop.eup %3752  ;;  %v257_v55 = vmul.f32 %v3751_v22, %v4239_v38  ;;  %v104_v21 = vpop.xlane.xlu0 %103  ;;  %v121_v14 = vmul.f32 0.03125, %v107_v56 }
 0x159   :  { %3760 = vrsqrt.f32 %v448_v42  ;;  %v256_v15 = vmul.f32 %v3753_v48, %v4235_v4  ;;  %v120_v57 = vmul.f32 0.03125, %v104_v21 }
 0x15a   :  { %v263_v16 = vmul.f32 %v4340_v43, %v257_v55  ;;  %v127_v20 = vadd.f32 1e-05, %v121_v14  ;;  %v113_v26 = vpop.xlane.xlu1 %112 }
 0x15b   :  { %v3755_v49 = vpop.eup %3754  ;;  %v262_v50 = vmul.f32 %v4340_v43, %v256_v15  ;;  %v126_v18 = vadd.f32 1e-05, %v120_v57  ;;  %v123_v29 = vmul.f32 0.03125, %v113_v26 }
 0x15c   :  { %v359_v58 = vmul.f32 %v3755_v49, %v4250_v45  ;;  %v269_v38 = vadd.f32 %v4353_v1, %v263_v16  ;;  %v110_v30 = vpop.xlane.xlu0 %109 }
 0x15d   :  { %v268_v4 = vadd.f32 %v4353_v1, %v262_v50  ;;  %3762 = vrsqrt.f32 %v126_v18  ;;  %v122_v62 = vmul.f32 0.03125, %v110_v30  ;;  %v129_v33 = vadd.f32 1e-05, %v123_v29 }
 0x15e   :  { %v365_v2 = vmul.f32 %v4340_v43, %v359_v58  ;;  %3764 = vrsqrt.f32 %v127_v20 }
 0x15f   :  { %v3757_v52 = vpop.eup %3756  ;;  %v3631_v34 = vpack.i.bf16 %v269_v38, %v268_v4  ;;  %v128_v32 = vadd.f32 1e-05, %v122_v62 }
 0x160   :  { %v3759_v53 = vpop.eup %3758  ;;  %v461_v17 = vmul.f32 %v3757_v52, %v4263_v51  ;;  %v371_v51 = vadd.f32 %v4353_v1, %v365_v2 }
 0x161   :  { %v358_v60 = vmul.f32 %v3759_v53, %v4247_v47  ;;  %3766 = vrsqrt.f32 %v128_v32 }
 0x162   :  { %v467_v0 = vmul.f32 %v4340_v43, %v461_v17  ;;  %3768 = vrsqrt.f32 %v129_v33 }
 0x163   :  { %v3761_v54 = vpop.eup %3760  ;;  %v364_v6 = vmul.f32 %v4340_v43, %v358_v60 }
 0x164   :  { %v460_v61 = vmul.f32 %v3761_v54, %v4260_v59  ;;  %v473_v24 = vadd.f32 %v4353_v1, %v467_v0 }
 0x165   :  { %v370_v47 = vadd.f32 %v4353_v1, %v364_v6 }
 0x166   :  { %v466_v45 = vmul.f32 %v4340_v43, %v460_v61 }
 0x167   :  { %v3636_v10 = vpack.i.bf16 %v371_v51, %v370_v47  ;;  %v3763_v7 = vpop.eup %3762 }
 0x168   :  { %v472_v59 = vadd.f32 %v4353_v1, %v466_v45  ;;  %v3765_v3 = vpop.eup %3764  ;;  %v138_v36 = vmul.f32 %v3763_v7, %v4272_v11 }
 0x169   :  { %v139_v35 = vmul.f32 %v3765_v3, %v4276_v12 }
 0x16a   :  { %v3641_v25 = vpack.i.bf16 %v473_v24, %v472_v59  ;;  %v150_v37 = vmul.f32 %v4340_v43, %v138_v36  ;;  %v686_v36 = vld [vmem:[%s5242_s9 + $0x10] sm:$0xff] }
 0x16b   :  { %v151_v39 = vmul.f32 %v4340_v43, %v139_v35  ;;  %v3767_v44 = vpop.eup %3766 }
 0x16c   :  { %v162_v22 = vadd.f32 %v4353_v1, %v150_v37  ;;  %v3769_v48 = vpop.eup %3768  ;;  %v140_v54 = vmul.f32 %v3767_v44, %v4284_v27 }
 0x16d   :  { %v141_v16 = vmul.f32 %v3769_v48, %v4288_v28 }
 0x16e   :  { %v152_v60 = vmul.f32 %v4340_v43, %v140_v54 }
 0x16f   :  { %v153_v61 = vmul.f32 %v4340_v43, %v141_v16 }
 0x170   :  { %v164_v27 = vadd.f32 %v4353_v1, %v152_v60  ;;  %v2936_v60 = vld [vmem:[%s5244_s10] ss:$0 sm:$0xff]  ;;  %s3876_s10 = smov 88  }
 0x171   :  { %v165_v28 = vadd.f32 %v4353_v1, %v153_v61 }
 0x173   :  { %115 = vadd.xlane.f32.xlu0 %v114_v13 }
 0x17c   :  { %118 = vadd.xlane.f32.xlu1 %v117_v9  ;;  %v163_v9 = vadd.f32 %v4353_v1, %v151_v39 }
 0x189   :  { %3632 = vrot.lane.b32.xlu0 %v3631_v34, %s3870_s6 }
 0x18d   :  { %3637 = vrot.lane.b32.xlu1 %v3636_v10, %s3871_s7  ;;  %3642 = vrot.lane.b32.xlu0 %v3641_v25, %s3872_s22 }
 0x1b6   :  { %v3603_v5 = vpop.permute.xlu0 %3602 }
 0x1b7   :  { %v3605_v8 = vunpack.i.h.bf16 %v3603_v5  ;;  %v3604_v41 = vunpack.i.l.bf16 %v3603_v5  ;;  %v687_v5 = vld [vmem:[%s5242_s9 + $0x18] sm:$0xff] }
 0x1b8   :  { %v3511_v37 = vpack.c.bf16 %v687_v5, %v686_v36 }
 0x1b9   :  { %v546_v55 = vsel %vm64_vm0, %v162_v22, %v3604_v41  ;;  %v547_v52 = vsel %vm64_vm0, %v163_v9, %v3605_v8 }
 0x1ba   :  { %v3608_v40 = vpop.permute.xlu1 %3607  ;;  %3512 = vmatprep.subr.bf16.mxu1 %v3511_v37 }
 0x1bb   :  { %v3610_v42 = vunpack.i.h.bf16 %v3608_v40  ;;  %v3609_v13 = vunpack.i.l.bf16 %v3608_v40  ;;  %3514 = vmatpush3.bf16.msra.mxu1 %v3511_v37 }
 0x1bd   :  { %v553_v53 = vsel %vm552_vm1, %v546_v55, %v3609_v13  ;;  %v554_v15 = vsel %vm552_vm1, %v547_v52, %v3610_v42 }
 0x1be   :  { %v3613_v12 = vpop.permute.xlu1 %3612 }
 0x1bf   :  { %v3615_v11 = vunpack.i.h.bf16 %v3613_v12  ;;  %v3614_v49 = vunpack.i.l.bf16 %v3613_v12 }
 0x1c1   :  { %v560_v58 = vsel %vm559_vm2, %v553_v53, %v3614_v49  ;;  %v561_v17 = vsel %vm559_vm2, %v554_v15, %v3615_v11 }
 0x1c2   :  { %3192 = vmatprep.mubr.f32.mxu0 %v560_v58  ;;  %v3618_v50 = vpop.permute.xlu1 %3617 }
 0x1c3   :  { %3193 = vmatmul.mubr.f32.vlgmr.msra.gmra.mrb[0].mxu0 %v561_v17  ;;  %v3620_v2 = vunpack.i.h.bf16 %v3618_v50  ;;  %v3619_v0 = vunpack.i.l.bf16 %v3618_v50  ;;  %v3873_v50 = vmov 0.0|0.0  }
 0x1c4   :  { %3515 = vmatprep.subr.bf16.mxu1 %v3873_v50  ;;  %3522 = vmatprep.subr.bf16.mxu0 %v3873_v50 }
 0x1c5   :  { %v548_v24 = vsel %vm64_vm0, %v164_v27, %v3619_v0  ;;  %v549_v47 = vsel %vm64_vm0, %v165_v28, %v3620_v2 }
 0x1c6   :  { %v3623_v38 = vpop.permute.xlu0 %3622 }
 0x1c7   :  { %v3625_v4 = vunpack.i.h.bf16 %v3623_v38  ;;  %v3624_v6 = vunpack.i.l.bf16 %v3623_v38 }
 0x1c9   :  { %v555_v59 = vsel %vm552_vm1, %v548_v24, %v3624_v6  ;;  %v556_v10 = vsel %vm552_vm1, %v549_v47, %v3625_v4  ;;  %v3875_v6 = vmov 0.0  }
 0x1ca   :  { %v3628_v45 = vpop.permute.xlu1 %3627 }
 0x1cb   :  { %v3630_v34 = vunpack.i.h.bf16 %v3628_v45  ;;  %v3629_v51 = vunpack.i.l.bf16 %v3628_v45 }
 0x1cd   :  { %v562_v25 = vsel %vm559_vm2, %v555_v59, %v3629_v51  ;;  %v563_v21 = vsel %vm559_vm2, %v556_v10, %v3630_v34 }
 0x1ce   :  { %3195 = vmatprep.mubr.f32.mxu0 %v562_v25 }
 0x1cf   :  { %3196 = vmatmul.mubr.f32.gmra.mrb[2].mxu0 %v563_v21 }
 0x200   :  { %v116_v56 = vpop.xlane.xlu0 %115 }
 0x201   :  { %v124_v57 = vmul.f32 0.03125, %v116_v56 }
 0x203   :  { %v130_v14 = vadd.f32 1e-05, %v124_v57 }
 0x204   :  { %v3633_v20 = vpop.permute.xlu0 %3632 }
 0x205   :  { %3770 = vrsqrt.f32 %v130_v14  ;;  %v3634_v32 = vunpack.i.l.bf16 %v3633_v20  ;;  %v3635_v42 = vunpack.i.h.bf16 %v3633_v20 }
 0x208   :  { %v3643_v29 = vpop.permute.xlu0 %3642 }
 0x209   :  { %v119_v18 = vpop.xlane.xlu1 %118  ;;  %v3644_v3 = vunpack.i.l.bf16 %v3643_v29  ;;  %v3645_v22 = vunpack.i.h.bf16 %v3643_v29 }
 0x20a   :  { %v125_v19 = vmul.f32 0.03125, %v119_v18 }
 0x20c   :  { %v131_v23 = vadd.f32 1e-05, %v125_v19 }
 0x20d   :  { %v3638_v26 = vpop.permute.xlu1 %3637 }
 0x20e   :  { %3772 = vrsqrt.f32 %v131_v23  ;;  %v3639_v7 = vunpack.i.l.bf16 %v3638_v26  ;;  %v3640_v44 = vunpack.i.h.bf16 %v3638_v26 }
 0x20f   :  { %v3771_v31 = vpop.eup %3770 }
 0x210   :  { %v142_v30 = vmul.f32 %v3771_v31, %v4401_v63 }
 0x212   :  { %v154_v62 = vmul.f32 %v4340_v43, %v142_v30 }
 0x214   :  { %v166_v33 = vadd.f32 %v4353_v1, %v154_v62 }
 0x216   :  { %v550_v35 = vsel %vm64_vm0, %v166_v33, %v3634_v32 }
 0x217   :  { %v557_v63 = vsel %vm552_vm1, %v550_v35, %v3639_v7 }
 0x218   :  { %v3773_v39 = vpop.eup %3772  ;;  %v564_v40 = vsel %vm559_vm2, %v557_v63, %v3644_v3 }
 0x219   :  { %v143_v8 = vmul.f32 %v3773_v39, %v4407_v46  ;;  %3198 = vmatprep.mubr.f32.mxu0 %v564_v40  ;;  %v2935_v46 = vld [vmem:[%s5243_s8] ss:$0 sm:$0xff] }
 0x21b   :  { %v155_v41 = vmul.f32 %v4340_v43, %v143_v8 }
 0x21d   :  { %v167_v13 = vadd.f32 %v4353_v1, %v155_v41 }
 0x21f   :  { %v551_v9 = vsel %vm64_vm0, %v167_v13, %v3635_v42 }
 0x220   :  { %v558_v48 = vsel %vm552_vm1, %v551_v9, %v3640_v44 }
 0x221   :  { %v565_v12 = vsel %vm559_vm2, %v558_v48, %v3645_v22 }
 0x222   :  { %3199 = vmatmul.mubr.f32.gmra.mrb[4].mxu0 %v565_v12 }
 0x223   :  { %3254 = vmatprep.mubr.msk.f32.mxu0 %vm3874_vm3, %v3875_v6 }
 0x296   :  { %v3194_v11 = vpop.f32.mrb[0].mxu0 }
 0x297   :  { %v655_v49 = vpop.f32.mrb[1].mxu0  ;;  %v661_v43 = vadd.f32 %v3194_v11, %v2935_v46 }
 0x298   :  { %v656_v55 = vadd.f32 %v2935_v46, %v655_v49 }
 0x29a   :  { %3209 = vmatprep.mubr.msk.f32.mxu1 %vm64_vm0, %v656_v55 }
 0x29b   :  { %3210 = vmatmul.mubr.msk.f32.vlgmr.msra.gmra.mrb[0].mxu1 %vm64_vm0, %v661_v43 }
 0x2a2   :  { %v3197_v1 = vpop.f32.mrb[2].mxu0 }
 0x2a3   :  { %v665_v52 = vpop.f32.mrb[3].mxu0  ;;  %v671_v15 = vadd.f32 %v3197_v1, %v2935_v46 }
 0x2a4   :  { %v666_v53 = vadd.f32 %v2935_v46, %v665_v52 }
 0x2a6   :  { %3212 = vmatprep.mubr.msk.f32.mxu1 %vm64_vm0, %v666_v53 }
 0x2a7   :  { %3213 = vmatmul.mubr.msk.f32.gmra.mrb[2].mxu1 %vm64_vm0, %v671_v15 }
 0x2f5   :  { %v3200_v54 = vpop.f32.mrb[4].mxu0 }
 0x2f6   :  { %v675_v16 = vpop.f32.mrb[5].mxu0  ;;  %v681_v17 = vadd.f32 %v3200_v54, %v2935_v46 }
 0x2f7   :  { %v676_v58 = vadd.f32 %v2935_v46, %v675_v16 }
 0x2f9   :  { %3215 = vmatprep.mubr.msk.f32.mxu1 %vm64_vm0, %v676_v58 }
 0x2fa   :  { %3216 = vmatmul.mubr.msk.f32.gmra.mrb[4].mxu1 %vm64_vm0, %v681_v17 }
 0x2fb   :  { %3224 = vmatprep.mubr.msk.f32.mxu1 %vm3874_vm3, %v3875_v6 }
 0x36e   :  { %v3211_v61 = vpop.f32.mrb[0].mxu1 }
 0x36f   :  { %v4495_v38 = vadd.f32 %v3211_v61, %v2936_v60  ;;  %v779_v2 = vpop.f32.mrb[1].mxu1 }
 0x370   :  { %v4497_v0 = vadd.f32 %v2936_v60, %v779_v2 }
 0x372   :  { %v4501_v4 = vpack.i.bf16 %v4495_v38, %v4497_v0 }
 0x374   :  { %3647 = vrot.lane.b32.xlu1 %v4501_v4, %s3872_s22 }
 0x378   :  { %3652 = vrot.lane.b32.xlu1 %v4501_v4, %s3876_s10 }
 0x37a   :  { %v3214_v27 = vpop.f32.mrb[2].mxu1 }
 0x37b   :  { %v789_v28 = vpop.f32.mrb[3].mxu1  ;;  %v4541_v24 = vadd.f32 %v3214_v27, %v2936_v60 }
 0x37c   :  { %v4511_v45 = vadd.f32 %v2936_v60, %v789_v28  ;;  %3657 = vrot.lane.b32.xlu1 %v4501_v4, %s3877_s14 }
 0x37e   :  { %815 = vrot.lane.b32.xlu0 %v4511_v45, %s3872_s22 }
 0x380   :  { %1047 = vrot.lane.b32.xlu1 %v4495_v38, %s3878_s15 }
 0x382   :  { %1055 = vrot.lane.b32.xlu0 %v4511_v45, %s3876_s10 }
 0x384   :  { %1293 = vrot.lane.b32.xlu1 %v4511_v45, %s3877_s14 }
 0x386   :  { %1045 = vrot.lane.b32.xlu0 %v4497_v0, %s3878_s15 }
 0x388   :  { %1283 = vrot.lane.b32.xlu1 %v4497_v0, %s3879_s4 }
 0x38a   :  { %1049 = vrot.lane.b32.xlu0 %v4511_v45, %s3878_s15 }
 0x38c   :  { %1287 = vrot.lane.b32.xlu1 %v4511_v45, %s3879_s4 }
 0x38e   :  { %3662 = vrot.lane.b32.xlu0 %v4501_v4, %s3880_s16 }
 0x392   :  { %1285 = vrot.lane.b32.xlu0 %v4495_v38, %s3879_s4 }
 0x396   :  { %1531 = vrot.lane.b32.xlu0 %v4511_v45, %s3880_s16 }
 0x39a   :  { %1521 = vrot.lane.b32.xlu0 %v4497_v0, %s3881_s1 }
 0x39e   :  { %1525 = vrot.lane.b32.xlu0 %v4511_v45, %s3881_s1 }
 0x3cd   :  { %v3217_v34 = vpop.f32.mrb[4].mxu1 }
 0x3ce   :  { %v799_v51 = vpop.f32.mrb[5].mxu1  ;;  %v4557_v10 = vadd.f32 %v3217_v34, %v2936_v60 }
 0x3cf   :  { %v4543_v47 = vadd.f32 %v2936_v60, %v799_v51 }
 0x3d1   :  { %v4547_v59 = vpack.i.bf16 %v4543_v47, %v4541_v24 }
 0x3d3   :  { %3672 = vrot.lane.b32.xlu0 %v4547_v59, %s3876_s10  ;;  %3667 = vrot.lane.b32.xlu1 %v4547_v59, %s3872_s22 }
 0x3d7   :  { %3677 = vrot.lane.b32.xlu0 %v4547_v59, %s3877_s14  ;;  %1523 = vrot.lane.b32.xlu1 %v4495_v38, %s3881_s1 }
 0x3db   :  { %2042 = vrot.lane.b32.xlu0 %v4543_v47, %s3878_s15  ;;  %1812 = vrot.lane.b32.xlu1 %v4557_v10, %s3872_s22 }
 0x3df   :  { %2288 = vrot.lane.b32.xlu0 %v4557_v10, %s3877_s14  ;;  %2050 = vrot.lane.b32.xlu1 %v4557_v10, %s3876_s10 }
 0x3e3   :  { %2280 = vrot.lane.b32.xlu0 %v4543_v47, %s3879_s4  ;;  %2040 = vrot.lane.b32.xlu1 %v4541_v24, %s3878_s15 }
 0x3e6   :  { %v3648_v25 = vpop.permute.xlu1 %3647 }
 0x3e7   :  { %v3650_v21 = vunpack.i.h.bf16 %v3648_v25  ;;  %v3649_v56 = vunpack.i.l.bf16 %v3648_v25  ;;  %3682 = vrot.lane.b32.xlu0 %v4501_v4, %s3871_s7  ;;  %2044 = vrot.lane.b32.xlu1 %v4557_v10, %s3878_s15 }
 0x3e9   :  { %v3516_v57 = vpack.c.bf16 %v3650_v21, %v3649_v56 }
 0x3ea   :  { %v3653_v18 = vpop.permute.xlu1 %3652 }
 0x3eb   :  { %v3655_v19 = vunpack.i.h.bf16 %v3653_v18  ;;  %v3654_v23 = vunpack.i.l.bf16 %v3653_v18  ;;  %1189 = vrot.lane.b32.xlu0 %v4511_v45, %s3882_s17  ;;  %2278 = vrot.lane.b32.xlu1 %v4541_v24, %s3879_s4 }
 0x3ec   :  { %3518 = vmatpush3.bf16.xpose.msk.msra.mxu1 %vm4577_vm5, %v3516_v57 }
 0x3ed   :  { %v3523_v20 = vpack.c.bf16 %v3655_v19, %v3654_v23  ;;  %3222 = vmatprep.subr.mxu1 %v3875_v6 }
 0x3ee   :  { %v3658_v30 = vpop.permute.xlu1 %3657 }
 0x3ef   :  { %1427 = vrot.lane.b32.xlu0 %v4511_v45, %s3883_s5  ;;  %2282 = vrot.lane.b32.xlu1 %v4557_v10, %s3879_s4  ;;  %v3660_v62 = vunpack.i.h.bf16 %v3658_v30  ;;  %v3659_v29 = vunpack.i.l.bf16 %v3658_v30 }
 0x3f0   :  { %3525 = vmatpush3.bf16.xpose.msk.msra.mxu0 %vm4577_vm5, %v3523_v20  ;;  %v816_v31 = vpop.permute.xlu0 %815 }
 0x3f1   :  { %3252 = vmatprep.subr.mxu0 %v3875_v6  ;;  %v3530_v33 = vpack.c.bf16 %v3660_v62, %v3659_v29 }
 0x3f2   :  { %v1048_v7 = vpop.permute.xlu1 %1047 }
 0x3f3   :  { %1665 = vrot.lane.b32.xlu0 %v4511_v45, %s3884_s18  ;;  %951 = vrot.lane.b32.xlu1 %v4511_v45, %s3871_s7 }
 0x3f4   :  { %3223 = vmatpush3.xpose.msk.msra.mxu1 %vm817_vm4, %v816_v31  ;;  %v1056_v26 = vpop.permute.xlu0 %1055 }
 0x3f5   :  { %3519 = vmatprep.subr.bf16.mxu1 %v3873_v50 }
 0x3f6   :  { %v1294_v35 = vpop.permute.xlu1 %1293 }
 0x3f7   :  { %3225 = vmatmul.mubr.msk.f32.vlgmr.msra.gmra.mrb[6].mxu1 %vm817_vm4, %v4497_v0  ;;  %3687 = vrot.lane.b32.xlu1 %v4501_v4, %s3882_s17 }
 0x3f8   :  { %3253 = vmatpush3.xpose.msk.msra.mxu0 %vm817_vm4, %v1056_v26  ;;  %v1046_v32 = vpop.permute.xlu0 %1045  ;;  %3227 = vmatprep.mubr.msk.f32.mxu1 %vm3874_vm3, %v3875_v6 }
 0x3f9   :  { %3529 = vmatprep.subr.bf16.mxu0 %v3873_v50 }
 0x3fa   :  { %v1284_v37 = vpop.permute.xlu1 %1283 }
 0x3fb   :  { %3228 = vmatmul.mubr.msk.f32.gmra.mrb[8].mxu1 %vm817_vm4, %v4495_v38  ;;  %3255 = vmatmul.mubr.msk.f32.vlgmr.msra.gmra.mrb[6].mxu0 %vm817_vm4, %v1046_v32 }
 0x3fc   :  { %3692 = vrot.lane.b32.xlu1 %v4501_v4, %s3883_s5  ;;  %3532 = vmatpush3.bf16.xpose.msk.msra.mxu0 %vm4577_vm5, %v3530_v33  ;;  %v1050_v3 = vpop.permute.xlu0 %1049 }
 0x3fd   :  { %3230 = vmatprep.mubr.msk.f32.mxu1 %vm3874_vm3, %v3875_v6  ;;  %3257 = vmatprep.mubr.msk.f32.mxu0 %vm3874_vm3, %v3875_v6 }
 0x3fe   :  { %3282 = vmatprep.subr.mxu0 %v3875_v6  ;;  %v1288_v41 = vpop.permute.xlu1 %1287 }
 0x3ff   :  { %3231 = vmatmul.mubr.msk.f32.gmra.mrb[10].mxu1 %vm817_vm4, %v4511_v45  ;;  %3258 = vmatmul.mubr.msk.f32.gmra.mrb[8].mxu0 %vm817_vm4, %v1048_v7 }
 0x400   :  { %3697 = vrot.lane.b32.xlu1 %v4501_v4, %s3884_s18  ;;  %v3663_v36 = vpop.permute.xlu0 %3662  ;;  %3260 = vmatprep.mubr.msk.f32.mxu0 %vm3874_vm3, %v3875_v6 }
 0x401   :  { %3239 = vmatprep.mubr.msk.f32.mxu1 %vm3874_vm3, %v3875_v6  ;;  %v3665_v5 = vunpack.i.h.bf16 %v3663_v36  ;;  %v3664_v63 = vunpack.i.l.bf16 %v3663_v36 }
 0x403   :  { %3261 = vmatmul.mubr.msk.f32.gmra.mrb[10].mxu0 %vm817_vm4, %v1050_v3  ;;  %v3537_v39 = vpack.c.bf16 %v3665_v5, %v3664_v63 }
 0x404   :  { %3283 = vmatpush3.xpose.msk.msra.mxu0 %vm817_vm4, %v1294_v35  ;;  %3284 = vmatprep.mubr.msk.f32.mxu0 %vm3874_vm3, %v3875_v6  ;;  %v1286_v40 = vpop.permute.xlu0 %1285 }
 0x405   :  { %3536 = vmatprep.subr.bf16.mxu0 %v3873_v50 }
 0x407   :  { %3285 = vmatmul.mubr.msk.f32.vlgmr.msra.gmra.mrb[12].mxu0 %vm817_vm4, %v1284_v37 }
 0x408   :  { %3539 = vmatpush3.bf16.xpose.msk.msra.mxu0 %vm4577_vm5, %v3537_v39  ;;  %3287 = vmatprep.mubr.msk.f32.mxu0 %vm3874_vm3, %v3875_v6  ;;  %v1532_v8 = vpop.permute.xlu0 %1531 }
 0x409   :  { %3312 = vmatprep.subr.mxu0 %v3875_v6 }
 0x40b   :  { %3288 = vmatmul.mubr.msk.f32.gmra.mrb[14].mxu0 %vm817_vm4, %v1286_v40 }
 0x40c   :  { %3290 = vmatprep.mubr.msk.f32.mxu0 %vm3874_vm3, %v3875_v6  ;;  %v1522_v42 = vpop.permute.xlu0 %1521 }
 0x40f   :  { %3291 = vmatmul.mubr.msk.f32.gmra.mrb[16].mxu0 %vm817_vm4, %v1288_v41 }
 0x410   :  { %3313 = vmatpush3.xpose.msk.msra.mxu0 %vm817_vm4, %v1532_v8  ;;  %3314 = vmatprep.mubr.msk.f32.mxu0 %vm3874_vm3, %v3875_v6  ;;  %v1526_v13 = vpop.permute.xlu0 %1525 }
 0x411   :  { %3543 = vmatprep.subr.bf16.mxu0 %v3873_v50 }
 0x413   :  { %3315 = vmatmul.mubr.msk.f32.vlgmr.msra.gmra.mrb[18].mxu0 %vm817_vm4, %v1522_v42 }
 0x414   :  { %3317 = vmatprep.mubr.msk.f32.mxu0 %vm3874_vm3, %v3875_v6 }
 0x445   :  { %v3673_v44 = vpop.permute.xlu0 %3672  ;;  %v3668_v22 = vpop.permute.xlu1 %3667 }
 0x446   :  { %v3670_v9 = vunpack.i.h.bf16 %v3668_v22  ;;  %v3669_v48 = vunpack.i.l.bf16 %v3668_v22  ;;  %v3675_v43 = vunpack.i.h.bf16 %v3673_v44  ;;  %v3674_v1 = vunpack.i.l.bf16 %v3673_v44 }
 0x448   :  { %v3544_v12 = vpack.c.bf16 %v3670_v9, %v3669_v48  ;;  %v3551_v15 = vpack.c.bf16 %v3675_v43, %v3674_v1 }
 0x449   :  { %v3678_v46 = vpop.permute.xlu0 %3677  ;;  %v1524_v11 = vpop.permute.xlu1 %1523 }
 0x44a   :  { %3318 = vmatmul.mubr.msk.f32.gmra.mrb[20].mxu0 %vm817_vm4, %v1524_v11  ;;  %v3680_v2 = vunpack.i.h.bf16 %v3678_v46  ;;  %v3679_v0 = vunpack.i.l.bf16 %v3678_v46 }
 0x44b   :  { %3546 = vmatpush3.bf16.xpose.msk.msra.mxu0 %vm4577_vm5, %v3544_v12  ;;  %3320 = vmatprep.mubr.msk.f32.mxu0 %vm3874_vm3, %v3875_v6 }
 0x44c   :  { %3342 = vmatprep.subr.mxu0 %v3875_v6  ;;  %v3558_v27 = vpack.c.bf16 %v3680_v2, %v3679_v0 }
 0x44d   :  { %v2043_v49 = vpop.permute.xlu0 %2042  ;;  %v1813_v55 = vpop.permute.xlu1 %1812 }
 0x44e   :  { %3321 = vmatmul.mubr.msk.f32.gmra.mrb[22].mxu0 %vm817_vm4, %v1526_v13 }
 0x44f   :  { %3344 = vmatprep.mubr.msk.f32.mxu0 %vm3874_vm3, %v3875_v6 }
 0x451   :  { %v2289_v52 = vpop.permute.xlu0 %2288  ;;  %v2051_v53 = vpop.permute.xlu1 %2050 }
 0x453   :  { %3343 = vmatpush3.xpose.msk.msra.mxu0 %vm817_vm4, %v1813_v55 }
 0x454   :  { %3550 = vmatprep.subr.bf16.mxu0 %v3873_v50 }
 0x455   :  { %v2281_v54 = vpop.permute.xlu0 %2280  ;;  %v2041_v16 = vpop.permute.xlu1 %2040 }
 0x456   :  { %3345 = vmatmul.mubr.msk.f32.vlgmr.msra.gmra.mrb[24].mxu0 %vm817_vm4, %v4541_v24 }
 0x457   :  { %3553 = vmatpush3.bf16.xpose.msk.msra.mxu0 %vm4577_vm5, %v3551_v15  ;;  %3347 = vmatprep.mubr.msk.f32.mxu0 %vm3874_vm3, %v3875_v6 }
 0x458   :  { %3372 = vmatprep.subr.mxu0 %v3875_v6 }
 0x459   :  { %v3683_v58 = vpop.permute.xlu0 %3682  ;;  %v2045_v17 = vpop.permute.xlu1 %2044 }
 0x45a   :  { %v3685_v60 = vunpack.i.h.bf16 %v3683_v58  ;;  %v3684_v61 = vunpack.i.l.bf16 %v3683_v58  ;;  %3348 = vmatmul.mubr.msk.f32.gmra.mrb[26].mxu0 %vm817_vm4, %v4543_v47 }
 0x45b   :  { %3350 = vmatprep.mubr.msk.f32.mxu0 %vm3874_vm3, %v3875_v6 }
 0x45c   :  { %v3520_v38 = vpack.c.bf16 %v3685_v60, %v3684_v61 }
 0x45d   :  { %v2279_v4 = vpop.permute.xlu1 %2278 }
 0x45e   :  { %3351 = vmatmul.mubr.msk.f32.gmra.mrb[28].mxu0 %vm817_vm4, %v4557_v10  ;;  %3521 = vmatpush3.bf16.msra.mxu1 %v3520_v38 }
 0x45f   :  { %3373 = vmatpush3.xpose.msk.msra.mxu0 %vm817_vm4, %v2051_v53  ;;  %3374 = vmatprep.mubr.msk.f32.mxu0 %vm3874_vm3, %v3875_v6 }
 0x460   :  { %3557 = vmatprep.subr.bf16.mxu0 %v3873_v50  ;;  %3237 = vmatprep.subr.mxu1 %v3875_v6 }
 0x461   :  { %v2283_v28 = vpop.permute.xlu1 %2282 }
 0x462   :  { %3375 = vmatmul.mubr.msk.f32.vlgmr.msra.gmra.mrb[30].mxu0 %vm817_vm4, %v2041_v16 }
 0x463   :  { %3560 = vmatpush3.bf16.xpose.msk.msra.mxu0 %vm4577_vm5, %v3558_v27  ;;  %3377 = vmatprep.mubr.msk.f32.mxu0 %vm3874_vm3, %v3875_v6 }
 0x464   :  { %3402 = vmatprep.subr.mxu0 %v3875_v6 }
 0x465   :  { %v952_v45 = vpop.permute.xlu1 %951 }
 0x466   :  { %3378 = vmatmul.mubr.msk.f32.gmra.mrb[32].mxu0 %vm817_vm4, %v2043_v49  ;;  %3238 = vmatpush3.msra.mxu1 %v952_v45 }
 0x467   :  { %3380 = vmatprep.mubr.msk.f32.mxu0 %vm3874_vm3, %v3875_v6  ;;  %3526 = vmatprep.subr.bf16.mxu1 %v3873_v50 }
 0x46a   :  { %3381 = vmatmul.mubr.msk.f32.gmra.mrb[34].mxu0 %vm817_vm4, %v2045_v17 }
 0x46b   :  { %3403 = vmatpush3.xpose.msk.msra.mxu0 %vm817_vm4, %v2289_v52  ;;  %3404 = vmatprep.mubr.msk.f32.mxu0 %vm3874_vm3, %v3875_v6 }
 0x46c   :  { %3564 = vmatprep.subr.bf16.mxu0 %v3873_v50 }
 0x46e   :  { %3405 = vmatmul.mubr.msk.f32.vlgmr.msra.gmra.mrb[36].mxu0 %vm817_vm4, %v2279_v4 }
 0x46f   :  { %3407 = vmatprep.mubr.msk.f32.mxu0 %vm3874_vm3, %v3875_v6 }
 0x472   :  { %3408 = vmatmul.mubr.msk.f32.gmra.mrb[38].mxu0 %vm817_vm4, %v2281_v54 }
 0x473   :  { %3410 = vmatprep.mubr.msk.f32.mxu0 %vm3874_vm3, %v3875_v6 }
 0x476   :  { %3411 = vmatmul.mubr.msk.f32.gmra.mrb[40].mxu0 %vm817_vm4, %v2283_v28 }
 0x477   :  { %3434 = vmatprep.mubr.msk.f32.mxu0 %vm3874_vm3, %v3875_v6 }
 0x4ca   :  { %v896_v34 = vpop.f32.mrb[6].mxu1 }
 0x4cb   :  { %v4705_v51 = vmul.f32 0.35355338, %v896_v34  ;;  %v3226_v25 = vpop.f32.mrb[7].mxu1 }
 0x4cd   :  { %v914_v21 = vsel %vm913_vm6, %v4705_v51, -inf }
 0x4ce   :  { %v1135_v56 = vpop.f32.mrb[6].mxu0  ;;  %915 = vmax.xlane.f32.xlu0 %v914_v21  ;;  %v901_v57 = vpop.f32.mrb[8].mxu1 }
 0x4cf   :  { %v4709_v18 = vmul.f32 0.35355338, %v1135_v56  ;;  %v4711_v19 = vmul.f32 0.35355338, %v901_v57  ;;  %v3229_v23 = vpop.f32.mrb[9].mxu1  ;;  %v3256_v20 = vpop.f32.mrb[7].mxu0 }
 0x4d1   :  { %v1152_v31 = vsel %vm913_vm6, %v4709_v18, -inf  ;;  %v917_v30 = vsel %vm913_vm6, %v4711_v19, -inf }
 0x4d2   :  { %v1140_v26 = vpop.f32.mrb[8].mxu0  ;;  %1153 = vmax.xlane.f32.xlu0 %v1152_v31  ;;  %918 = vmax.xlane.f32.xlu1 %v917_v30  ;;  %v906_v62 = vpop.f32.mrb[10].mxu1 }
 0x4d3   :  { %v4717_v29 = vmul.f32 0.35355338, %v1140_v26  ;;  %v3232_v32 = vpop.f32.mrb[11].mxu1  ;;  %v3259_v33 = vpop.f32.mrb[9].mxu0  ;;  %v4719_v7 = vmul.f32 0.35355338, %v906_v62 }
 0x4d5   :  { %v1155_v3 = vsel %vm913_vm6, %v4717_v29, -inf  ;;  %v920_v37 = vsel %vm913_vm6, %v4719_v7, -inf }
 0x4d6   :  { %v1145_v35 = vpop.f32.mrb[10].mxu0  ;;  %1156 = vmax.xlane.f32.xlu0 %v1155_v3 }
 0x4d7   :  { %v4723_v36 = vmul.f32 0.35355338, %v1145_v35  ;;  %v3262_v5 = vpop.f32.mrb[11].mxu0 }
 0x4d9   :  { %v1158_v63 = vsel %vm913_vm6, %v4723_v36, -inf }
 0x4da   :  { %v1373_v39 = vpop.f32.mrb[12].mxu0  ;;  %1159 = vmax.xlane.f32.xlu1 %v1158_v63  ;;  %921 = vmax.xlane.f32.xlu0 %v920_v37 }
 0x4db   :  { %v4729_v40 = vmul.f32 0.35355338, %v1373_v39  ;;  %v3286_v8 = vpop.f32.mrb[13].mxu0 }
 0x4dd   :  { %v1390_v41 = vsel %vm913_vm6, %v4729_v40, -inf }
 0x4de   :  { %v1378_v42 = vpop.f32.mrb[14].mxu0  ;;  %1391 = vmax.xlane.f32.xlu0 %v1390_v41 }
 0x4df   :  { %v4733_v13 = vmul.f32 0.35355338, %v1378_v42  ;;  %v3289_v44 = vpop.f32.mrb[15].mxu0 }
 0x4e1   :  { %v1393_v22 = vsel %vm913_vm6, %v4733_v13, -inf }
 0x4e2   :  { %v1383_v9 = vpop.f32.mrb[16].mxu0  ;;  %1394 = vmax.xlane.f32.xlu1 %v1393_v22 }
 0x4e3   :  { %v3292_v48 = vpop.f32.mrb[17].mxu0  ;;  %v4747_v49 = vmul.f32 0.35355338, %v1383_v9 }
 0x4e5   :  { %v1396_v43 = vsel %vm913_vm6, %v4747_v49, -inf }
 0x4e6   :  { %v1611_v12 = vpop.f32.mrb[18].mxu0 }
 0x4e7   :  { %v3316_v46 = vpop.f32.mrb[19].mxu0  ;;  %v4745_v11 = vmul.f32 0.35355338, %v1611_v12  ;;  %v4795_v12 = vpop.permute.xlu0 %1189 }
 0x4e9   :  { %v1628_v55 = vsel %vm913_vm6, %v4745_v11, -inf }
 0x4f3   :  { %3702 = vrot.lane.b32.xlu1 %v4547_v59, %s3871_s7 }
 0x4f4   :  { %1946 = vrot.lane.b32.xlu0 %v4557_v10, %s3871_s7 }
 0x4f8   :  { %3707 = vrot.lane.b32.xlu0 %v4547_v59, %s3882_s17 }
 0x4fc   :  { %2184 = vrot.lane.b32.xlu0 %v4557_v10, %s3882_s17 }
 0x517   :  { %1629 = vmax.xlane.f32.xlu1 %v1628_v55  ;;  %v4799_v55 = vpop.permute.xlu1 %3687 }
 0x51b   :  { %1397 = vmax.xlane.f32.xlu0 %v1396_v43  ;;  %v4801_v43 = vpop.permute.xlu0 %1427 }
 0x51d   :  { %v1616_v1 = vpop.f32.mrb[20].mxu0 }
 0x51e   :  { %v4753_v52 = vmul.f32 0.35355338, %v1616_v1  ;;  %v3319_v53 = vpop.f32.mrb[21].mxu0  ;;  %v4803_v1 = vpop.permute.xlu1 %3692 }
 0x51f   :  { %v4805_v53 = vpop.permute.xlu0 %1665 }
 0x520   :  { %v1631_v15 = vsel %vm913_vm6, %v4753_v52, -inf }
 0x521   :  { %v1621_v54 = vpop.f32.mrb[22].mxu0  ;;  %1632 = vmax.xlane.f32.xlu0 %v1631_v15 }
 0x522   :  { %v4757_v16 = vmul.f32 0.35355338, %v1621_v54  ;;  %v3322_v58 = vpop.f32.mrb[23].mxu0  ;;  %v4807_v15 = vpop.permute.xlu1 %3697 }
 0x524   :  { %v1634_v17 = vsel %vm913_vm6, %v4757_v16, -inf }
 0x525   :  { %1635 = vmax.xlane.f32.xlu1 %v1634_v17 }
 0x529   :  { %v1892_v60 = vpop.f32.mrb[24].mxu0 }
 0x52a   :  { %v4761_v61 = vmul.f32 0.35355338, %v1892_v60  ;;  %v3346_v38 = vpop.f32.mrb[25].mxu0 }
 0x52c   :  { %v1909_v2 = vsel %vm913_vm6, %v4761_v61, -inf }
 0x52d   :  { %v1897_v0 = vpop.f32.mrb[26].mxu0  ;;  %1910 = vmax.xlane.f32.xlu0 %v1909_v2 }
 0x52e   :  { %v4765_v4 = vmul.f32 0.35355338, %v1897_v0  ;;  %v3349_v27 = vpop.f32.mrb[27].mxu0 }
 0x530   :  { %v1912_v28 = vsel %vm913_vm6, %v4765_v4, -inf }
 0x531   :  { %v1902_v45 = vpop.f32.mrb[28].mxu0  ;;  %1913 = vmax.xlane.f32.xlu1 %v1912_v28 }
 0x532   :  { %v4769_v34 = vmul.f32 0.35355338, %v1902_v45  ;;  %v3352_v25 = vpop.f32.mrb[29].mxu0 }
 0x534   :  { %v1915_v21 = vsel %vm913_vm6, %v4769_v34, -inf }
 0x535   :  { %v2130_v56 = vpop.f32.mrb[30].mxu0  ;;  %1916 = vmax.xlane.f32.xlu0 %v1915_v21 }
 0x536   :  { %v4773_v57 = vmul.f32 0.35355338, %v2130_v56  ;;  %v3376_v23 = vpop.f32.mrb[31].mxu0 }
 0x538   :  { %v2147_v20 = vsel %vm913_vm6, %v4773_v57, -inf }
 0x539   :  { %v2135_v31 = vpop.f32.mrb[32].mxu0  ;;  %2148 = vmax.xlane.f32.xlu1 %v2147_v20 }
 0x53a   :  { %v4777_v30 = vmul.f32 0.35355338, %v2135_v31  ;;  %v3379_v26 = vpop.f32.mrb[33].mxu0 }
 0x53c   :  { %v2150_v62 = vsel %vm913_vm6, %v4777_v30, -inf }
 0x53d   :  { %v2140_v32 = vpop.f32.mrb[34].mxu0  ;;  %2151 = vmax.xlane.f32.xlu0 %v2150_v62 }
 0x53e   :  { %v4781_v33 = vmul.f32 0.35355338, %v2140_v32  ;;  %v3382_v3 = vpop.f32.mrb[35].mxu0 }
 0x540   :  { %v2153_v35 = vsel %vm913_vm6, %v4781_v33, -inf }
 0x541   :  { %v2368_v5 = vpop.f32.mrb[36].mxu0  ;;  %2154 = vmax.xlane.f32.xlu1 %v2153_v35 }
 0x542   :  { %v4785_v63 = vmul.f32 0.35355338, %v2368_v5  ;;  %v3406_v37 = vpop.f32.mrb[37].mxu0 }
 0x544   :  { %v2385_v39 = vsel %vm913_vm6, %v4785_v63, -inf }
 0x545   :  { %v2373_v8 = vpop.f32.mrb[38].mxu0  ;;  %2386 = vmax.xlane.f32.xlu0 %v2385_v39 }
 0x546   :  { %v4789_v41 = vmul.f32 0.35355338, %v2373_v8  ;;  %v3409_v42 = vpop.f32.mrb[39].mxu0 }
 0x548   :  { %v2388_v44 = vsel %vm913_vm6, %v4789_v41, -inf }
 0x549   :  { %v2378_v22 = vpop.f32.mrb[40].mxu0  ;;  %2389 = vmax.xlane.f32.xlu1 %v2388_v44 }
 0x54a   :  { %v4793_v9 = vmul.f32 0.35355338, %v2378_v22  ;;  %v3412_v48 = vpop.f32.mrb[41].mxu0 }
 0x54c   :  { %v2391_v46 = vsel %vm913_vm6, %v4793_v9, -inf }
 0x54d   :  { %2392 = vmax.xlane.f32.xlu0 %v2391_v46 }
 0x55b   :  { %v916_v54 = vpop.xlane.xlu0 %915 }
 0x55c   :  { %v923_v58 = vsub.f32 %v4705_v51, %v916_v54 }
 0x55e   :  { %v926_v17 = vmul.f32 1.442695, %v923_v58 }
 0x55f   :  { %v1154_v60 = vpop.xlane.xlu0 %1153  ;;  %v919_v38 = vpop.xlane.xlu1 %918 }
 0x560   :  { %3774 = vpow2.f32 %v926_v17  ;;  %v1161_v2 = vsub.f32 %v4709_v18, %v1154_v60  ;;  %v924_v0 = vsub.f32 %v4711_v19, %v919_v38 }
 0x562   :  { %v1164_v27 = vmul.f32 1.442695, %v1161_v2  ;;  %v928_v28 = vmul.f32 1.442695, %v924_v0 }
 0x563   :  { %v1157_v45 = vpop.xlane.xlu0 %1156 }
 0x564   :  { %3776 = vpow2.f32 %v1164_v27  ;;  %v1162_v25 = vsub.f32 %v4717_v29, %v1157_v45 }
 0x565   :  { %3778 = vpow2.f32 %v928_v28 }
 0x566   :  { %v1166_v21 = vmul.f32 1.442695, %v1162_v25 }
 0x567   :  { %v1160_v56 = vpop.xlane.xlu1 %1159  ;;  %v922_v23 = vpop.xlane.xlu0 %921 }
 0x568   :  { %3780 = vpow2.f32 %v1166_v21  ;;  %v1163_v51 = vsub.f32 %v4723_v36, %v1160_v56  ;;  %v925_v20 = vsub.f32 %v4719_v7, %v922_v23 }
 0x56a   :  { %v4815_v31 = vpop.eup %3774  ;;  %v930_v18 = vmul.f32 1.442695, %v925_v20  ;;  %v1168_v26 = vmul.f32 1.442695, %v1163_v51 }
 0x56b   :  { %v1392_v19 = vpop.xlane.xlu0 %1391  ;;  %v932_v62 = vsel %vm913_vm6, %v4815_v31, 0.0 }
 0x56c   :  { %v1399_v32 = vsub.f32 %v4729_v40, %v1392_v19  ;;  %933 = vadd.xlane.f32.xlu1 %v932_v62  ;;  %3782 = vpow2.f32 %v930_v18 }
 0x56d   :  { %3784 = vpow2.f32 %v1168_v26 }
 0x56e   :  { %v4820_v29 = vpop.eup %3776  ;;  %v1402_v3 = vmul.f32 1.442695, %v1399_v32 }
 0x56f   :  { %v1395_v35 = vpop.xlane.xlu1 %1394  ;;  %v1170_v7 = vsel %vm913_vm6, %v4820_v29, 0.0  ;;  %v4824_v36 = vpop.eup %3778 }
 0x570   :  { %v1400_v5 = vsub.f32 %v4733_v13, %v1395_v35  ;;  %1171 = vadd.xlane.f32.xlu0 %v1170_v7  ;;  %3786 = vpow2.f32 %v1402_v3  ;;  %v935_v8 = vsel %vm913_vm6, %v4824_v36, 0.0  ;;  %v4849_v17 = vpop.permute.xlu0 %1946 }
 0x572   :  { %v4827_v37 = vpop.eup %3780  ;;  %v1404_v39 = vmul.f32 1.442695, %v1400_v5 }
 0x573   :  { %v1173_v40 = vsel %vm913_vm6, %v4827_v37, 0.0  ;;  %v4853_v38 = vpop.permute.xlu1 %3702 }
 0x574   :  { %3788 = vpow2.f32 %v1404_v39  ;;  %1174 = vadd.xlane.f32.xlu1 %v1173_v40  ;;  %936 = vadd.xlane.f32.xlu0 %v935_v8  ;;  %v4851_v60 = vpop.permute.xlu0 %3707 }
 0x576   :  { %v4833_v42 = vpop.eup %3782 }
 0x577   :  { %v938_v44 = vsel %vm913_vm6, %v4833_v42, 0.0  ;;  %v4837_v13 = vpop.eup %3784 }
 0x578   :  { %939 = vadd.xlane.f32.xlu1 %v938_v44  ;;  %v1176_v22 = vsel %vm913_vm6, %v4837_v13, 0.0  ;;  %v4855_v2 = vpop.permute.xlu0 %2184 }
 0x57a   :  { %v4841_v48 = vpop.eup %3786 }
 0x57b   :  { %v1408_v58 = vsel %vm913_vm6, %v4841_v48, 0.0 }
 0x57c   :  { %1177 = vadd.xlane.f32.xlu1 %v1176_v22 }
 0x57e   :  { %v4843_v46 = vpop.eup %3788 }
 0x57f   :  { %v1411_v54 = vsel %vm913_vm6, %v4843_v46, 0.0 }
 0x580   :  { %1412 = vadd.xlane.f32.xlu0 %v1411_v54  ;;  %1409 = vadd.xlane.f32.xlu1 %v1408_v58 }
 0x5a4   :  { %v1630_v0 = vpop.xlane.xlu1 %1629 }
 0x5a5   :  { %v1637_v27 = vsub.f32 %v4745_v11, %v1630_v0 }
 0x5a7   :  { %v1640_v28 = vmul.f32 1.442695, %v1637_v27 }
 0x5a8   :  { %v1398_v45 = vpop.xlane.xlu0 %1397 }
 0x5a9   :  { %3790 = vpow2.f32 %v1640_v28  ;;  %v1401_v25 = vsub.f32 %v4747_v49, %v1398_v45 }
 0x5ab   :  { %v1406_v21 = vmul.f32 1.442695, %v1401_v25 }
 0x5ad   :  { %3792 = vpow2.f32 %v1406_v21 }
 0x5ae   :  { %v1633_v56 = vpop.xlane.xlu0 %1632 }
 0x5af   :  { %v1638_v23 = vsub.f32 %v4753_v52, %v1633_v56 }
 0x5b1   :  { %v1642_v51 = vmul.f32 1.442695, %v1638_v23 }
 0x5b2   :  { %v1636_v52 = vpop.xlane.xlu1 %1635 }
 0x5b3   :  { %v4860_v20 = vpop.eup %3790  ;;  %3794 = vpow2.f32 %v1642_v51  ;;  %v1639_v32 = vsub.f32 %v4757_v16, %v1636_v52 }
 0x5b4   :  { %v1646_v18 = vsel %vm913_vm6, %v4860_v20, 0.0 }
 0x5b5   :  { %1647 = vadd.xlane.f32.xlu0 %v1646_v18  ;;  %v1644_v35 = vmul.f32 1.442695, %v1639_v32 }
 0x5b7   :  { %v4864_v26 = vpop.eup %3792  ;;  %3796 = vpow2.f32 %v1644_v35 }
 0x5b8   :  { %v1414_v11 = vsel %vm913_vm6, %v4864_v26, 0.0 }
 0x5b9   :  { %1415 = vadd.xlane.f32.xlu1 %v1414_v11 }
 0x5ba   :  { %v1911_v62 = vpop.xlane.xlu0 %1910 }
 0x5bb   :  { %v1918_v39 = vsub.f32 %v4761_v61, %v1911_v62 }
 0x5bd   :  { %v4868_v49 = vpop.eup %3794  ;;  %v1921_v8 = vmul.f32 1.442695, %v1918_v39 }
 0x5be   :  { %v1649_v19 = vsel %vm913_vm6, %v4868_v49, 0.0  ;;  %v1914_v40 = vpop.xlane.xlu1 %1913 }
 0x5bf   :  { %1650 = vadd.xlane.f32.xlu1 %v1649_v19  ;;  %v1919_v44 = vsub.f32 %v4765_v4, %v1914_v40 }
 0x5c1   :  { %v4880_v54 = vpop.eup %3796  ;;  %v1923_v58 = vmul.f32 1.442695, %v1919_v44  ;;  %v3690_v44 = vunpack.i.h.bf16 %v4799_v55 }
 0x5c2   :  { %v1917_v3 = vpop.xlane.xlu0 %1916 }
 0x5c3   :  { %v1920_v7 = vsub.f32 %v4769_v34, %v1917_v3  ;;  %v1652_v34 = vsel %vm913_vm6, %v4880_v54, 0.0 }
 0x5c5   :  { %v1925_v5 = vmul.f32 1.442695, %v1920_v7 }
 0x5c6   :  { %v2149_v22 = vpop.xlane.xlu1 %2148 }
 0x5c7   :  { %3798 = vpow2.f32 %v1925_v5  ;;  %v2156_v16 = vsub.f32 %v4773_v57, %v2149_v22  ;;  %v3689_v22 = vunpack.i.l.bf16 %v4799_v55 }
 0x5c8   :  { %3800 = vpow2.f32 %v1921_v8 }
 0x5c9   :  { %3802 = vpow2.f32 %v1923_v58  ;;  %v2159_v61 = vmul.f32 1.442695, %v2156_v16 }
 0x5ca   :  { %v2152_v0 = vpop.xlane.xlu0 %2151 }
 0x5cb   :  { %3717 = vrot.lane.b32.xlu0 %v4547_v59, %s3880_s16  ;;  %v2157_v28 = vsub.f32 %v4777_v30, %v2152_v0  ;;  %3804 = vpow2.f32 %v2159_v61  ;;  %v3527_v61 = vpack.c.bf16 %v3690_v44, %v3689_v22 }
 0x5cd   :  { %v2161_v21 = vmul.f32 1.442695, %v2157_v28 }
 0x5ce   :  { %v4888_v45 = vpop.xlane.xlu1 %2154 }
 0x5cf   :  { %3806 = vpow2.f32 %v2161_v21 }
 0x5d0   :  { %3712 = vrot.lane.b32.xlu1 %v4547_v59, %s3883_s5 }
 0x5d1   :  { %v4885_v27 = vpop.eup %3798 }
 0x5d2   :  { %v2387_v4 = vpop.xlane.xlu0 %2386  ;;  %v1933_v25 = vsel %vm913_vm6, %v4885_v27, 0.0  ;;  %v4893_v23 = vpop.eup %3800 }
 0x5d3   :  { %v2394_v57 = vsub.f32 %v4785_v63, %v2387_v4  ;;  %v1927_v11 = vsel %vm913_vm6, %v4893_v23, 0.0  ;;  %v4898_v19 = vpop.eup %3802 }
 0x5d4   :  { %v1930_v63 = vsel %vm913_vm6, %v4898_v19, 0.0 }
 0x5d5   :  { %v2397_v18 = vmul.f32 1.442695, %v2394_v57  ;;  %v4903_v32 = vpop.eup %3804 }
 0x5d6   :  { %v2390_v56 = vpop.xlane.xlu1 %2389  ;;  %v2165_v35 = vsel %vm913_vm6, %v4903_v32, 0.0 }
 0x5d7   :  { %v2395_v51 = vsub.f32 %v4789_v41, %v2390_v56  ;;  %3808 = vpow2.f32 %v2397_v18 }
 0x5d9   :  { %v2399_v52 = vmul.f32 1.442695, %v2395_v51  ;;  %v4907_v7 = vpop.eup %3806 }
 0x5da   :  { %v2393_v30 = vpop.xlane.xlu0 %2392 }
 0x5db   :  { %v2396_v62 = vsub.f32 %v4793_v9, %v2393_v30  ;;  %3810 = vpow2.f32 %v2399_v52  ;;  %v2168_v9 = vsel %vm913_vm6, %v4907_v7, 0.0 }
 0x5dd   :  { %v2401_v3 = vmul.f32 1.442695, %v2396_v62 }
 0x5e1   :  { %v4911_v39 = vpop.eup %3808 }
 0x5e2   :  { %v2403_v16 = vsel %vm913_vm6, %v4911_v39, 0.0 }
 0x5e5   :  { %v4915_v58 = vpop.eup %3810 }
 0x5e6   :  { %v2406_v55 = vsel %vm913_vm6, %v4915_v58, 0.0 }
 0x5ea   :  { %1653 = vadd.xlane.f32.xlu0 %v1652_v34 }
 0x5ee   :  { %1934 = vadd.xlane.f32.xlu0 %v1933_v25  ;;  %v2158_v25 = vsub.f32 %v4781_v33, %v4888_v45 }
 0x5f0   :  { %v2163_v51 = vmul.f32 1.442695, %v2158_v25 }
 0x5f4   :  { %1928 = vadd.xlane.f32.xlu1 %v1927_v11  ;;  %v3694_v11 = vunpack.i.l.bf16 %v4803_v1 }
 0x5f8   :  { %1931 = vadd.xlane.f32.xlu1 %v1930_v63 }
 0x5f9   :  { %v934_v41 = vpop.xlane.xlu1 %933 }
 0x5fa   :  { %3812 = vrcp.f32 %v934_v41 }
 0x5fb   :  { %3814 = vpow2.f32 %v2401_v3 }
 0x5fc   :  { %2166 = vadd.xlane.f32.xlu1 %v2165_v35  ;;  %v3699_v35 = vunpack.i.l.bf16 %v4807_v15 }
 0x5fd   :  { %v1172_v5 = vpop.xlane.xlu0 %1171 }
 0x600   :  { %2169 = vadd.xlane.f32.xlu1 %v2168_v9 }
 0x601   :  { %v1175_v40 = vpop.xlane.xlu1 %1174  ;;  %v937_v8 = vpop.xlane.xlu0 %936 }
 0x602   :  { %3816 = vrcp.f32 %v937_v8 }
 0x604   :  { %v3813_v0 = vpop.eup %3812  ;;  %2422 = vrot.lane.b32.xlu0 %v4557_v10, %s3883_s5  ;;  %2404 = vadd.xlane.f32.xlu1 %v2403_v16 }
 0x605   :  { %v944_v34 = vmul.f32 %v3813_v0, %v4815_v31  ;;  %v940_v28 = vpop.xlane.xlu1 %939  ;;  %v4925_v4 = vpop.eup %3814  ;;  %v3705_v0 = vunpack.i.h.bf16 %v4853_v38 }
 0x606   :  { %3818 = vrcp.f32 %v940_v28  ;;  %v2409_v31 = vsel %vm913_vm6, %v4925_v4, 0.0 }
 0x607   :  { %3240 = vmatmul.mubr.msk.f32.vlgmr.msra.gmra.mrb[12].mxu1 %vm913_vm6, %v944_v34  ;;  %3820 = vrcp.f32 %v1172_v5  ;;  %v3704_v34 = vunpack.i.l.bf16 %v4853_v38 }
 0x608   :  { %3528 = vmatpush3.bf16.msra.mxu1 %v3527_v61  ;;  %2407 = vadd.xlane.f32.xlu1 %v2406_v55  ;;  %3822 = vrcp.f32 %v1175_v40 }
 0x609   :  { %3267 = vmatprep.subr.mxu1 %v3875_v6  ;;  %3242 = vmatprep.mubr.msk.f32.mxu1 %vm3874_vm3, %v3875_v6  ;;  %v1178_v21 = vpop.xlane.xlu1 %1177  ;;  %v3548_v55 = vpack.c.bf16 %v3705_v0, %v3704_v34 }
 0x60a   :  { %3824 = vrcp.f32 %v1178_v21 }
 0x60b   :  { %3826 = vpow2.f32 %v2163_v51  ;;  %v3709_v51 = vunpack.i.l.bf16 %v4851_v60 }
 0x60c   :  { %3268 = vmatpush3.msra.mxu1 %v4795_v12  ;;  %2410 = vadd.xlane.f32.xlu1 %v2409_v31  ;;  %v3817_v57 = vpop.eup %3816  ;;  %v3695_v12 = vunpack.i.h.bf16 %v4803_v1 }
 0x60d   :  { %3533 = vmatprep.subr.bf16.mxu1 %v3873_v50  ;;  %v945_v56 = vmul.f32 %v3817_v57, %v4824_v36  ;;  %v1410_v30 = vpop.xlane.xlu1 %1409  ;;  %v1413_v52 = vpop.xlane.xlu0 %1412 }
 0x60e   :  { %3828 = vrcp.f32 %v1410_v30  ;;  %v3534_v63 = vpack.c.bf16 %v3695_v12, %v3694_v11 }
 0x60f   :  { %3243 = vmatmul.mubr.msk.f32.gmra.mrb[14].mxu1 %vm913_vm6, %v945_v56  ;;  %3830 = vrcp.f32 %v1413_v52  ;;  %v3710_v56 = vunpack.i.h.bf16 %v4851_v60 }
 0x610   :  { %v3819_v18 = vpop.eup %3818  ;;  %3245 = vmatprep.mubr.msk.f32.mxu1 %vm3874_vm3, %v3875_v6 }
 0x611   :  { %v946_v33 = vmul.f32 %v3819_v18, %v4833_v42  ;;  %v3821_v45 = vpop.eup %3820 }
 0x612   :  { %v1182_v36 = vmul.f32 %v3821_v45, %v4820_v29  ;;  %v3823_v62 = vpop.eup %3822 }
 0x613   :  { %3246 = vmatmul.mubr.msk.f32.gmra.mrb[16].mxu1 %vm913_vm6, %v946_v33  ;;  %v1183_v1 = vmul.f32 %v3823_v62, %v4827_v37  ;;  %v3700_v37 = vunpack.i.h.bf16 %v4807_v15 }
 0x614   :  { %3269 = vmatprep.mubr.msk.f32.mxu1 %vm3874_vm3, %v3875_v6  ;;  %v3825_v42 = vpop.eup %3824 }
 0x615   :  { %v4956_v29 = vpop.eup %3826  ;;  %v1184_v41 = vmul.f32 %v3825_v42, %v4837_v13  ;;  %v3541_v9 = vpack.c.bf16 %v3700_v37, %v3699_v35 }
 0x617   :  { %3270 = vmatmul.mubr.msk.f32.vlgmr.msra.gmra.mrb[18].mxu1 %vm913_vm6, %v1182_v36 }
 0x618   :  { %3535 = vmatpush3.bf16.msra.mxu1 %v3534_v63  ;;  %3272 = vmatprep.mubr.msk.f32.mxu1 %vm3874_vm3, %v3875_v6  ;;  %v3829_v3 = vpop.eup %3828 }
 0x619   :  { %3297 = vmatprep.subr.mxu1 %v3875_v6  ;;  %v3831_v5 = vpop.eup %3830 }
 0x61a   :  { %v1421_v15 = vmul.f32 %v3831_v5, %v4843_v46 }
 0x61b   :  { %3273 = vmatmul.mubr.msk.f32.gmra.mrb[20].mxu1 %vm913_vm6, %v1183_v1 }
 0x61c   :  { %3298 = vmatpush3.msra.mxu1 %v4801_v43  ;;  %3275 = vmatprep.mubr.msk.f32.mxu1 %vm3874_vm3, %v3875_v6  ;;  %v2171_v43 = vsel %vm913_vm6, %v4956_v29, 0.0 }
 0x61d   :  { %2518 = vrot.lane.b32.xlu1 %v4543_v47, %s3881_s1  ;;  %3540 = vmatprep.subr.bf16.mxu1 %v3873_v50  ;;  %v1420_v47 = vmul.f32 %v3829_v3, %v4841_v48 }
 0x61f   :  { %3276 = vmatmul.mubr.msk.f32.gmra.mrb[22].mxu1 %vm913_vm6, %v1184_v41 }
 0x620   :  { %3299 = vmatprep.mubr.msk.f32.mxu1 %vm3874_vm3, %v3875_v6 }
 0x623   :  { %2172 = vadd.xlane.f32.xlu0 %v2171_v43  ;;  %3300 = vmatmul.mubr.msk.f32.vlgmr.msra.gmra.mrb[24].mxu1 %vm913_vm6, %v1420_v47 }
 0x624   :  { %3542 = vmatpush3.bf16.msra.mxu1 %v3541_v9  ;;  %3302 = vmatprep.mubr.msk.f32.mxu1 %vm3874_vm3, %v3875_v6 }
 0x625   :  { %3327 = vmatprep.subr.mxu1 %v3875_v6 }
 0x627   :  { %3303 = vmatmul.mubr.msk.f32.gmra.mrb[26].mxu1 %vm913_vm6, %v1421_v15 }
 0x628   :  { %3328 = vmatpush3.msra.mxu1 %v4805_v53  ;;  %3305 = vmatprep.mubr.msk.f32.mxu1 %vm3874_vm3, %v3875_v6 }
 0x629   :  { %3547 = vmatprep.subr.bf16.mxu1 %v3873_v50 }
 0x639   :  { %2526 = vrot.lane.b32.xlu0 %v4557_v10, %s3880_s16 }
 0x63d   :  { %2516 = vrot.lane.b32.xlu0 %v4541_v24, %s3881_s1 }
 0x641   :  { %2520 = vrot.lane.b32.xlu0 %v4557_v10, %s3881_s1 }
 0x642   :  { %v1648_v13 = vpop.xlane.xlu0 %1647 }
 0x646   :  { %v1416_v48 = vpop.xlane.xlu1 %1415  ;;  %v3718_v46 = vpop.permute.xlu0 %3717 }
 0x647   :  { %3832 = vrcp.f32 %v1416_v48  ;;  %v3720_v40 = vunpack.i.h.bf16 %v3718_v46  ;;  %v3719_v53 = vunpack.i.l.bf16 %v3718_v46 }
 0x648   :  { %3834 = vrcp.f32 %v1648_v13 }
 0x649   :  { %v4986_v8 = vpack.c.bf16 %v3720_v40, %v3719_v53 }
 0x64b   :  { %3567 = vmatpush3.bf16.xpose.msk.msra.mxu0 %vm4577_vm5, %v4986_v8 }
 0x64c   :  { %v1651_v44 = vpop.xlane.xlu1 %1650  ;;  %3432 = vmatprep.subr.mxu0 %v3875_v6 }
 0x64d   :  { %3836 = vrcp.f32 %v1651_v44 }
 0x651   :  { %v3833_v24 = vpop.eup %3832 }
 0x652   :  { %v1422_v22 = vmul.f32 %v3833_v24, %v4864_v26  ;;  %v3835_v16 = vpop.eup %3834 }
 0x653   :  { %v1658_v61 = vmul.f32 %v3835_v16, %v4860_v20  ;;  %v3713_v20 = vpop.permute.xlu1 %3712 }
 0x654   :  { %3306 = vmatmul.mubr.msk.f32.gmra.mrb[28].mxu1 %vm913_vm6, %v1422_v22  ;;  %v3715_v36 = vunpack.i.h.bf16 %v3713_v20  ;;  %v3714_v52 = vunpack.i.l.bf16 %v3713_v20 }
 0x655   :  { %3329 = vmatprep.mubr.msk.f32.mxu1 %vm3874_vm3, %v3875_v6 }
 0x656   :  { %v3562_v63 = vpack.c.bf16 %v3715_v36, %v3714_v52 }
 0x657   :  { %v3837_v28 = vpop.eup %3836 }
 0x658   :  { %3330 = vmatmul.mubr.msk.f32.vlgmr.msra.gmra.mrb[30].mxu1 %vm913_vm6, %v1658_v61  ;;  %v1659_v31 = vmul.f32 %v3837_v28, %v4868_v49 }
 0x659   :  { %3549 = vmatpush3.bf16.msra.mxu1 %v3548_v55  ;;  %3332 = vmatprep.mubr.msk.f32.mxu1 %vm3874_vm3, %v3875_v6 }
 0x65a   :  { %3357 = vmatprep.subr.mxu1 %v3875_v6 }
 0x65c   :  { %3333 = vmatmul.mubr.msk.f32.gmra.mrb[32].mxu1 %vm913_vm6, %v1659_v31 }
 0x65d   :  { %3358 = vmatpush3.msra.mxu1 %v4849_v17  ;;  %3335 = vmatprep.mubr.msk.f32.mxu1 %vm3874_vm3, %v3875_v6 }
 0x65e   :  { %3554 = vmatprep.subr.bf16.mxu1 %v3873_v50 }
 0x677   :  { %v1654_v38 = vpop.xlane.xlu0 %1653 }
 0x678   :  { %3838 = vrcp.f32 %v1654_v38 }
 0x67b   :  { %v1935_v21 = vpop.xlane.xlu0 %1934 }
 0x681   :  { %v1929_v26 = vpop.xlane.xlu1 %1928 }
 0x682   :  { %v3839_v49 = vpop.eup %3838  ;;  %3840 = vrcp.f32 %v1929_v26 }
 0x683   :  { %v1660_v25 = vmul.f32 %v3839_v49, %v4880_v54  ;;  %v3555_v54 = vpack.c.bf16 %v3710_v56, %v3709_v51 }
 0x685   :  { %3336 = vmatmul.mubr.msk.f32.gmra.mrb[34].mxu1 %vm913_vm6, %v1660_v25  ;;  %v1932_v57 = vpop.xlane.xlu1 %1931 }
 0x686   :  { %3842 = vrcp.f32 %v1932_v57  ;;  %3359 = vmatprep.mubr.msk.f32.mxu1 %vm3874_vm3, %v3875_v6 }
 0x687   :  { %3844 = vrcp.f32 %v1935_v21 }
 0x689   :  { %v2167_v17 = vpop.xlane.xlu1 %2166 }
 0x68a   :  { %3846 = vrcp.f32 %v2167_v17 }
 0x68c   :  { %v3841_v18 = vpop.eup %3840 }
 0x68d   :  { %v1939_v30 = vmul.f32 %v3841_v18, %v4893_v23  ;;  %v2170_v33 = vpop.xlane.xlu1 %2169 }
 0x68e   :  { %3848 = vrcp.f32 %v2170_v33 }
 0x68f   :  { %3360 = vmatmul.mubr.msk.f32.vlgmr.msra.gmra.mrb[36].mxu1 %vm913_vm6, %v1939_v30 }
 0x690   :  { %v3843_v45 = vpop.eup %3842  ;;  %3556 = vmatpush3.bf16.msra.mxu1 %v3555_v54  ;;  %3362 = vmatprep.mubr.msk.f32.mxu1 %vm3874_vm3, %v3875_v6 }
 0x691   :  { %3387 = vmatprep.subr.mxu1 %v3875_v6  ;;  %v1940_v12 = vmul.f32 %v3843_v45, %v4898_v19  ;;  %v3845_v11 = vpop.eup %3844 }
 0x692   :  { %v1941_v60 = vmul.f32 %v3845_v11, %v4885_v27  ;;  %v2423_v27 = vpop.permute.xlu0 %2422 }
 0x693   :  { %3363 = vmatmul.mubr.msk.f32.gmra.mrb[38].mxu1 %vm913_vm6, %v1940_v12 }
 0x694   :  { %3388 = vmatpush3.msra.mxu1 %v4855_v2  ;;  %3365 = vmatprep.mubr.msk.f32.mxu1 %vm3874_vm3, %v3875_v6  ;;  %v3847_v23 = vpop.eup %3846 }
 0x695   :  { %3561 = vmatprep.subr.bf16.mxu1 %v3873_v50  ;;  %v2177_v19 = vmul.f32 %v3847_v23, %v4903_v32  ;;  %v2405_v32 = vpop.xlane.xlu1 %2404 }
 0x697   :  { %3366 = vmatmul.mubr.msk.f32.gmra.mrb[40].mxu1 %vm913_vm6, %v1941_v60 }
 0x698   :  { %3389 = vmatprep.mubr.msk.f32.mxu1 %vm3874_vm3, %v3875_v6  ;;  %v3849_v62 = vpop.eup %3848 }
 0x699   :  { %v2178_v2 = vmul.f32 %v3849_v62, %v4907_v7  ;;  %v2408_v1 = vpop.xlane.xlu1 %2407 }
 0x69b   :  { %3390 = vmatmul.mubr.msk.f32.vlgmr.msra.gmra.mrb[42].mxu1 %vm913_vm6, %v2177_v19 }
 0x69c   :  { %3563 = vmatpush3.bf16.msra.mxu1 %v3562_v63  ;;  %3392 = vmatprep.mubr.msk.f32.mxu1 %vm3874_vm3, %v3875_v6 }
 0x69d   :  { %3417 = vmatprep.subr.mxu1 %v3875_v6  ;;  %v2411_v3 = vpop.xlane.xlu1 %2410 }
 0x69f   :  { %3393 = vmatmul.mubr.msk.f32.gmra.mrb[44].mxu1 %vm913_vm6, %v2178_v2 }
 0x6a0   :  { %3418 = vmatpush3.msra.mxu1 %v2423_v27  ;;  %3395 = vmatprep.mubr.msk.f32.mxu1 %vm3874_vm3, %v3875_v6 }
 0x6a1   :  { %3579 = vmatprep.subr.bf16.mxu1 %v3873_v50  ;;  %v2519_v35 = vpop.permute.xlu1 %2518 }
 0x6b0   :  { %v2173_v42 = vpop.xlane.xlu0 %2172 }
 0x6b1   :  { %3850 = vrcp.f32 %v2173_v42 }
 0x6b2   :  { %3852 = vrcp.f32 %v2405_v32 }
 0x6b3   :  { %3854 = vrcp.f32 %v2408_v1 }
 0x6b4   :  { %v2527_v41 = vpop.permute.xlu0 %2526  ;;  %3856 = vrcp.f32 %v2411_v3 }
 0x6b5   :  { %3433 = vmatpush3.xpose.msk.msra.mxu0 %vm817_vm4, %v2527_v41 }
 0x6b8   :  { %v2517_v7 = vpop.permute.xlu0 %2516 }
 0x6b9   :  { %3435 = vmatmul.mubr.msk.f32.vlgmr.msra.gmra.mrb[42].mxu0 %vm817_vm4, %v2517_v7 }
 0x6ba   :  { %3437 = vmatprep.mubr.msk.f32.mxu0 %vm3874_vm3, %v3875_v6 }
 0x6bb   :  { %v3851_v37 = vpop.eup %3850 }
 0x6bc   :  { %v2179_v47 = vmul.f32 %v3851_v37, %v4956_v29  ;;  %v3853_v43 = vpop.eup %3852  ;;  %v2521_v14 = vpop.permute.xlu0 %2520 }
 0x6bd   :  { %3438 = vmatmul.mubr.msk.f32.gmra.mrb[44].mxu0 %vm817_vm4, %v2519_v35  ;;  %v2415_v5 = vmul.f32 %v3853_v43, %v4911_v39  ;;  %v3855_v9 = vpop.eup %3854 }
 0x6be   :  { %3396 = vmatmul.mubr.msk.f32.gmra.mrb[46].mxu1 %vm913_vm6, %v2179_v47  ;;  %v2416_v29 = vmul.f32 %v3855_v9, %v4915_v58  ;;  %v3857_v15 = vpop.eup %3856 }
 0x6bf   :  { %3419 = vmatprep.mubr.msk.f32.mxu1 %vm3874_vm3, %v3875_v6  ;;  %v2417_v39 = vmul.f32 %v3857_v15, %v4925_v4 }
 0x6c2   :  { %3420 = vmatmul.mubr.msk.f32.vlgmr.msra.gmra.mrb[48].mxu1 %vm913_vm6, %v2415_v5 }
 0x6c3   :  { %3581 = vmatpush3.bf16.xpose.msk.msra.mxu1 %vm4577_vm5, %v4986_v8  ;;  %3422 = vmatprep.mubr.msk.f32.mxu1 %vm3874_vm3, %v3875_v6 }
 0x6c4   :  { %3580 = vmatprep.subr.mxu1 %v3875_v6 }
 0x6c6   :  { %3423 = vmatmul.mubr.msk.f32.gmra.mrb[50].mxu1 %vm913_vm6, %v2416_v29 }
 0x6c7   :  { %3425 = vmatprep.mubr.msk.f32.mxu1 %vm3874_vm3, %v3875_v6 }
 0x6ca   :  { %3426 = vmatmul.mubr.msk.f32.gmra.mrb[52].mxu1 %vm913_vm6, %v2417_v39 }
 0x6cb   :  { %3582 = vmatpush3.xpose.msk.msra.mxu1 %vm817_vm4, %v2527_v41  ;;  %3440 = vmatprep.mubr.msk.f32.mxu1 %vm3874_vm3, %v3875_v6 }
 0x6cc   :  { %3568 = vmatprep.subr.bf16.mxu1 %v3873_v50 }
 0x6ce   :  { %3441 = vmatmul.mubr.msk.f32.vlgmr.msra.gmra.mrb[54].mxu1 %vm817_vm4, %v2521_v14 }
 0x6cf   :  { %3449 = vmatprep.mubr.msk.f32.mxu1 %vm3874_vm3, %v3875_v6 }
 0x6da   :  { %v5070_v58 = vpop.f32.mrb[12].mxu1 }
 0x6db   :  { %v3241_v13 = vpop.f32.mrb[13].mxu1 }
 0x6e2   :  { %v5072_v48 = vpop.f32.mrb[14].mxu1 }
 0x6e3   :  { %v3244_v4 = vpop.f32.mrb[15].mxu1 }
 0x6e6   :  { %v5074_v46 = vpop.f32.mrb[16].mxu1 }
 0x6e7   :  { %v3247_v40 = vpop.f32.mrb[17].mxu1 }
 0x6ea   :  { %v5076_v53 = vpop.f32.mrb[18].mxu1 }
 0x6eb   :  { %v3271_v8 = vpop.f32.mrb[19].mxu1 }
 0x6ee   :  { %v5078_v44 = vpop.f32.mrb[20].mxu1 }
 0x6ef   :  { %v3274_v50 = vpop.f32.mrb[21].mxu1 }
 0x6f2   :  { %v5080_v24 = vpop.f32.mrb[22].mxu1 }
 0x6f3   :  { %v3277_v22 = vpop.f32.mrb[23].mxu1 }
 0x6f6   :  { %v5082_v16 = vpop.f32.mrb[24].mxu1 }
 0x6f7   :  { %v3301_v0 = vpop.f32.mrb[25].mxu1 }
 0x6fa   :  { %v5084_v34 = vpop.f32.mrb[26].mxu1 }
 0x6fb   :  { %v3304_v61 = vpop.f32.mrb[27].mxu1 }
 0x727   :  { %v5086_v28 = vpop.f32.mrb[28].mxu1 }
 0x728   :  { %v3307_v55 = vpop.f32.mrb[29].mxu1 }
 0x729   :  { %v2800_v55 = vld [vmem:[%s5245_s11 + $0x8] sm:$0xff] }
 0x72b   :  { %v5088_v31 = vpop.f32.mrb[30].mxu1 }
 0x72c   :  { %v3331_v38 = vpop.f32.mrb[31].mxu1 }
 0x72f   :  { %v5090_v20 = vpop.f32.mrb[32].mxu1 }
 0x730   :  { %v3334_v26 = vpop.f32.mrb[33].mxu1 }
 0x758   :  { %v5092_v49 = vpop.f32.mrb[34].mxu1 }
 0x759   :  { %v3337_v25 = vpop.f32.mrb[35].mxu1 }
 0x762   :  { %v5094_v21 = vpop.f32.mrb[36].mxu1 }
 0x763   :  { %v3361_v57 = vpop.f32.mrb[37].mxu1 }
 0x766   :  { %v5096_v17 = vpop.f32.mrb[38].mxu1 }
 0x767   :  { %v3364_v56 = vpop.f32.mrb[39].mxu1 }
 0x76a   :  { %v5098_v51 = vpop.f32.mrb[40].mxu1 }
 0x76b   :  { %v3367_v18 = vpop.f32.mrb[41].mxu1 }
 0x76e   :  { %v5100_v30 = vpop.f32.mrb[42].mxu1 }
 0x76f   :  { %v3391_v33 = vpop.f32.mrb[43].mxu1 }
 0x772   :  { %v5102_v54 = vpop.f32.mrb[44].mxu1 }
 0x773   :  { %v3394_v45 = vpop.f32.mrb[45].mxu1 }
 0x78c   :  { %v2606_v12 = vpop.f32.mrb[42].mxu0 }
 0x78d   :  { %v2620_v11 = vmul.f32 0.35355338, %v2606_v12  ;;  %v3436_v60 = vpop.f32.mrb[43].mxu0 }
 0x78f   :  { %v2623_v23 = vsel %vm913_vm6, %v2620_v11, -inf }
 0x790   :  { %2624 = vmax.xlane.f32.xlu1 %v2623_v23  ;;  %v2611_v36 = vpop.f32.mrb[44].mxu0 }
 0x791   :  { %v2621_v52 = vmul.f32 0.35355338, %v2611_v36  ;;  %v5105_v19 = vpop.f32.mrb[46].mxu1  ;;  %v3439_v62 = vpop.f32.mrb[45].mxu0 }
 0x792   :  { %v3397_v63 = vpop.f32.mrb[47].mxu1 }
 0x793   :  { %v2626_v2 = vsel %vm913_vm6, %v2621_v52, -inf }
 0x794   :  { %2627 = vmax.xlane.f32.xlu0 %v2626_v2 }
 0x795   :  { %v2502_v27 = vpop.f32.mrb[48].mxu1 }
 0x796   :  { %v3421_v32 = vpop.f32.mrb[49].mxu1 }
 0x799   :  { %v2507_v1 = vpop.f32.mrb[50].mxu1 }
 0x79a   :  { %v3424_v42 = vpop.f32.mrb[51].mxu1 }
 0x79d   :  { %v5108_v41 = vpop.f32.mrb[52].mxu1 }
 0x79e   :  { %v3427_v3 = vpop.f32.mrb[53].mxu1 }
 0x7a1   :  { %v2616_v7 = vpop.f32.mrb[54].mxu1 }
 0x7a2   :  { %v2622_v37 = vmul.f32 0.35355338, %v2616_v7  ;;  %v3442_v35 = vpop.f32.mrb[55].mxu1 }
 0x7a4   :  { %v2629_v47 = vsel %vm913_vm6, %v2622_v37, -inf }
 0x7a5   :  { %2630 = vmax.xlane.f32.xlu0 %v2629_v47 }
 0x81d   :  { %v2625_v43 = vpop.xlane.xlu1 %2624 }
 0x81e   :  { %v2632_v5 = vsub.f32 %v2620_v11, %v2625_v43 }
 0x820   :  { %v2635_v9 = vmul.f32 1.442695, %v2632_v5 }
 0x821   :  { %v2628_v29 = vpop.xlane.xlu0 %2627 }
 0x822   :  { %3858 = vpow2.f32 %v2635_v9  ;;  %v2633_v15 = vsub.f32 %v2621_v52, %v2628_v29 }
 0x824   :  { %v2637_v39 = vmul.f32 1.442695, %v2633_v15 }
 0x826   :  { %3860 = vpow2.f32 %v2637_v39 }
 0x82c   :  { %v3859_v14 = vpop.eup %3858 }
 0x82d   :  { %v2641_v13 = vsel %vm913_vm6, %v3859_v14, 0.0 }
 0x82e   :  { %2642 = vadd.xlane.f32.xlu0 %v2641_v13 }
 0x830   :  { %v5112_v4 = vpop.eup %3860 }
 0x831   :  { %v2644_v40 = vsel %vm913_vm6, %v5112_v4, 0.0 }
 0x832   :  { %2645 = vadd.xlane.f32.xlu1 %v2644_v40  ;;  %v2631_v8 = vpop.xlane.xlu0 %2630 }
 0x833   :  { %v2634_v50 = vsub.f32 %v2622_v37, %v2631_v8 }
 0x835   :  { %v2639_v22 = vmul.f32 1.442695, %v2634_v50 }
 0x837   :  { %3862 = vpow2.f32 %v2639_v22 }
 0x841   :  { %v5116_v0 = vpop.eup %3862 }
 0x842   :  { %v2647_v61 = vsel %vm913_vm6, %v5116_v0, 0.0 }
 0x843   :  { %3722 = vrot.lane.b32.xlu1 %v4547_v59, %s3884_s18  ;;  %2648 = vadd.xlane.f32.xlu0 %v2647_v61  ;;  %v2799_v59 = vld [vmem:[%s5245_s11] sm:$0xff] }
 0x847   :  { %1762 = vrot.lane.b32.xlu1 %v5076_v53, %s3885_s19  ;;  %v3571_v53 = vpack.c.bf16 %v2800_v55, %v2799_v59 }
 0x849   :  { %3572 = vmatprep.subr.bf16.mxu0 %v3571_v53 }
 0x84a   :  { %3574 = vmatpush3.bf16.msra.mxu0 %v3571_v53 }
 0x84b   :  { %1764 = vrot.lane.b32.xlu1 %v5078_v44, %s3885_s19  ;;  %v2801_v44 = vld [vmem:[%s5245_s11 + $0x10] sm:$0xff] }
 0x84f   :  { %1774 = vrot.lane.b32.xlu1 %v5082_v16, %s3886_s2  ;;  %v2802_v16 = vld [vmem:[%s5245_s11 + $0x18] sm:$0xff] }
 0x853   :  { %1786 = vrot.lane.b32.xlu1 %v5088_v31, %s3887_s20  ;;  %v3575_v31 = vpack.c.bf16 %v2802_v16, %v2801_v44 }
 0x855   :  { %3576 = vmatprep.subr.bf16.mxu0 %v3575_v31 }
 0x856   :  { %3578 = vmatpush3.bf16.msra.mxu0 %v3575_v31 }
 0x857   :  { %1766 = vrot.lane.b32.xlu1 %v5080_v24, %s3885_s19 }
 0x859   :  { %2660 = vrot.lane.b32.xlu0 %v4557_v10, %s3884_s18 }
 0x85b   :  { %2757 = vrot.lane.b32.xlu1 %v5100_v30, %s3885_s19 }
 0x85d   :  { %1776 = vrot.lane.b32.xlu0 %v5084_v34, %s3886_s2 }
 0x85f   :  { %2769 = vrot.lane.b32.xlu1 %v2502_v27, %s3886_s2 }
 0x861   :  { %1788 = vrot.lane.b32.xlu0 %v5090_v20, %s3887_s20 }
 0x863   :  { %2759 = vrot.lane.b32.xlu1 %v5102_v54, %s3885_s19 }
 0x865   :  { %1778 = vrot.lane.b32.xlu0 %v5086_v28, %s3886_s2 }
 0x867   :  { %2771 = vrot.lane.b32.xlu1 %v2507_v1, %s3886_s2 }
 0x869   :  { %1790 = vrot.lane.b32.xlu0 %v5092_v49, %s3887_s20 }
 0x8bb   :  { %v2643_v34 = vpop.xlane.xlu0 %2642 }
 0x8bc   :  { %3864 = vrcp.f32 %v2643_v34 }
 0x8bf   :  { %v2646_v10 = vpop.xlane.xlu1 %2645 }
 0x8c0   :  { %3866 = vrcp.f32 %v2646_v10 }
 0x8c3   :  { %v3723_v24 = vpop.permute.xlu1 %3722 }
 0x8c4   :  { %v3725_v38 = vunpack.i.h.bf16 %v3723_v24  ;;  %v3724_v26 = vunpack.i.l.bf16 %v3723_v24 }
 0x8c6   :  { %v3569_v25 = vpack.c.bf16 %v3725_v38, %v3724_v26  ;;  %v3865_v18 = vpop.eup %3864 }
 0x8c7   :  { %v1763_v57 = vpop.permute.xlu1 %1762  ;;  %v2653_v54 = vmul.f32 %v3865_v18, %v3859_v14 }
 0x8c8   :  { %3570 = vmatpush3.bf16.msra.mxu1 %v3569_v25  ;;  %v1795_v49 = vsel %vm817_vm4, %v5070_v58, %v1763_v57 }
 0x8c9   :  { %3447 = vmatprep.subr.mxu1 %v3875_v6 }
 0x8ca   :  { %v3867_v11 = vpop.eup %3866 }
 0x8cb   :  { %v1765_v20 = vpop.permute.xlu1 %1764  ;;  %v2654_v23 = vmul.f32 %v3867_v11, %v5112_v4 }
 0x8cc   :  { %v1796_v36 = vsel %vm817_vm4, %v5072_v48, %v1765_v20 }
 0x8cf   :  { %v1775_v56 = vpop.permute.xlu1 %1774 }
 0x8d0   :  { %v2649_v28 = vpop.xlane.xlu0 %2648  ;;  %v1799_v30 = vsel %vm1798_vm7, %v1795_v49, %v1775_v56 }
 0x8d1   :  { %3868 = vrcp.f32 %v2649_v28 }
 0x8d3   :  { %v1787_v33 = vpop.permute.xlu1 %1786 }
 0x8d4   :  { %v1802_v45 = vsel %vm913_vm6, %v1799_v30, %v1787_v33  ;;  %v2661_v12 = vpop.permute.xlu0 %2660 }
 0x8d5   :  { %3448 = vmatpush3.msra.mxu1 %v2661_v12  ;;  %3466 = vmatprep.mubr.msk.f32.mxu0 %vm64_vm0, %v1802_v45 }
 0x8d6   :  { %3450 = vmatmul.mubr.msk.f32.vlgmr.msra.gmra.mrb[56].mxu1 %vm913_vm6, %v2653_v54 }
 0x8d7   :  { %3452 = vmatprep.mubr.msk.f32.mxu1 %vm3874_vm3, %v3875_v6  ;;  %v1767_v27 = vpop.permute.xlu1 %1766 }
 0x8d8   :  { %v1777_v60 = vpop.permute.xlu0 %1776  ;;  %v1797_v1 = vsel %vm817_vm4, %v5074_v46, %v1767_v27  ;;  %v3015_v46 = vld [vmem:[%s5246_s12] ss:$0 sm:$0xff] }
 0x8d9   :  { %v1800_v52 = vsel %vm1798_vm7, %v1796_v36, %v1777_v60 }
 0x8da   :  { %3453 = vmatmul.mubr.msk.f32.gmra.mrb[58].mxu1 %vm913_vm6, %v2654_v23 }
 0x8db   :  { %v3869_v58 = vpop.eup %3868  ;;  %3455 = vmatprep.mubr.msk.f32.mxu1 %vm3874_vm3, %v3875_v6 }
 0x8dc   :  { %v1789_v62 = vpop.permute.xlu0 %1788  ;;  %v2655_v63 = vmul.f32 %v3869_v58, %v5116_v0 }
 0x8dd   :  { %v1803_v2 = vsel %vm913_vm6, %v1800_v52, %v1789_v62 }
 0x8de   :  { %3456 = vmatmul.mubr.msk.f32.gmra.mrb[60].mxu1 %vm913_vm6, %v2655_v63  ;;  %3467 = vmatmul.mubr.msk.f32.vlgmr.msra.gmra.mrb[46].mxu0 %vm64_vm0, %v1803_v2 }
 0x8e0   :  { %v1779_v32 = vpop.permute.xlu0 %1778 }
 0x8e1   :  { %v1801_v48 = vsel %vm1798_vm7, %v1797_v1, %v1779_v32 }
 0x8e4   :  { %v1791_v42 = vpop.permute.xlu0 %1790 }
 0x8e5   :  { %v1804_v6 = vsel %vm913_vm6, %v1801_v48, %v1791_v42 }
 0x8e6   :  { %3469 = vmatprep.mubr.msk.f32.mxu0 %vm64_vm0, %v1804_v6 }
 0x9a9   :  { %v2740_v3 = vpop.f32.mrb[56].mxu1 }
 0x9aa   :  { %2781 = vrot.lane.b32.xlu0 %v2740_v3, %s3887_s20  ;;  %v3451_v7 = vpop.f32.mrb[57].mxu1 }
 0x9ad   :  { %v2745_v37 = vpop.f32.mrb[58].mxu1 }
 0x9ae   :  { %2761 = vrot.lane.b32.xlu0 %v5105_v19, %s3885_s19  ;;  %2783 = vrot.lane.b32.xlu1 %v2745_v37, %s3887_s20  ;;  %v3454_v35 = vpop.f32.mrb[59].mxu1  ;;  %v2758_v19 = vpop.permute.xlu1 %2757 }
 0x9b1   :  { %v2750_v47 = vpop.f32.mrb[60].mxu1  ;;  %v3468_v43 = vpop.f32.mrb[46].mxu0 }
 0x9b2   :  { %v2900_v5 = vadd.f32 %v3468_v43, %v3015_v46  ;;  %v2894_v9 = vpop.f32.mrb[47].mxu0  ;;  %2773 = vrot.lane.b32.xlu0 %v5108_v41, %s3886_s2  ;;  %v3457_v29 = vpop.f32.mrb[61].mxu1  ;;  %v2790_v41 = vsel %vm817_vm4, %v5094_v21, %v2758_v19 }
 0x9b3   :  { %v2895_v15 = vadd.f32 %v3015_v46, %v2894_v9  ;;  %v2770_v39 = vpop.permute.xlu1 %2769 }
 0x9b4   :  { %2924 = vst.msk [vmem:[%s5247_s13 + $0x8] sm:$0xff] %vm817_vm4, %v2900_v5  ;;  %v2793_v13 = vsel %vm1798_vm7, %v2790_v41, %v2770_v39 }
 0x9b5   :  { %2923 = vst.msk [vmem:[%s5247_s13] sm:$0xff] %vm817_vm4, %v2895_v15 }
 0x9b6   :  { %2785 = vrot.lane.b32.xlu0 %v2750_v47, %s3887_s20 }
 0x9b7   :  { %v2760_v14 = vpop.permute.xlu1 %2759 }
 0x9b8   :  { %v2791_v50 = vsel %vm817_vm4, %v5096_v17, %v2760_v14 }
 0x9bb   :  { %v2772_v4 = vpop.permute.xlu1 %2771 }
 0x9bc   :  { %v2794_v22 = vsel %vm1798_vm7, %v2791_v50, %v2772_v4 }
 0xa1c   :  { %v2782_v40 = vpop.permute.xlu0 %2781 }
 0xa1d   :  { %v2796_v8 = vsel %vm913_vm6, %v2793_v13, %v2782_v40 }
 0xa1e   :  { %3470 = vmatmul.mubr.msk.f32.gmra.mrb[48].mxu0 %vm64_vm0, %v2796_v8 }
 0xa20   :  { %v2762_v0 = vpop.permute.xlu0 %2761  ;;  %v2784_v61 = vpop.permute.xlu1 %2783 }
 0xa21   :  { %v2797_v59 = vsel %vm913_vm6, %v2794_v22, %v2784_v61  ;;  %v2792_v55 = vsel %vm817_vm4, %v5098_v51, %v2762_v0 }
 0xa22   :  { %3472 = vmatprep.mubr.msk.f32.mxu0 %vm64_vm0, %v2797_v59 }
 0xa24   :  { %v2774_v21 = vpop.permute.xlu0 %2773 }
 0xa25   :  { %v2795_v53 = vsel %vm1798_vm7, %v2792_v55, %v2774_v21 }
 0xa28   :  { %v2786_v44 = vpop.permute.xlu0 %2785 }
 0xa29   :  { %v2798_v16 = vsel %vm913_vm6, %v2795_v53, %v2786_v44 }
 0xa2a   :  { %3473 = vmatmul.mubr.msk.f32.gmra.mrb[50].mxu0 %vm64_vm0, %v2798_v16 }
 0xaf1   :  { %v3471_v17 = vpop.f32.mrb[48].mxu0 }
 0xaf2   :  { %v2910_v31 = vadd.f32 %v3471_v17, %v3015_v46  ;;  %v2904_v10 = vpop.f32.mrb[49].mxu0 }
 0xaf3   :  { %v2905_v24 = vadd.f32 %v3015_v46, %v2904_v10 }
 0xaf4   :  { %2926 = vst.msk [vmem:[%s5247_s13 + $0x18] sm:$0xff] %vm817_vm4, %v2910_v31 }
 0xaf5   :  { %2925 = vst.msk [vmem:[%s5247_s13 + $0x10] sm:$0xff] %vm817_vm4, %v2905_v24 }
 0xafd   :  { %v3474_v51 = vpop.f32.mrb[50].mxu0 }
 0xafe   :  { %v2920_v34 = vadd.f32 %v3474_v51, %v3015_v46  ;;  %v2914_v38 = vpop.f32.mrb[51].mxu0 }
 0xaff   :  { %v2915_v26 = vadd.f32 %v3015_v46, %v2914_v38 }
 0xb00   :  { %2928 = vst.msk [vmem:[%s5247_s13 + $0x28] sm:$0xff] %vm817_vm4, %v2920_v34 }
 0xb01   :  { %2927 = vst.msk [vmem:[%s5247_s13 + $0x20] sm:$0xff] %vm817_vm4, %v2915_v26 }

</bundles_post_ra>
